<compile_context>
chip_gen: v7x
topology: tpu7x:2x2x1
jax: 0.10.0
libtpu: 0.0.40
codegen_flags: <defaults>
</compile_context>

<pallas_src>
import functools

import jax
import jax.numpy as jnp
from jax import lax
from jax.experimental import pallas as pl
from jax.experimental.pallas import tpu as pltpu


# ----------------------------------------------------------------------------
# helpers
# ----------------------------------------------------------------------------
def _round_up(x, m):
    return (x + m - 1) // m * m


def _pad_gates(w, hid, hid_pad):
    """(rows, 4*hid) -> (rows, 4*hid_pad): zero-pad each [i,f,g,o] gate block."""
    if hid_pad == hid:
        return w
    rows = w.shape[0]
    w4 = w.reshape(rows, 4, hid)
    w4 = jnp.pad(w4, ((0, 0), (0, 0), (0, hid_pad - hid)))
    return w4.reshape(rows, 4 * hid_pad)


def _tpu_topology():
    """Returns (tensorcores_per_device, physical_vmem_bytes_per_core)."""
    kind = ""
    try:
        kind = (jax.devices()[0].device_kind or "").lower()
    except Exception:
        pass
    # Megacore parts (2 TensorCores behind one jax device): v4, v5p, v7x.
    two_tc = any(tag in kind for tag in ("v4", "v5p", "v7"))
    num_tc = 2 if two_tc else 1
    vmem = None
    try:
        vmem = int(getattr(pltpu.get_tpu_info(), "vmem_capacity_bytes", 0)) or None
    except Exception:
        vmem = None
    if vmem is None:
        vmem = (64 << 20) if two_tc else (128 << 20)
    return num_tc, vmem


# ----------------------------------------------------------------------------
# fused LSTM layer kernel: per grid step = one time chunk of one batch block.
#   gx_chunk = x_chunk @ W_ih + b  (one batched MXU matmul, f32 acc)
#   then tc recurrent steps: h @ W_hh, gates, state update.
# ----------------------------------------------------------------------------
def _lstm_layer_kernel(x_ref, wih_hbm, whh_hbm, b_ref, out_ref,
                       wih_vmem, whh_vmem, gx_ref, h_ref, c_ref, sem,
                       *, t_total, ragged, last_layer, unroll):
    s_idx = pl.program_id(1)

    # One-shot weight residency (single-buffered, once per core / batch block)
    # and recurrent-state reset at the start of this batch block's time loop.
    @pl.when(s_idx == 0)
    def _():
        cp_ih = pltpu.make_async_copy(wih_hbm, wih_vmem, sem.at[0])
        cp_hh = pltpu.make_async_copy(whh_hbm, whh_vmem, sem.at[1])
        cp_ih.start()
        cp_hh.start()
        h_ref[...] = jnp.zeros_like(h_ref)
        c_ref[...] = jnp.zeros_like(c_ref)
        cp_ih.wait()
        cp_hh.wait()

    b_blk, hp = h_ref.shape
    tc = gx_ref.shape[0] // b_blk

    # Fused input projection for the whole chunk: tc*b_blk rows -> good MXU
    # fill; f32 accumulation; bias folded in.
    gx_ref[...] = (
        jnp.dot(x_ref[...].astype(wih_vmem.dtype), wih_vmem[...],
                preferred_element_type=jnp.float32)
        + b_ref[...])

    base = s_idx * tc

    def step(i, carry):
        h, c = carry
        row0 = pl.multiple_of(i * b_blk, 8)
        g = gx_ref[pl.ds(row0, b_blk), :] + jnp.dot(
            h.astype(whh_vmem.dtype), whh_vmem[...],
            preferred_element_type=jnp.float32)
        i_g = jax.nn.sigmoid(g[:, 0 * hp:1 * hp])
        f_g = jax.nn.sigmoid(g[:, 1 * hp:2 * hp])
        g_g = jnp.tanh(g[:, 2 * hp:3 * hp])
        o_g = jax.nn.sigmoid(g[:, 3 * hp:4 * hp])
        c_new = f_g * c + i_g * g_g
        h_new = o_g * jnp.tanh(c_new)
        if ragged:
            # Ragged last chunk: steps past the real sequence length freeze
            # the carries (cheap scalar-broadcast VPU select).
            keep = ((base + i) < t_total).astype(jnp.float32)
            h_new = keep * h_new + (1.0 - keep) * h
            c_new = keep * c_new + (1.0 - keep) * c
        if not last_layer:
            out_ref[pl.ds(row0, b_blk), :] = h_new.astype(out_ref.dtype)
        return h_new, c_new

    h, c = lax.fori_loop(0, tc, step, (h_ref[...], c_ref[...]), unroll=unroll)
    h_ref[...] = h
    c_ref[...] = c

    if last_layer:
        # Only the final hidden state leaves the kernel (no y-sequence write).
        out_ref[...] = h.astype(out_ref.dtype)


def _lstm_layer(x2d, w_ih, w_hh, bias, *, nb, b_blk, tc, n_chunks, t_total,
                last_layer, out_dtype, vmem_limit_bytes):
    """x2d: (nb * t_pad * b_blk, din) activations laid out batch-block-major,
    time-major, batch on sublanes.  Returns either the full y sequence in the
    same layout (non-last layers) or the final hidden state (b_pad, Hp)."""
    din = w_ih.shape[0]
    hp = w_hh.shape[0]
    n4 = 4 * hp
    rows_blk = tc * b_blk
    ragged = (n_chunks * tc != t_total)

    unroll = min(tc, 8)
    while tc % unroll:
        unroll -= 1

    x_spec = pl.BlockSpec((rows_blk, din), lambda bb, s: (bb * n_chunks + s, 0))
    if last_layer:
        out_shape = jax.ShapeDtypeStruct((nb * b_blk, hp), out_dtype)
        out_spec = pl.BlockSpec((b_blk, hp), lambda bb, s: (bb, 0))
    else:
        out_shape = jax.ShapeDtypeStruct((nb * n_chunks * rows_blk, hp), out_dtype)
        out_spec = pl.BlockSpec((rows_blk, hp), lambda bb, s: (bb * n_chunks + s, 0))

    kernel = functools.partial(_lstm_layer_kernel, t_total=t_total,
                               ragged=ragged, last_layer=last_layer,
                               unroll=unroll)

    return pl.pallas_call(
        kernel,
        out_shape=out_shape,
        grid_spec=pltpu.PrefetchScalarGridSpec(
            num_scalar_prefetch=0,
            grid=(nb, n_chunks),
            in_specs=[
                x_spec,
                pl.BlockSpec(memory_space=pl.ANY),    # W_ih stays in HBM
                pl.BlockSpec(memory_space=pl.ANY),    # W_hh stays in HBM
                pl.BlockSpec((1, n4), lambda bb, s: (0, 0)),   # summed bias
            ],
            out_specs=out_spec,
            scratch_shapes=[
                pltpu.VMEM((din, n4), w_ih.dtype),        # resident W_ih (1 copy)
                pltpu.VMEM((hp, n4), w_hh.dtype),         # resident W_hh (1 copy)
                pltpu.VMEM((rows_blk, n4), jnp.float32),  # per-chunk gx = x@W_ih+b
                pltpu.VMEM((b_blk, hp), jnp.float32),     # h carry
                pltpu.VMEM((b_blk, hp), jnp.float32),     # c carry
                pltpu.SemaphoreType.DMA((2,)),
            ],
        ),
        compiler_params=pltpu.CompilerParams(
            dimension_semantics=("parallel", "arbitrary"),
            vmem_limit_bytes=int(vmem_limit_bytes),
        ),
    )(x2d, w_ih, w_hh, bias)


# ----------------------------------------------------------------------------
# forward: equivalent of LstmSharedLayers.forward -> hidden[-1], shape (B, H)
# ----------------------------------------------------------------------------
@functools.partial(jax.jit, static_argnames=("compute_dtype", "time_chunk"))
def lstm_shared_layers_forward(x_btd, params, compute_dtype=jnp.float32,
                               time_chunk=None):
    b, t, in_dim = x_btd.shape
    hid = params[0][1].shape[0]            # w_hh stored as (H, 4H)
    hp = _round_up(hid, 128)               # lane-align hidden dim
    b_pad = _round_up(b, 8)                # sublane-align batch
    din0 = _round_up(in_dim, 8)            # sublane-align W_ih rows (layer 0)

    num_tc, vmem_phys = _tpu_topology()
    vmem_cap = max(min(vmem_phys * 3 // 4, vmem_phys - (12 << 20)), 32 << 20)

    # Split the batch across TensorCores only when the part actually has two;
    # on 1-TC chips (v5e/v6e) a split is pure grid / DMA overhead.
    split = (num_tc >= 2) and (b_pad % (8 * num_tc) == 0)
    nb = num_tc if split else 1
    b_blk = b_pad // nb

    act_dtype = jnp.dtype(compute_dtype)
    w_dtype = jnp.dtype(compute_dtype)
    if (w_dtype == jnp.dtype(jnp.float32) and hp >= 1024
            and vmem_cap < (64 << 20)):
        # 64-MiB-VMEM parts (v7x): keep resident W_ih/W_hh in bf16 so they fit
        # next to the pipelined activation chunks (accumulation stays f32).
        w_dtype = jnp.dtype(jnp.bfloat16)

    # ---- pick time-chunk size from the per-core VMEM budget -----------------
    a_bytes = act_dtype.itemsize
    w_bytes = w_dtype.itemsize
    dmax = max(din0, hp)
    fixed = ((dmax + hp) * 4 * hp * w_bytes        # resident W_ih + W_hh
             + 2 * b_blk * hp * 4                  # h, c carries
             + 2 * 4 * hp * 4                      # bias (double-buffered)
             + 6 * b_blk * 4 * hp * 4)             # gate-temporary headroom
    per_tc = b_blk * (2 * dmax * a_bytes           # x chunk (double-buffered)
                      + 2 * hp * a_bytes           # y chunk (double-buffered)
                      + 4 * hp * 4)                # gx scratch (f32)
    budget = int(vmem_cap * 0.6)
    if time_chunk is None:
        tc = 1
        for cand in (64, 32, 16, 8, 4, 2, 1):
            if fixed + cand * per_tc <= budget:
                tc = cand
                break
    else:
        tc = max(1, int(time_chunk))
    # Ragged chunking: shrink tc to minimize masked (wasted) padded steps.
    n_chunks = -(-t // tc)
    tc = -(-t // n_chunks)
    t_pad = n_chunks * tc

    # ---- layout: batch-block-major, time-major, batch on sublanes -----------
    y = jnp.transpose(x_btd, (1, 0, 2)).astype(act_dtype)          # (T, B, D)
    y = jnp.pad(y, ((0, t_pad - t), (0, b_pad - b), (0, din0 - in_dim)))
    y = y.reshape(t_pad, nb, b_blk, din0).transpose(1, 0, 2, 3)
    y = y.reshape(nb * t_pad * b_blk, din0)

    num_layers = len(params)
    for layer, (w_ih, w_hh, bias) in enumerate(params):
        last = layer == num_layers - 1
        wih_p = _pad_gates(w_ih, hid, hp)
        pad_rows = (din0 if layer == 0 else hp) - wih_p.shape[0]
        wih_p = jnp.pad(wih_p, ((0, pad_rows), (0, 0)))
        whh_p = jnp.pad(_pad_gates(w_hh, hid, hp), ((0, hp - hid), (0, 0)))
        bias_p = _pad_gates(bias, hid, hp).astype(jnp.float32)
        y = _lstm_layer(
            y, wih_p.astype(w_dtype), whh_p.astype(w_dtype), bias_p,
            nb=nb, b_blk=b_blk, tc=tc, n_chunks=n_chunks, t_total=t,
            last_layer=last,
            out_dtype=(jnp.float32 if last else act_dtype),
            vmem_limit_bytes=vmem_cap)

    # Final hidden state of the last layer, un-padded: hidden[-1] -> (B, H)
    return y[:b, :hid]


# ----------------------------------------------------------------------------
# parameter init (matches nn.LSTM shapes; weights stored transposed, bias summed)
# ----------------------------------------------------------------------------
def init_lstm_params(key, input_dim, hidden_dim, num_layers):
    bound = 1.0 / jnp.sqrt(jnp.float32(hidden_dim))
    params = []
    for layer in range(num_layers):
        d_in = input_dim if layer == 0 else hidden_dim
        key, k1, k2, k3, k4 = jax.random.split(key, 5)
        w_ih = jax.random.uniform(k1, (4 * hidden_dim, d_in),
                                  jnp.float32, -bound, bound)
        w_hh = jax.random.uniform(k2, (4 * hidden_dim, hidden_dim),
                                  jnp.float32, -bound, bound)
        b_ih = jax.random.uniform(k3, (4 * hidden_dim,),
                                  jnp.float32, -bound, bound)
        b_hh = jax.random.uniform(k4, (4 * hidden_dim,),
                                  jnp.float32, -bound, bound)
        params.append((w_ih.T, w_hh.T, (b_ih + b_hh)[None, :]))
    return params


# ----------------------------------------------------------------------------
# pure-JAX reference (lax.scan), same math as PyTorch nn.LSTM in f32
# ----------------------------------------------------------------------------
def _reference_forward(x_btd, params):
    b = x_btd.shape[0]
    y = jnp.transpose(x_btd, (1, 0, 2)).astype(jnp.float32)  # (T, B, D)
    for w_ih, w_hh, bias in params:
        hdim = w_hh.shape[0]

        def step(carry, x_t, w_ih=w_ih, w_hh=w_hh, bias=bias, hdim=hdim):
            h, c = carry
            gates = x_t @ w_ih + h @ w_hh + bias
            i = jax.nn.sigmoid(gates[:, 0 * hdim:1 * hdim])
            f = jax.nn.sigmoid(gates[:, 1 * hdim:2 * hdim])
            g = jnp.tanh(gates[:, 2 * hdim:3 * hdim])
            o = jax.nn.sigmoid(gates[:, 3 * hdim:4 * hdim])
            c = f * c + i * g
            h = o * jnp.tanh(c)
            return (h, c), h

        h0 = jnp.zeros((b, hdim), jnp.float32)
        c0 = jnp.zeros((b, hdim), jnp.float32)
        _, y = jax.lax.scan(step, (h0, c0), y)
    return y[-1]


if __name__ == "__main__":
    batch, seq, input_dim, hidden_dim, num_layers = 2, 8, 4, 32, 2

    root = jax.random.PRNGKey(0)
    kx, kp, kx2 = jax.random.split(root, 3)
    x = jax.random.normal(kx, (batch, seq, input_dim), jnp.float32)
    params = init_lstm_params(kp, input_dim, hidden_dim, num_layers)

    ref = _reference_forward(x, params)

    # f32 compute path (matches PyTorch numerics)
    out = jax.block_until_ready(lstm_shared_layers_forward(x, params))
    assert out.shape == (batch, hidden_dim)
    assert jnp.allclose(out, ref, atol=1e-4, rtol=1e-4), "f32 kernel mismatch"

    # ragged time-chunk path (T=11 not a multiple of the chunk size)
    seq2 = 11
    x2 = jax.random.normal(kx2, (batch, seq2, input_dim), jnp.float32)
    ref2 = _reference_forward(x2, params)
    out2 = jax.block_until_ready(
        lstm_shared_layers_forward(x2, params, time_chunk=4))
    assert jnp.allclose(out2, ref2, atol=1e-4, rtol=1e-4), "ragged mismatch"

    # bf16-matmul / bf16 inter-layer activation path (f32 state & gate math)
    out_bf16 = jax.block_until_ready(
        lstm_shared_layers_forward(x, params, compute_dtype=jnp.bfloat16))
    assert jnp.allclose(out_bf16, ref, atol=1e-1, rtol=1e-1), "bf16 mismatch"

    print("KERNEL_OK")
</pallas_src>

<mosaic_0001>
module attributes {stable_mosaic.version = 11 : i64} {
  func.func @_lstm_layer_kernel(%arg0: i32, %arg1: i32, %arg2: memref<64x8xf32, #tpu.memory_space<vmem>>, %arg3: memref<8x512xf32, #tpu.memory_space<any>>, %arg4: memref<128x512xf32, #tpu.memory_space<any>>, %arg5: memref<1x512xf32, #tpu.memory_space<vmem>>, %arg6: memref<64x128xf32, #tpu.memory_space<vmem>>, %arg7: memref<8x512xf32, #tpu.memory_space<vmem>>, %arg8: memref<128x512xf32, #tpu.memory_space<vmem>>, %arg9: memref<64x512xf32, #tpu.memory_space<vmem>>, %arg10: memref<8x128xf32, #tpu.memory_space<vmem>>, %arg11: memref<8x128xf32, #tpu.memory_space<vmem>>, %arg12: memref<2x!tpu.dma_semaphore, #tpu.memory_space<semaphore_mem>>) attributes {dimension_semantics = [#tpu.dimension_semantics<parallel>, #tpu.dimension_semantics<arbitrary>], iteration_bounds = array<i64: 1, 1>, scalar_prefetch = 0 : i64, scratch_operands = 6 : i64, tpu.core_type = #tpu.core_type<tc>, window_params = [{transform_indices = @transform_0, window_bounds = array<i64: 64, 8>}, {}, {}, {pipeline_mode = #tpu.pipeline_mode<synchronous>, transform_indices = @transform_3, window_bounds = array<i64: 1, 512>}, {transform_indices = @transform_4, window_bounds = array<i64: 64, 128>}]} {
    %c0_i32 = arith.constant 0 : i32
    %0 = arith.cmpi eq, %arg1, %c0_i32 : i32
    %1 = arith.extui %0 : i1 to i32
    %c0_i32_0 = arith.constant 0 : i32
    %2 = arith.cmpi ne, %1, %c0_i32_0 : i32
    scf.if %2 {
      %c0_i32_89 = arith.constant 0 : i32
      %286 = tpu.memref_slice %arg12[%c0_i32_89] : memref<2x!tpu.dma_semaphore, #tpu.memory_space<semaphore_mem>> -> memref<1x!tpu.dma_semaphore, #tpu.memory_space<semaphore_mem>>
      %287 = tpu.memref_squeeze %286 : memref<1x!tpu.dma_semaphore, #tpu.memory_space<semaphore_mem>> -> memref<!tpu.dma_semaphore, #tpu.memory_space<semaphore_mem>>
      tpu.enqueue_dma source(%arg3 : memref<8x512xf32, #tpu.memory_space<any>>) target(%arg7 : memref<8x512xf32, #tpu.memory_space<vmem>>) target_semaphore(%287 : memref<!tpu.dma_semaphore, #tpu.memory_space<semaphore_mem>>)
      %c1_i32_90 = arith.constant 1 : i32
      %288 = tpu.memref_slice %arg12[%c1_i32_90] : memref<2x!tpu.dma_semaphore, #tpu.memory_space<semaphore_mem>> -> memref<1x!tpu.dma_semaphore, #tpu.memory_space<semaphore_mem>>
      %289 = tpu.memref_squeeze %288 : memref<1x!tpu.dma_semaphore, #tpu.memory_space<semaphore_mem>> -> memref<!tpu.dma_semaphore, #tpu.memory_space<semaphore_mem>>
      tpu.enqueue_dma source(%arg4 : memref<128x512xf32, #tpu.memory_space<any>>) target(%arg8 : memref<128x512xf32, #tpu.memory_space<vmem>>) target_semaphore(%289 : memref<!tpu.dma_semaphore, #tpu.memory_space<semaphore_mem>>)
      %cst_91 = arith.constant 0.000000e+00 : f32
      %290 = vector.broadcast %cst_91 : f32 to vector<8x128xf32>
      %c0_92 = arith.constant 0 : index
      %c0_93 = arith.constant 0 : index
      %291 = vector.load %arg10[%c0_92, %c0_93] : memref<8x128xf32, #tpu.memory_space<vmem>>, vector<8x128xf32>
      tpu.vector_store %arg10[%c0_92, %c0_93], %290 {strides = array<i32>} : memref<8x128xf32, #tpu.memory_space<vmem>>, vector<8x128xf32>,
      %cst_94 = arith.constant 0.000000e+00 : f32
      %292 = vector.broadcast %cst_94 : f32 to vector<8x128xf32>
      %c0_95 = arith.constant 0 : index
      %c0_96 = arith.constant 0 : index
      %293 = vector.load %arg11[%c0_95, %c0_96] : memref<8x128xf32, #tpu.memory_space<vmem>>, vector<8x128xf32>
      tpu.vector_store %arg11[%c0_95, %c0_96], %292 {strides = array<i32>} : memref<8x128xf32, #tpu.memory_space<vmem>>, vector<8x128xf32>,
      %c0_i32_97 = arith.constant 0 : i32
      %294 = tpu.memref_slice %arg12[%c0_i32_97] : memref<2x!tpu.dma_semaphore, #tpu.memory_space<semaphore_mem>> -> memref<1x!tpu.dma_semaphore, #tpu.memory_space<semaphore_mem>>
      %295 = tpu.memref_squeeze %294 : memref<1x!tpu.dma_semaphore, #tpu.memory_space<semaphore_mem>> -> memref<!tpu.dma_semaphore, #tpu.memory_space<semaphore_mem>>
      tpu.wait_dma2 semaphore(%295 : memref<!tpu.dma_semaphore, #tpu.memory_space<semaphore_mem>>) src(%arg3 : memref<8x512xf32, #tpu.memory_space<any>>) dst(%arg7 : memref<8x512xf32, #tpu.memory_space<vmem>>)
      %c1_i32_98 = arith.constant 1 : i32
      %296 = tpu.memref_slice %arg12[%c1_i32_98] : memref<2x!tpu.dma_semaphore, #tpu.memory_space<semaphore_mem>> -> memref<1x!tpu.dma_semaphore, #tpu.memory_space<semaphore_mem>>
      %297 = tpu.memref_squeeze %296 : memref<1x!tpu.dma_semaphore, #tpu.memory_space<semaphore_mem>> -> memref<!tpu.dma_semaphore, #tpu.memory_space<semaphore_mem>>
      tpu.wait_dma2 semaphore(%297 : memref<!tpu.dma_semaphore, #tpu.memory_space<semaphore_mem>>) src(%arg4 : memref<128x512xf32, #tpu.memory_space<any>>) dst(%arg8 : memref<128x512xf32, #tpu.memory_space<vmem>>)
    } else {
    }
    %c0 = arith.constant 0 : index
    %c0_1 = arith.constant 0 : index
    %3 = vector.load %arg2[%c0, %c0_1] : memref<64x8xf32, #tpu.memory_space<vmem>>, vector<64x8xf32>
    %c0_2 = arith.constant 0 : index
    %c0_3 = arith.constant 0 : index
    %4 = vector.load %arg7[%c0_2, %c0_3] : memref<8x512xf32, #tpu.memory_space<vmem>>, vector<8x512xf32>
    %cst = arith.constant dense<0.000000e+00> : vector<64x512xf32>
    %5 = tpu.matmul %3, %4, %cst {dimension_numbers = #tpu.dot_dimension_numbers<[1], [0], [0], [1], [0, 0, 1, 1], [], []>} : vector<64x8xf32>, vector<8x512xf32>, vector<64x512xf32> -> vector<64x512xf32>
    %c0_4 = arith.constant 0 : index
    %c0_5 = arith.constant 0 : index
    %6 = vector.load %arg5[%c0_4, %c0_5] : memref<1x512xf32, #tpu.memory_space<vmem>>, vector<1x512xf32>
    %7 = vector.broadcast %6 : vector<1x512xf32> to vector<64x512xf32>
    %8 = arith.addf %5, %7 : vector<64x512xf32>
    %c0_6 = arith.constant 0 : index
    %c0_7 = arith.constant 0 : index
    %9 = vector.load %arg9[%c0_6, %c0_7] : memref<64x512xf32, #tpu.memory_space<vmem>>, vector<64x512xf32>
    tpu.vector_store %arg9[%c0_6, %c0_7], %8 {strides = array<i32>} : memref<64x512xf32, #tpu.memory_space<vmem>>, vector<64x512xf32>,
    %c0_8 = arith.constant 0 : index
    %c0_9 = arith.constant 0 : index
    %10 = vector.load %arg10[%c0_8, %c0_9] : memref<8x128xf32, #tpu.memory_space<vmem>>, vector<8x128xf32>
    %c0_10 = arith.constant 0 : index
    %c0_11 = arith.constant 0 : index
    %11 = vector.load %arg11[%c0_10, %c0_11] : memref<8x128xf32, #tpu.memory_space<vmem>>, vector<8x128xf32>
    %c0_i32_12 = arith.constant 0 : i32
    %c8_i32 = arith.constant 8 : i32
    %12 = arith.muli %c0_i32_12, %c8_i32 : i32
    %13 = tpu.assume_multiple %12, 8 : i32
    %14 = arith.index_cast %13 : i32 to index
    %c0_13 = arith.constant 0 : index
    %15 = vector.load %arg9[%14, %c0_13] : memref<64x512xf32, #tpu.memory_space<vmem>>, vector<8x512xf32>
    %c0_14 = arith.constant 0 : index
    %c0_15 = arith.constant 0 : index
    %16 = vector.load %arg8[%c0_14, %c0_15] : memref<128x512xf32, #tpu.memory_space<vmem>>, vector<128x512xf32>
    %cst_16 = arith.constant dense<0.000000e+00> : vector<8x512xf32>
    %17 = tpu.matmul %10, %16, %cst_16 {dimension_numbers = #tpu.dot_dimension_numbers<[1], [0], [0], [1], [0, 0, 1, 1], [], []>} : vector<8x128xf32>, vector<128x512xf32>, vector<8x512xf32> -> vector<8x512xf32>
    %18 = arith.addf %15, %17 : vector<8x512xf32>
    %19 = vector.extract_strided_slice %18 {offsets = [0, 0], sizes = [8, 128], strides = [1, 1]} : vector<8x512xf32> to vector<8x128xf32>
    %20 = arith.negf %19 : vector<8x128xf32>
    %21 = math.exp %20 : vector<8x128xf32>
    %cst_17 = arith.constant 1.000000e+00 : f32
    %22 = vector.broadcast %cst_17 : f32 to vector<8x128xf32>
    %23 = arith.addf %22, %21 : vector<8x128xf32>
    %24 = arith.divf %22, %23 : vector<8x128xf32>
    %25 = vector.extract_strided_slice %18 {offsets = [0, 128], sizes = [8, 128], strides = [1, 1]} : vector<8x512xf32> to vector<8x128xf32>
    %26 = arith.negf %25 : vector<8x128xf32>
    %27 = math.exp %26 : vector<8x128xf32>
    %cst_18 = arith.constant 1.000000e+00 : f32
    %28 = vector.broadcast %cst_18 : f32 to vector<8x128xf32>
    %29 = arith.addf %28, %27 : vector<8x128xf32>
    %30 = arith.divf %28, %29 : vector<8x128xf32>
    %31 = vector.extract_strided_slice %18 {offsets = [0, 256], sizes = [8, 128], strides = [1, 1]} : vector<8x512xf32> to vector<8x128xf32>
    %32 = math.tanh %31 : vector<8x128xf32>
    %33 = vector.extract_strided_slice %18 {offsets = [0, 384], sizes = [8, 128], strides = [1, 1]} : vector<8x512xf32> to vector<8x128xf32>
    %34 = arith.negf %33 : vector<8x128xf32>
    %35 = math.exp %34 : vector<8x128xf32>
    %cst_19 = arith.constant 1.000000e+00 : f32
    %36 = vector.broadcast %cst_19 : f32 to vector<8x128xf32>
    %37 = arith.addf %36, %35 : vector<8x128xf32>
    %38 = arith.divf %36, %37 : vector<8x128xf32>
    %39 = arith.mulf %30, %11 : vector<8x128xf32>
    %40 = arith.mulf %24, %32 : vector<8x128xf32>
    %41 = arith.addf %39, %40 : vector<8x128xf32>
    %42 = math.tanh %41 : vector<8x128xf32>
    %43 = arith.mulf %38, %42 : vector<8x128xf32>
    %44 = arith.index_cast %13 : i32 to index
    %c0_20 = arith.constant 0 : index
    %45 = vector.load %arg6[%44, %c0_20] : memref<64x128xf32, #tpu.memory_space<vmem>>, vector<8x128xf32>
    tpu.vector_store %arg6[%44, %c0_20], %43 {strides = array<i32>} : memref<64x128xf32, #tpu.memory_space<vmem>>, vector<8x128xf32>,
    %c1_i32 = arith.constant 1 : i32
    %c8_i32_21 = arith.constant 8 : i32
    %46 = arith.muli %c1_i32, %c8_i32_21 : i32
    %47 = tpu.assume_multiple %46, 8 : i32
    %48 = arith.index_cast %47 : i32 to index
    %c0_22 = arith.constant 0 : index
    %49 = vector.load %arg9[%48, %c0_22] : memref<64x512xf32, #tpu.memory_space<vmem>>, vector<8x512xf32>
    %c0_23 = arith.constant 0 : index
    %c0_24 = arith.constant 0 : index
    %50 = vector.load %arg8[%c0_23, %c0_24] : memref<128x512xf32, #tpu.memory_space<vmem>>, vector<128x512xf32>
    %cst_25 = arith.constant dense<0.000000e+00> : vector<8x512xf32>
    %51 = tpu.matmul %43, %50, %cst_25 {dimension_numbers = #tpu.dot_dimension_numbers<[1], [0], [0], [1], [0, 0, 1, 1], [], []>} : vector<8x128xf32>, vector<128x512xf32>, vector<8x512xf32> -> vector<8x512xf32>
    %52 = arith.addf %49, %51 : vector<8x512xf32>
    %53 = vector.extract_strided_slice %52 {offsets = [0, 0], sizes = [8, 128], strides = [1, 1]} : vector<8x512xf32> to vector<8x128xf32>
    %54 = arith.negf %53 : vector<8x128xf32>
    %55 = math.exp %54 : vector<8x128xf32>
    %cst_26 = arith.constant 1.000000e+00 : f32
    %56 = vector.broadcast %cst_26 : f32 to vector<8x128xf32>
    %57 = arith.addf %56, %55 : vector<8x128xf32>
    %58 = arith.divf %56, %57 : vector<8x128xf32>
    %59 = vector.extract_strided_slice %52 {offsets = [0, 128], sizes = [8, 128], strides = [1, 1]} : vector<8x512xf32> to vector<8x128xf32>
    %60 = arith.negf %59 : vector<8x128xf32>
    %61 = math.exp %60 : vector<8x128xf32>
    %cst_27 = arith.constant 1.000000e+00 : f32
    %62 = vector.broadcast %cst_27 : f32 to vector<8x128xf32>
    %63 = arith.addf %62, %61 : vector<8x128xf32>
    %64 = arith.divf %62, %63 : vector<8x128xf32>
    %65 = vector.extract_strided_slice %52 {offsets = [0, 256], sizes = [8, 128], strides = [1, 1]} : vector<8x512xf32> to vector<8x128xf32>
    %66 = math.tanh %65 : vector<8x128xf32>
    %67 = vector.extract_strided_slice %52 {offsets = [0, 384], sizes = [8, 128], strides = [1, 1]} : vector<8x512xf32> to vector<8x128xf32>
    %68 = arith.negf %67 : vector<8x128xf32>
    %69 = math.exp %68 : vector<8x128xf32>
    %cst_28 = arith.constant 1.000000e+00 : f32
    %70 = vector.broadcast %cst_28 : f32 to vector<8x128xf32>
    %71 = arith.addf %70, %69 : vector<8x128xf32>
    %72 = arith.divf %70, %71 : vector<8x128xf32>
    %73 = arith.mulf %64, %41 : vector<8x128xf32>
    %74 = arith.mulf %58, %66 : vector<8x128xf32>
    %75 = arith.addf %73, %74 : vector<8x128xf32>
    %76 = math.tanh %75 : vector<8x128xf32>
    %77 = arith.mulf %72, %76 : vector<8x128xf32>
    %78 = arith.index_cast %47 : i32 to index
    %c0_29 = arith.constant 0 : index
    %79 = vector.load %arg6[%78, %c0_29] : memref<64x128xf32, #tpu.memory_space<vmem>>, vector<8x128xf32>
    tpu.vector_store %arg6[%78, %c0_29], %77 {strides = array<i32>} : memref<64x128xf32, #tpu.memory_space<vmem>>, vector<8x128xf32>,
    %c2_i32 = arith.constant 2 : i32
    %c8_i32_30 = arith.constant 8 : i32
    %80 = arith.muli %c2_i32, %c8_i32_30 : i32
    %81 = tpu.assume_multiple %80, 8 : i32
    %82 = arith.index_cast %81 : i32 to index
    %c0_31 = arith.constant 0 : index
    %83 = vector.load %arg9[%82, %c0_31] : memref<64x512xf32, #tpu.memory_space<vmem>>, vector<8x512xf32>
    %c0_32 = arith.constant 0 : index
    %c0_33 = arith.constant 0 : index
    %84 = vector.load %arg8[%c0_32, %c0_33] : memref<128x512xf32, #tpu.memory_space<vmem>>, vector<128x512xf32>
    %cst_34 = arith.constant dense<0.000000e+00> : vector<8x512xf32>
    %85 = tpu.matmul %77, %84, %cst_34 {dimension_numbers = #tpu.dot_dimension_numbers<[1], [0], [0], [1], [0, 0, 1, 1], [], []>} : vector<8x128xf32>, vector<128x512xf32>, vector<8x512xf32> -> vector<8x512xf32>
    %86 = arith.addf %83, %85 : vector<8x512xf32>
    %87 = vector.extract_strided_slice %86 {offsets = [0, 0], sizes = [8, 128], strides = [1, 1]} : vector<8x512xf32> to vector<8x128xf32>
    %88 = arith.negf %87 : vector<8x128xf32>
    %89 = math.exp %88 : vector<8x128xf32>
    %cst_35 = arith.constant 1.000000e+00 : f32
    %90 = vector.broadcast %cst_35 : f32 to vector<8x128xf32>
    %91 = arith.addf %90, %89 : vector<8x128xf32>
    %92 = arith.divf %90, %91 : vector<8x128xf32>
    %93 = vector.extract_strided_slice %86 {offsets = [0, 128], sizes = [8, 128], strides = [1, 1]} : vector<8x512xf32> to vector<8x128xf32>
    %94 = arith.negf %93 : vector<8x128xf32>
    %95 = math.exp %94 : vector<8x128xf32>
    %cst_36 = arith.constant 1.000000e+00 : f32
    %96 = vector.broadcast %cst_36 : f32 to vector<8x128xf32>
    %97 = arith.addf %96, %95 : vector<8x128xf32>
    %98 = arith.divf %96, %97 : vector<8x128xf32>
    %99 = vector.extract_strided_slice %86 {offsets = [0, 256], sizes = [8, 128], strides = [1, 1]} : vector<8x512xf32> to vector<8x128xf32>
    %100 = math.tanh %99 : vector<8x128xf32>
    %101 = vector.extract_strided_slice %86 {offsets = [0, 384], sizes = [8, 128], strides = [1, 1]} : vector<8x512xf32> to vector<8x128xf32>
    %102 = arith.negf %101 : vector<8x128xf32>
    %103 = math.exp %102 : vector<8x128xf32>
    %cst_37 = arith.constant 1.000000e+00 : f32
    %104 = vector.broadcast %cst_37 : f32 to vector<8x128xf32>
    %105 = arith.addf %104, %103 : vector<8x128xf32>
    %106 = arith.divf %104, %105 : vector<8x128xf32>
    %107 = arith.mulf %98, %75 : vector<8x128xf32>
    %108 = arith.mulf %92, %100 : vector<8x128xf32>
    %109 = arith.addf %107, %108 : vector<8x128xf32>
    %110 = math.tanh %109 : vector<8x128xf32>
    %111 = arith.mulf %106, %110 : vector<8x128xf32>
    %112 = arith.index_cast %81 : i32 to index
    %c0_38 = arith.constant 0 : index
    %113 = vector.load %arg6[%112, %c0_38] : memref<64x128xf32, #tpu.memory_space<vmem>>, vector<8x128xf32>
    tpu.vector_store %arg6[%112, %c0_38], %111 {strides = array<i32>} : memref<64x128xf32, #tpu.memory_space<vmem>>, vector<8x128xf32>,
    %c3_i32 = arith.constant 3 : i32
    %c8_i32_39 = arith.constant 8 : i32
    %114 = arith.muli %c3_i32, %c8_i32_39 : i32
    %115 = tpu.assume_multiple %114, 8 : i32
    %116 = arith.index_cast %115 : i32 to index
    %c0_40 = arith.constant 0 : index
    %117 = vector.load %arg9[%116, %c0_40] : memref<64x512xf32, #tpu.memory_space<vmem>>, vector<8x512xf32>
    %c0_41 = arith.constant 0 : index
    %c0_42 = arith.constant 0 : index
    %118 = vector.load %arg8[%c0_41, %c0_42] : memref<128x512xf32, #tpu.memory_space<vmem>>, vector<128x512xf32>
    %cst_43 = arith.constant dense<0.000000e+00> : vector<8x512xf32>
    %119 = tpu.matmul %111, %118, %cst_43 {dimension_numbers = #tpu.dot_dimension_numbers<[1], [0], [0], [1], [0, 0, 1, 1], [], []>} : vector<8x128xf32>, vector<128x512xf32>, vector<8x512xf32> -> vector<8x512xf32>
    %120 = arith.addf %117, %119 : vector<8x512xf32>
    %121 = vector.extract_strided_slice %120 {offsets = [0, 0], sizes = [8, 128], strides = [1, 1]} : vector<8x512xf32> to vector<8x128xf32>
    %122 = arith.negf %121 : vector<8x128xf32>
    %123 = math.exp %122 : vector<8x128xf32>
    %cst_44 = arith.constant 1.000000e+00 : f32
    %124 = vector.broadcast %cst_44 : f32 to vector<8x128xf32>
    %125 = arith.addf %124, %123 : vector<8x128xf32>
    %126 = arith.divf %124, %125 : vector<8x128xf32>
    %127 = vector.extract_strided_slice %120 {offsets = [0, 128], sizes = [8, 128], strides = [1, 1]} : vector<8x512xf32> to vector<8x128xf32>
    %128 = arith.negf %127 : vector<8x128xf32>
    %129 = math.exp %128 : vector<8x128xf32>
    %cst_45 = arith.constant 1.000000e+00 : f32
    %130 = vector.broadcast %cst_45 : f32 to vector<8x128xf32>
    %131 = arith.addf %130, %129 : vector<8x128xf32>
    %132 = arith.divf %130, %131 : vector<8x128xf32>
    %133 = vector.extract_strided_slice %120 {offsets = [0, 256], sizes = [8, 128], strides = [1, 1]} : vector<8x512xf32> to vector<8x128xf32>
    %134 = math.tanh %133 : vector<8x128xf32>
    %135 = vector.extract_strided_slice %120 {offsets = [0, 384], sizes = [8, 128], strides = [1, 1]} : vector<8x512xf32> to vector<8x128xf32>
    %136 = arith.negf %135 : vector<8x128xf32>
    %137 = math.exp %136 : vector<8x128xf32>
    %cst_46 = arith.constant 1.000000e+00 : f32
    %138 = vector.broadcast %cst_46 : f32 to vector<8x128xf32>
    %139 = arith.addf %138, %137 : vector<8x128xf32>
    %140 = arith.divf %138, %139 : vector<8x128xf32>
    %141 = arith.mulf %132, %109 : vector<8x128xf32>
    %142 = arith.mulf %126, %134 : vector<8x128xf32>
    %143 = arith.addf %141, %142 : vector<8x128xf32>
    %144 = math.tanh %143 : vector<8x128xf32>
    %145 = arith.mulf %140, %144 : vector<8x128xf32>
    %146 = arith.index_cast %115 : i32 to index
    %c0_47 = arith.constant 0 : index
    %147 = vector.load %arg6[%146, %c0_47] : memref<64x128xf32, #tpu.memory_space<vmem>>, vector<8x128xf32>
    tpu.vector_store %arg6[%146, %c0_47], %145 {strides = array<i32>} : memref<64x128xf32, #tpu.memory_space<vmem>>, vector<8x128xf32>,
    %c4_i32 = arith.constant 4 : i32
    %c8_i32_48 = arith.constant 8 : i32
    %148 = arith.muli %c4_i32, %c8_i32_48 : i32
    %149 = tpu.assume_multiple %148, 8 : i32
    %150 = arith.index_cast %149 : i32 to index
    %c0_49 = arith.constant 0 : index
    %151 = vector.load %arg9[%150, %c0_49] : memref<64x512xf32, #tpu.memory_space<vmem>>, vector<8x512xf32>
    %c0_50 = arith.constant 0 : index
    %c0_51 = arith.constant 0 : index
    %152 = vector.load %arg8[%c0_50, %c0_51] : memref<128x512xf32, #tpu.memory_space<vmem>>, vector<128x512xf32>
    %cst_52 = arith.constant dense<0.000000e+00> : vector<8x512xf32>
    %153 = tpu.matmul %145, %152, %cst_52 {dimension_numbers = #tpu.dot_dimension_numbers<[1], [0], [0], [1], [0, 0, 1, 1], [], []>} : vector<8x128xf32>, vector<128x512xf32>, vector<8x512xf32> -> vector<8x512xf32>
    %154 = arith.addf %151, %153 : vector<8x512xf32>
    %155 = vector.extract_strided_slice %154 {offsets = [0, 0], sizes = [8, 128], strides = [1, 1]} : vector<8x512xf32> to vector<8x128xf32>
    %156 = arith.negf %155 : vector<8x128xf32>
    %157 = math.exp %156 : vector<8x128xf32>
    %cst_53 = arith.constant 1.000000e+00 : f32
    %158 = vector.broadcast %cst_53 : f32 to vector<8x128xf32>
    %159 = arith.addf %158, %157 : vector<8x128xf32>
    %160 = arith.divf %158, %159 : vector<8x128xf32>
    %161 = vector.extract_strided_slice %154 {offsets = [0, 128], sizes = [8, 128], strides = [1, 1]} : vector<8x512xf32> to vector<8x128xf32>
    %162 = arith.negf %161 : vector<8x128xf32>
    %163 = math.exp %162 : vector<8x128xf32>
    %cst_54 = arith.constant 1.000000e+00 : f32
    %164 = vector.broadcast %cst_54 : f32 to vector<8x128xf32>
    %165 = arith.addf %164, %163 : vector<8x128xf32>
    %166 = arith.divf %164, %165 : vector<8x128xf32>
    %167 = vector.extract_strided_slice %154 {offsets = [0, 256], sizes = [8, 128], strides = [1, 1]} : vector<8x512xf32> to vector<8x128xf32>
    %168 = math.tanh %167 : vector<8x128xf32>
    %169 = vector.extract_strided_slice %154 {offsets = [0, 384], sizes = [8, 128], strides = [1, 1]} : vector<8x512xf32> to vector<8x128xf32>
    %170 = arith.negf %169 : vector<8x128xf32>
    %171 = math.exp %170 : vector<8x128xf32>
    %cst_55 = arith.constant 1.000000e+00 : f32
    %172 = vector.broadcast %cst_55 : f32 to vector<8x128xf32>
    %173 = arith.addf %172, %171 : vector<8x128xf32>
    %174 = arith.divf %172, %173 : vector<8x128xf32>
    %175 = arith.mulf %166, %143 : vector<8x128xf32>
    %176 = arith.mulf %160, %168 : vector<8x128xf32>
    %177 = arith.addf %175, %176 : vector<8x128xf32>
    %178 = math.tanh %177 : vector<8x128xf32>
    %179 = arith.mulf %174, %178 : vector<8x128xf32>
    %180 = arith.index_cast %149 : i32 to index
    %c0_56 = arith.constant 0 : index
    %181 = vector.load %arg6[%180, %c0_56] : memref<64x128xf32, #tpu.memory_space<vmem>>, vector<8x128xf32>
    tpu.vector_store %arg6[%180, %c0_56], %179 {strides = array<i32>} : memref<64x128xf32, #tpu.memory_space<vmem>>, vector<8x128xf32>,
    %c5_i32 = arith.constant 5 : i32
    %c8_i32_57 = arith.constant 8 : i32
    %182 = arith.muli %c5_i32, %c8_i32_57 : i32
    %183 = tpu.assume_multiple %182, 8 : i32
    %184 = arith.index_cast %183 : i32 to index
    %c0_58 = arith.constant 0 : index
    %185 = vector.load %arg9[%184, %c0_58] : memref<64x512xf32, #tpu.memory_space<vmem>>, vector<8x512xf32>
    %c0_59 = arith.constant 0 : index
    %c0_60 = arith.constant 0 : index
    %186 = vector.load %arg8[%c0_59, %c0_60] : memref<128x512xf32, #tpu.memory_space<vmem>>, vector<128x512xf32>
    %cst_61 = arith.constant dense<0.000000e+00> : vector<8x512xf32>
    %187 = tpu.matmul %179, %186, %cst_61 {dimension_numbers = #tpu.dot_dimension_numbers<[1], [0], [0], [1], [0, 0, 1, 1], [], []>} : vector<8x128xf32>, vector<128x512xf32>, vector<8x512xf32> -> vector<8x512xf32>
    %188 = arith.addf %185, %187 : vector<8x512xf32>
    %189 = vector.extract_strided_slice %188 {offsets = [0, 0], sizes = [8, 128], strides = [1, 1]} : vector<8x512xf32> to vector<8x128xf32>
    %190 = arith.negf %189 : vector<8x128xf32>
    %191 = math.exp %190 : vector<8x128xf32>
    %cst_62 = arith.constant 1.000000e+00 : f32
    %192 = vector.broadcast %cst_62 : f32 to vector<8x128xf32>
    %193 = arith.addf %192, %191 : vector<8x128xf32>
    %194 = arith.divf %192, %193 : vector<8x128xf32>
    %195 = vector.extract_strided_slice %188 {offsets = [0, 128], sizes = [8, 128], strides = [1, 1]} : vector<8x512xf32> to vector<8x128xf32>
    %196 = arith.negf %195 : vector<8x128xf32>
    %197 = math.exp %196 : vector<8x128xf32>
    %cst_63 = arith.constant 1.000000e+00 : f32
    %198 = vector.broadcast %cst_63 : f32 to vector<8x128xf32>
    %199 = arith.addf %198, %197 : vector<8x128xf32>
    %200 = arith.divf %198, %199 : vector<8x128xf32>
    %201 = vector.extract_strided_slice %188 {offsets = [0, 256], sizes = [8, 128], strides = [1, 1]} : vector<8x512xf32> to vector<8x128xf32>
    %202 = math.tanh %201 : vector<8x128xf32>
    %203 = vector.extract_strided_slice %188 {offsets = [0, 384], sizes = [8, 128], strides = [1, 1]} : vector<8x512xf32> to vector<8x128xf32>
    %204 = arith.negf %203 : vector<8x128xf32>
    %205 = math.exp %204 : vector<8x128xf32>
    %cst_64 = arith.constant 1.000000e+00 : f32
    %206 = vector.broadcast %cst_64 : f32 to vector<8x128xf32>
    %207 = arith.addf %206, %205 : vector<8x128xf32>
    %208 = arith.divf %206, %207 : vector<8x128xf32>
    %209 = arith.mulf %200, %177 : vector<8x128xf32>
    %210 = arith.mulf %194, %202 : vector<8x128xf32>
    %211 = arith.addf %209, %210 : vector<8x128xf32>
    %212 = math.tanh %211 : vector<8x128xf32>
    %213 = arith.mulf %208, %212 : vector<8x128xf32>
    %214 = arith.index_cast %183 : i32 to index
    %c0_65 = arith.constant 0 : index
    %215 = vector.load %arg6[%214, %c0_65] : memref<64x128xf32, #tpu.memory_space<vmem>>, vector<8x128xf32>
    tpu.vector_store %arg6[%214, %c0_65], %213 {strides = array<i32>} : memref<64x128xf32, #tpu.memory_space<vmem>>, vector<8x128xf32>,
    %c6_i32 = arith.constant 6 : i32
    %c8_i32_66 = arith.constant 8 : i32
    %216 = arith.muli %c6_i32, %c8_i32_66 : i32
    %217 = tpu.assume_multiple %216, 8 : i32
    %218 = arith.index_cast %217 : i32 to index
    %c0_67 = arith.constant 0 : index
    %219 = vector.load %arg9[%218, %c0_67] : memref<64x512xf32, #tpu.memory_space<vmem>>, vector<8x512xf32>
    %c0_68 = arith.constant 0 : index
    %c0_69 = arith.constant 0 : index
    %220 = vector.load %arg8[%c0_68, %c0_69] : memref<128x512xf32, #tpu.memory_space<vmem>>, vector<128x512xf32>
    %cst_70 = arith.constant dense<0.000000e+00> : vector<8x512xf32>
    %221 = tpu.matmul %213, %220, %cst_70 {dimension_numbers = #tpu.dot_dimension_numbers<[1], [0], [0], [1], [0, 0, 1, 1], [], []>} : vector<8x128xf32>, vector<128x512xf32>, vector<8x512xf32> -> vector<8x512xf32>
    %222 = arith.addf %219, %221 : vector<8x512xf32>
    %223 = vector.extract_strided_slice %222 {offsets = [0, 0], sizes = [8, 128], strides = [1, 1]} : vector<8x512xf32> to vector<8x128xf32>
    %224 = arith.negf %223 : vector<8x128xf32>
    %225 = math.exp %224 : vector<8x128xf32>
    %cst_71 = arith.constant 1.000000e+00 : f32
    %226 = vector.broadcast %cst_71 : f32 to vector<8x128xf32>
    %227 = arith.addf %226, %225 : vector<8x128xf32>
    %228 = arith.divf %226, %227 : vector<8x128xf32>
    %229 = vector.extract_strided_slice %222 {offsets = [0, 128], sizes = [8, 128], strides = [1, 1]} : vector<8x512xf32> to vector<8x128xf32>
    %230 = arith.negf %229 : vector<8x128xf32>
    %231 = math.exp %230 : vector<8x128xf32>
    %cst_72 = arith.constant 1.000000e+00 : f32
    %232 = vector.broadcast %cst_72 : f32 to vector<8x128xf32>
    %233 = arith.addf %232, %231 : vector<8x128xf32>
    %234 = arith.divf %232, %233 : vector<8x128xf32>
    %235 = vector.extract_strided_slice %222 {offsets = [0, 256], sizes = [8, 128], strides = [1, 1]} : vector<8x512xf32> to vector<8x128xf32>
    %236 = math.tanh %235 : vector<8x128xf32>
    %237 = vector.extract_strided_slice %222 {offsets = [0, 384], sizes = [8, 128], strides = [1, 1]} : vector<8x512xf32> to vector<8x128xf32>
    %238 = arith.negf %237 : vector<8x128xf32>
    %239 = math.exp %238 : vector<8x128xf32>
    %cst_73 = arith.constant 1.000000e+00 : f32
    %240 = vector.broadcast %cst_73 : f32 to vector<8x128xf32>
    %241 = arith.addf %240, %239 : vector<8x128xf32>
    %242 = arith.divf %240, %241 : vector<8x128xf32>
    %243 = arith.mulf %234, %211 : vector<8x128xf32>
    %244 = arith.mulf %228, %236 : vector<8x128xf32>
    %245 = arith.addf %243, %244 : vector<8x128xf32>
    %246 = math.tanh %245 : vector<8x128xf32>
    %247 = arith.mulf %242, %246 : vector<8x128xf32>
    %248 = arith.index_cast %217 : i32 to index
    %c0_74 = arith.constant 0 : index
    %249 = vector.load %arg6[%248, %c0_74] : memref<64x128xf32, #tpu.memory_space<vmem>>, vector<8x128xf32>
    tpu.vector_store %arg6[%248, %c0_74], %247 {strides = array<i32>} : memref<64x128xf32, #tpu.memory_space<vmem>>, vector<8x128xf32>,
    %c7_i32 = arith.constant 7 : i32
    %c8_i32_75 = arith.constant 8 : i32
    %250 = arith.muli %c7_i32, %c8_i32_75 : i32
    %251 = tpu.assume_multiple %250, 8 : i32
    %252 = arith.index_cast %251 : i32 to index
    %c0_76 = arith.constant 0 : index
    %253 = vector.load %arg9[%252, %c0_76] : memref<64x512xf32, #tpu.memory_space<vmem>>, vector<8x512xf32>
    %c0_77 = arith.constant 0 : index
    %c0_78 = arith.constant 0 : index
    %254 = vector.load %arg8[%c0_77, %c0_78] : memref<128x512xf32, #tpu.memory_space<vmem>>, vector<128x512xf32>
    %cst_79 = arith.constant dense<0.000000e+00> : vector<8x512xf32>
    %255 = tpu.matmul %247, %254, %cst_79 {dimension_numbers = #tpu.dot_dimension_numbers<[1], [0], [0], [1], [0, 0, 1, 1], [], []>} : vector<8x128xf32>, vector<128x512xf32>, vector<8x512xf32> -> vector<8x512xf32>
    %256 = arith.addf %253, %255 : vector<8x512xf32>
    %257 = vector.extract_strided_slice %256 {offsets = [0, 0], sizes = [8, 128], strides = [1, 1]} : vector<8x512xf32> to vector<8x128xf32>
    %258 = arith.negf %257 : vector<8x128xf32>
    %259 = math.exp %258 : vector<8x128xf32>
    %cst_80 = arith.constant 1.000000e+00 : f32
    %260 = vector.broadcast %cst_80 : f32 to vector<8x128xf32>
    %261 = arith.addf %260, %259 : vector<8x128xf32>
    %262 = arith.divf %260, %261 : vector<8x128xf32>
    %263 = vector.extract_strided_slice %256 {offsets = [0, 128], sizes = [8, 128], strides = [1, 1]} : vector<8x512xf32> to vector<8x128xf32>
    %264 = arith.negf %263 : vector<8x128xf32>
    %265 = math.exp %264 : vector<8x128xf32>
    %cst_81 = arith.constant 1.000000e+00 : f32
    %266 = vector.broadcast %cst_81 : f32 to vector<8x128xf32>
    %267 = arith.addf %266, %265 : vector<8x128xf32>
    %268 = arith.divf %266, %267 : vector<8x128xf32>
    %269 = vector.extract_strided_slice %256 {offsets = [0, 256], sizes = [8, 128], strides = [1, 1]} : vector<8x512xf32> to vector<8x128xf32>
    %270 = math.tanh %269 : vector<8x128xf32>
    %271 = vector.extract_strided_slice %256 {offsets = [0, 384], sizes = [8, 128], strides = [1, 1]} : vector<8x512xf32> to vector<8x128xf32>
    %272 = arith.negf %271 : vector<8x128xf32>
    %273 = math.exp %272 : vector<8x128xf32>
    %cst_82 = arith.constant 1.000000e+00 : f32
    %274 = vector.broadcast %cst_82 : f32 to vector<8x128xf32>
    %275 = arith.addf %274, %273 : vector<8x128xf32>
    %276 = arith.divf %274, %275 : vector<8x128xf32>
    %277 = arith.mulf %268, %245 : vector<8x128xf32>
    %278 = arith.mulf %262, %270 : vector<8x128xf32>
    %279 = arith.addf %277, %278 : vector<8x128xf32>
    %280 = math.tanh %279 : vector<8x128xf32>
    %281 = arith.mulf %276, %280 : vector<8x128xf32>
    %282 = arith.index_cast %251 : i32 to index
    %c0_83 = arith.constant 0 : index
    %283 = vector.load %arg6[%282, %c0_83] : memref<64x128xf32, #tpu.memory_space<vmem>>, vector<8x128xf32>
    tpu.vector_store %arg6[%282, %c0_83], %281 {strides = array<i32>} : memref<64x128xf32, #tpu.memory_space<vmem>>, vector<8x128xf32>,
    %c8_i32_84 = arith.constant 8 : i32
    %c0_85 = arith.constant 0 : index
    %c0_86 = arith.constant 0 : index
    %284 = vector.load %arg10[%c0_85, %c0_86] : memref<8x128xf32, #tpu.memory_space<vmem>>, vector<8x128xf32>
    tpu.vector_store %arg10[%c0_85, %c0_86], %281 {strides = array<i32>} : memref<8x128xf32, #tpu.memory_space<vmem>>, vector<8x128xf32>,
    %c0_87 = arith.constant 0 : index
    %c0_88 = arith.constant 0 : index
    %285 = vector.load %arg11[%c0_87, %c0_88] : memref<8x128xf32, #tpu.memory_space<vmem>>, vector<8x128xf32>
    tpu.vector_store %arg11[%c0_87, %c0_88], %279 {strides = array<i32>} : memref<8x128xf32, #tpu.memory_space<vmem>>, vector<8x128xf32>,
    return
  }
  func.func @transform_0(%arg0: i32, %arg1: i32) -> (i32, i32) {
    %c1_i32 = arith.constant 1 : i32
    %0 = arith.muli %arg0, %c1_i32 : i32
    %1 = arith.addi %0, %arg1 : i32
    %c0_i32 = arith.constant 0 : i32
    %c0_i32_0 = arith.constant 0 : i32
    return %1, %c0_i32 : i32, i32
  }
  func.func @transform_3(%arg0: i32, %arg1: i32) -> (i32, i32) {
    %c0_i32 = arith.constant 0 : i32
    %c0_i32_0 = arith.constant 0 : i32
    %c0_i32_1 = arith.constant 0 : i32
    return %c0_i32, %c0_i32_0 : i32, i32
  }
  func.func @transform_4(%arg0: i32, %arg1: i32) -> (i32, i32) {
    %c1_i32 = arith.constant 1 : i32
    %0 = arith.muli %arg0, %c1_i32 : i32
    %1 = arith.addi %0, %arg1 : i32
    %c0_i32 = arith.constant 0 : i32
    %c0_i32_0 = arith.constant 0 : i32
    return %1, %c0_i32 : i32, i32
  }
}

module attributes {stable_mosaic.version = 11 : i64} {
  func.func @_lstm_layer_kernel(%arg0: i32, %arg1: i32, %arg2: memref<64x128xf32, #tpu.memory_space<vmem>>, %arg3: memref<128x512xf32, #tpu.memory_space<any>>, %arg4: memref<128x512xf32, #tpu.memory_space<any>>, %arg5: memref<1x512xf32, #tpu.memory_space<vmem>>, %arg6: memref<8x128xf32, #tpu.memory_space<vmem>>, %arg7: memref<128x512xf32, #tpu.memory_space<vmem>>, %arg8: memref<128x512xf32, #tpu.memory_space<vmem>>, %arg9: memref<64x512xf32, #tpu.memory_space<vmem>>, %arg10: memref<8x128xf32, #tpu.memory_space<vmem>>, %arg11: memref<8x128xf32, #tpu.memory_space<vmem>>, %arg12: memref<2x!tpu.dma_semaphore, #tpu.memory_space<semaphore_mem>>) attributes {dimension_semantics = [#tpu.dimension_semantics<parallel>, #tpu.dimension_semantics<arbitrary>], iteration_bounds = array<i64: 1, 1>, scalar_prefetch = 0 : i64, scratch_operands = 6 : i64, tpu.core_type = #tpu.core_type<tc>, window_params = [{transform_indices = @transform_0, window_bounds = array<i64: 64, 128>}, {}, {}, {pipeline_mode = #tpu.pipeline_mode<synchronous>, transform_indices = @transform_3, window_bounds = array<i64: 1, 512>}, {transform_indices = @transform_4, window_bounds = array<i64: 8, 128>}]} {
    %c0_i32 = arith.constant 0 : i32
    %0 = arith.cmpi eq, %arg1, %c0_i32 : i32
    %1 = arith.extui %0 : i1 to i32
    %c0_i32_0 = arith.constant 0 : i32
    %2 = arith.cmpi ne, %1, %c0_i32_0 : i32
    scf.if %2 {
      %c0_i32_83 = arith.constant 0 : i32
      %271 = tpu.memref_slice %arg12[%c0_i32_83] : memref<2x!tpu.dma_semaphore, #tpu.memory_space<semaphore_mem>> -> memref<1x!tpu.dma_semaphore, #tpu.memory_space<semaphore_mem>>
      %272 = tpu.memref_squeeze %271 : memref<1x!tpu.dma_semaphore, #tpu.memory_space<semaphore_mem>> -> memref<!tpu.dma_semaphore, #tpu.memory_space<semaphore_mem>>
      tpu.enqueue_dma source(%arg3 : memref<128x512xf32, #tpu.memory_space<any>>) target(%arg7 : memref<128x512xf32, #tpu.memory_space<vmem>>) target_semaphore(%272 : memref<!tpu.dma_semaphore, #tpu.memory_space<semaphore_mem>>)
      %c1_i32_84 = arith.constant 1 : i32
      %273 = tpu.memref_slice %arg12[%c1_i32_84] : memref<2x!tpu.dma_semaphore, #tpu.memory_space<semaphore_mem>> -> memref<1x!tpu.dma_semaphore, #tpu.memory_space<semaphore_mem>>
      %274 = tpu.memref_squeeze %273 : memref<1x!tpu.dma_semaphore, #tpu.memory_space<semaphore_mem>> -> memref<!tpu.dma_semaphore, #tpu.memory_space<semaphore_mem>>
      tpu.enqueue_dma source(%arg4 : memref<128x512xf32, #tpu.memory_space<any>>) target(%arg8 : memref<128x512xf32, #tpu.memory_space<vmem>>) target_semaphore(%274 : memref<!tpu.dma_semaphore, #tpu.memory_space<semaphore_mem>>)
      %cst_85 = arith.constant 0.000000e+00 : f32
      %275 = vector.broadcast %cst_85 : f32 to vector<8x128xf32>
      %c0_86 = arith.constant 0 : index
      %c0_87 = arith.constant 0 : index
      %276 = vector.load %arg10[%c0_86, %c0_87] : memref<8x128xf32, #tpu.memory_space<vmem>>, vector<8x128xf32>
      tpu.vector_store %arg10[%c0_86, %c0_87], %275 {strides = array<i32>} : memref<8x128xf32, #tpu.memory_space<vmem>>, vector<8x128xf32>,
      %cst_88 = arith.constant 0.000000e+00 : f32
      %277 = vector.broadcast %cst_88 : f32 to vector<8x128xf32>
      %c0_89 = arith.constant 0 : index
      %c0_90 = arith.constant 0 : index
      %278 = vector.load %arg11[%c0_89, %c0_90] : memref<8x128xf32, #tpu.memory_space<vmem>>, vector<8x128xf32>
      tpu.vector_store %arg11[%c0_89, %c0_90], %277 {strides = array<i32>} : memref<8x128xf32, #tpu.memory_space<vmem>>, vector<8x128xf32>,
      %c0_i32_91 = arith.constant 0 : i32
      %279 = tpu.memref_slice %arg12[%c0_i32_91] : memref<2x!tpu.dma_semaphore, #tpu.memory_space<semaphore_mem>> -> memref<1x!tpu.dma_semaphore, #tpu.memory_space<semaphore_mem>>
      %280 = tpu.memref_squeeze %279 : memref<1x!tpu.dma_semaphore, #tpu.memory_space<semaphore_mem>> -> memref<!tpu.dma_semaphore, #tpu.memory_space<semaphore_mem>>
      tpu.wait_dma2 semaphore(%280 : memref<!tpu.dma_semaphore, #tpu.memory_space<semaphore_mem>>) src(%arg3 : memref<128x512xf32, #tpu.memory_space<any>>) dst(%arg7 : memref<128x512xf32, #tpu.memory_space<vmem>>)
      %c1_i32_92 = arith.constant 1 : i32
      %281 = tpu.memref_slice %arg12[%c1_i32_92] : memref<2x!tpu.dma_semaphore, #tpu.memory_space<semaphore_mem>> -> memref<1x!tpu.dma_semaphore, #tpu.memory_space<semaphore_mem>>
      %282 = tpu.memref_squeeze %281 : memref<1x!tpu.dma_semaphore, #tpu.memory_space<semaphore_mem>> -> memref<!tpu.dma_semaphore, #tpu.memory_space<semaphore_mem>>
      tpu.wait_dma2 semaphore(%282 : memref<!tpu.dma_semaphore, #tpu.memory_space<semaphore_mem>>) src(%arg4 : memref<128x512xf32, #tpu.memory_space<any>>) dst(%arg8 : memref<128x512xf32, #tpu.memory_space<vmem>>)
    } else {
    }
    %c0 = arith.constant 0 : index
    %c0_1 = arith.constant 0 : index
    %3 = vector.load %arg2[%c0, %c0_1] : memref<64x128xf32, #tpu.memory_space<vmem>>, vector<64x128xf32>
    %c0_2 = arith.constant 0 : index
    %c0_3 = arith.constant 0 : index
    %4 = vector.load %arg7[%c0_2, %c0_3] : memref<128x512xf32, #tpu.memory_space<vmem>>, vector<128x512xf32>
    %cst = arith.constant dense<0.000000e+00> : vector<64x512xf32>
    %5 = tpu.matmul %3, %4, %cst {dimension_numbers = #tpu.dot_dimension_numbers<[1], [0], [0], [1], [0, 0, 1, 1], [], []>} : vector<64x128xf32>, vector<128x512xf32>, vector<64x512xf32> -> vector<64x512xf32>
    %c0_4 = arith.constant 0 : index
    %c0_5 = arith.constant 0 : index
    %6 = vector.load %arg5[%c0_4, %c0_5] : memref<1x512xf32, #tpu.memory_space<vmem>>, vector<1x512xf32>
    %7 = vector.broadcast %6 : vector<1x512xf32> to vector<64x512xf32>
    %8 = arith.addf %5, %7 : vector<64x512xf32>
    %c0_6 = arith.constant 0 : index
    %c0_7 = arith.constant 0 : index
    %9 = vector.load %arg9[%c0_6, %c0_7] : memref<64x512xf32, #tpu.memory_space<vmem>>, vector<64x512xf32>
    tpu.vector_store %arg9[%c0_6, %c0_7], %8 {strides = array<i32>} : memref<64x512xf32, #tpu.memory_space<vmem>>, vector<64x512xf32>,
    %c0_8 = arith.constant 0 : index
    %c0_9 = arith.constant 0 : index
    %10 = vector.load %arg10[%c0_8, %c0_9] : memref<8x128xf32, #tpu.memory_space<vmem>>, vector<8x128xf32>
    %c0_10 = arith.constant 0 : index
    %c0_11 = arith.constant 0 : index
    %11 = vector.load %arg11[%c0_10, %c0_11] : memref<8x128xf32, #tpu.memory_space<vmem>>, vector<8x128xf32>
    %c0_i32_12 = arith.constant 0 : i32
    %c8_i32 = arith.constant 8 : i32
    %12 = arith.muli %c0_i32_12, %c8_i32 : i32
    %13 = tpu.assume_multiple %12, 8 : i32
    %14 = arith.index_cast %13 : i32 to index
    %c0_13 = arith.constant 0 : index
    %15 = vector.load %arg9[%14, %c0_13] : memref<64x512xf32, #tpu.memory_space<vmem>>, vector<8x512xf32>
    %c0_14 = arith.constant 0 : index
    %c0_15 = arith.constant 0 : index
    %16 = vector.load %arg8[%c0_14, %c0_15] : memref<128x512xf32, #tpu.memory_space<vmem>>, vector<128x512xf32>
    %cst_16 = arith.constant dense<0.000000e+00> : vector<8x512xf32>
    %17 = tpu.matmul %10, %16, %cst_16 {dimension_numbers = #tpu.dot_dimension_numbers<[1], [0], [0], [1], [0, 0, 1, 1], [], []>} : vector<8x128xf32>, vector<128x512xf32>, vector<8x512xf32> -> vector<8x512xf32>
    %18 = arith.addf %15, %17 : vector<8x512xf32>
    %19 = vector.extract_strided_slice %18 {offsets = [0, 0], sizes = [8, 128], strides = [1, 1]} : vector<8x512xf32> to vector<8x128xf32>
    %20 = arith.negf %19 : vector<8x128xf32>
    %21 = math.exp %20 : vector<8x128xf32>
    %cst_17 = arith.constant 1.000000e+00 : f32
    %22 = vector.broadcast %cst_17 : f32 to vector<8x128xf32>
    %23 = arith.addf %22, %21 : vector<8x128xf32>
    %24 = arith.divf %22, %23 : vector<8x128xf32>
    %25 = vector.extract_strided_slice %18 {offsets = [0, 128], sizes = [8, 128], strides = [1, 1]} : vector<8x512xf32> to vector<8x128xf32>
    %26 = arith.negf %25 : vector<8x128xf32>
    %27 = math.exp %26 : vector<8x128xf32>
    %cst_18 = arith.constant 1.000000e+00 : f32
    %28 = vector.broadcast %cst_18 : f32 to vector<8x128xf32>
    %29 = arith.addf %28, %27 : vector<8x128xf32>
    %30 = arith.divf %28, %29 : vector<8x128xf32>
    %31 = vector.extract_strided_slice %18 {offsets = [0, 256], sizes = [8, 128], strides = [1, 1]} : vector<8x512xf32> to vector<8x128xf32>
    %32 = math.tanh %31 : vector<8x128xf32>
    %33 = vector.extract_strided_slice %18 {offsets = [0, 384], sizes = [8, 128], strides = [1, 1]} : vector<8x512xf32> to vector<8x128xf32>
    %34 = arith.negf %33 : vector<8x128xf32>
    %35 = math.exp %34 : vector<8x128xf32>
    %cst_19 = arith.constant 1.000000e+00 : f32
    %36 = vector.broadcast %cst_19 : f32 to vector<8x128xf32>
    %37 = arith.addf %36, %35 : vector<8x128xf32>
    %38 = arith.divf %36, %37 : vector<8x128xf32>
    %39 = arith.mulf %30, %11 : vector<8x128xf32>
    %40 = arith.mulf %24, %32 : vector<8x128xf32>
    %41 = arith.addf %39, %40 : vector<8x128xf32>
    %42 = math.tanh %41 : vector<8x128xf32>
    %43 = arith.mulf %38, %42 : vector<8x128xf32>
    %c1_i32 = arith.constant 1 : i32
    %c8_i32_20 = arith.constant 8 : i32
    %44 = arith.muli %c1_i32, %c8_i32_20 : i32
    %45 = tpu.assume_multiple %44, 8 : i32
    %46 = arith.index_cast %45 : i32 to index
    %c0_21 = arith.constant 0 : index
    %47 = vector.load %arg9[%46, %c0_21] : memref<64x512xf32, #tpu.memory_space<vmem>>, vector<8x512xf32>
    %c0_22 = arith.constant 0 : index
    %c0_23 = arith.constant 0 : index
    %48 = vector.load %arg8[%c0_22, %c0_23] : memref<128x512xf32, #tpu.memory_space<vmem>>, vector<128x512xf32>
    %cst_24 = arith.constant dense<0.000000e+00> : vector<8x512xf32>
    %49 = tpu.matmul %43, %48, %cst_24 {dimension_numbers = #tpu.dot_dimension_numbers<[1], [0], [0], [1], [0, 0, 1, 1], [], []>} : vector<8x128xf32>, vector<128x512xf32>, vector<8x512xf32> -> vector<8x512xf32>
    %50 = arith.addf %47, %49 : vector<8x512xf32>
    %51 = vector.extract_strided_slice %50 {offsets = [0, 0], sizes = [8, 128], strides = [1, 1]} : vector<8x512xf32> to vector<8x128xf32>
    %52 = arith.negf %51 : vector<8x128xf32>
    %53 = math.exp %52 : vector<8x128xf32>
    %cst_25 = arith.constant 1.000000e+00 : f32
    %54 = vector.broadcast %cst_25 : f32 to vector<8x128xf32>
    %55 = arith.addf %54, %53 : vector<8x128xf32>
    %56 = arith.divf %54, %55 : vector<8x128xf32>
    %57 = vector.extract_strided_slice %50 {offsets = [0, 128], sizes = [8, 128], strides = [1, 1]} : vector<8x512xf32> to vector<8x128xf32>
    %58 = arith.negf %57 : vector<8x128xf32>
    %59 = math.exp %58 : vector<8x128xf32>
    %cst_26 = arith.constant 1.000000e+00 : f32
    %60 = vector.broadcast %cst_26 : f32 to vector<8x128xf32>
    %61 = arith.addf %60, %59 : vector<8x128xf32>
    %62 = arith.divf %60, %61 : vector<8x128xf32>
    %63 = vector.extract_strided_slice %50 {offsets = [0, 256], sizes = [8, 128], strides = [1, 1]} : vector<8x512xf32> to vector<8x128xf32>
    %64 = math.tanh %63 : vector<8x128xf32>
    %65 = vector.extract_strided_slice %50 {offsets = [0, 384], sizes = [8, 128], strides = [1, 1]} : vector<8x512xf32> to vector<8x128xf32>
    %66 = arith.negf %65 : vector<8x128xf32>
    %67 = math.exp %66 : vector<8x128xf32>
    %cst_27 = arith.constant 1.000000e+00 : f32
    %68 = vector.broadcast %cst_27 : f32 to vector<8x128xf32>
    %69 = arith.addf %68, %67 : vector<8x128xf32>
    %70 = arith.divf %68, %69 : vector<8x128xf32>
    %71 = arith.mulf %62, %41 : vector<8x128xf32>
    %72 = arith.mulf %56, %64 : vector<8x128xf32>
    %73 = arith.addf %71, %72 : vector<8x128xf32>
    %74 = math.tanh %73 : vector<8x128xf32>
    %75 = arith.mulf %70, %74 : vector<8x128xf32>
    %c2_i32 = arith.constant 2 : i32
    %c8_i32_28 = arith.constant 8 : i32
    %76 = arith.muli %c2_i32, %c8_i32_28 : i32
    %77 = tpu.assume_multiple %76, 8 : i32
    %78 = arith.index_cast %77 : i32 to index
    %c0_29 = arith.constant 0 : index
    %79 = vector.load %arg9[%78, %c0_29] : memref<64x512xf32, #tpu.memory_space<vmem>>, vector<8x512xf32>
    %c0_30 = arith.constant 0 : index
    %c0_31 = arith.constant 0 : index
    %80 = vector.load %arg8[%c0_30, %c0_31] : memref<128x512xf32, #tpu.memory_space<vmem>>, vector<128x512xf32>
    %cst_32 = arith.constant dense<0.000000e+00> : vector<8x512xf32>
    %81 = tpu.matmul %75, %80, %cst_32 {dimension_numbers = #tpu.dot_dimension_numbers<[1], [0], [0], [1], [0, 0, 1, 1], [], []>} : vector<8x128xf32>, vector<128x512xf32>, vector<8x512xf32> -> vector<8x512xf32>
    %82 = arith.addf %79, %81 : vector<8x512xf32>
    %83 = vector.extract_strided_slice %82 {offsets = [0, 0], sizes = [8, 128], strides = [1, 1]} : vector<8x512xf32> to vector<8x128xf32>
    %84 = arith.negf %83 : vector<8x128xf32>
    %85 = math.exp %84 : vector<8x128xf32>
    %cst_33 = arith.constant 1.000000e+00 : f32
    %86 = vector.broadcast %cst_33 : f32 to vector<8x128xf32>
    %87 = arith.addf %86, %85 : vector<8x128xf32>
    %88 = arith.divf %86, %87 : vector<8x128xf32>
    %89 = vector.extract_strided_slice %82 {offsets = [0, 128], sizes = [8, 128], strides = [1, 1]} : vector<8x512xf32> to vector<8x128xf32>
    %90 = arith.negf %89 : vector<8x128xf32>
    %91 = math.exp %90 : vector<8x128xf32>
    %cst_34 = arith.constant 1.000000e+00 : f32
    %92 = vector.broadcast %cst_34 : f32 to vector<8x128xf32>
    %93 = arith.addf %92, %91 : vector<8x128xf32>
    %94 = arith.divf %92, %93 : vector<8x128xf32>
    %95 = vector.extract_strided_slice %82 {offsets = [0, 256], sizes = [8, 128], strides = [1, 1]} : vector<8x512xf32> to vector<8x128xf32>
    %96 = math.tanh %95 : vector<8x128xf32>
    %97 = vector.extract_strided_slice %82 {offsets = [0, 384], sizes = [8, 128], strides = [1, 1]} : vector<8x512xf32> to vector<8x128xf32>
    %98 = arith.negf %97 : vector<8x128xf32>
    %99 = math.exp %98 : vector<8x128xf32>
    %cst_35 = arith.constant 1.000000e+00 : f32
    %100 = vector.broadcast %cst_35 : f32 to vector<8x128xf32>
    %101 = arith.addf %100, %99 : vector<8x128xf32>
    %102 = arith.divf %100, %101 : vector<8x128xf32>
    %103 = arith.mulf %94, %73 : vector<8x128xf32>
    %104 = arith.mulf %88, %96 : vector<8x128xf32>
    %105 = arith.addf %103, %104 : vector<8x128xf32>
    %106 = math.tanh %105 : vector<8x128xf32>
    %107 = arith.mulf %102, %106 : vector<8x128xf32>
    %c3_i32 = arith.constant 3 : i32
    %c8_i32_36 = arith.constant 8 : i32
    %108 = arith.muli %c3_i32, %c8_i32_36 : i32
    %109 = tpu.assume_multiple %108, 8 : i32
    %110 = arith.index_cast %109 : i32 to index
    %c0_37 = arith.constant 0 : index
    %111 = vector.load %arg9[%110, %c0_37] : memref<64x512xf32, #tpu.memory_space<vmem>>, vector<8x512xf32>
    %c0_38 = arith.constant 0 : index
    %c0_39 = arith.constant 0 : index
    %112 = vector.load %arg8[%c0_38, %c0_39] : memref<128x512xf32, #tpu.memory_space<vmem>>, vector<128x512xf32>
    %cst_40 = arith.constant dense<0.000000e+00> : vector<8x512xf32>
    %113 = tpu.matmul %107, %112, %cst_40 {dimension_numbers = #tpu.dot_dimension_numbers<[1], [0], [0], [1], [0, 0, 1, 1], [], []>} : vector<8x128xf32>, vector<128x512xf32>, vector<8x512xf32> -> vector<8x512xf32>
    %114 = arith.addf %111, %113 : vector<8x512xf32>
    %115 = vector.extract_strided_slice %114 {offsets = [0, 0], sizes = [8, 128], strides = [1, 1]} : vector<8x512xf32> to vector<8x128xf32>
    %116 = arith.negf %115 : vector<8x128xf32>
    %117 = math.exp %116 : vector<8x128xf32>
    %cst_41 = arith.constant 1.000000e+00 : f32
    %118 = vector.broadcast %cst_41 : f32 to vector<8x128xf32>
    %119 = arith.addf %118, %117 : vector<8x128xf32>
    %120 = arith.divf %118, %119 : vector<8x128xf32>
    %121 = vector.extract_strided_slice %114 {offsets = [0, 128], sizes = [8, 128], strides = [1, 1]} : vector<8x512xf32> to vector<8x128xf32>
    %122 = arith.negf %121 : vector<8x128xf32>
    %123 = math.exp %122 : vector<8x128xf32>
    %cst_42 = arith.constant 1.000000e+00 : f32
    %124 = vector.broadcast %cst_42 : f32 to vector<8x128xf32>
    %125 = arith.addf %124, %123 : vector<8x128xf32>
    %126 = arith.divf %124, %125 : vector<8x128xf32>
    %127 = vector.extract_strided_slice %114 {offsets = [0, 256], sizes = [8, 128], strides = [1, 1]} : vector<8x512xf32> to vector<8x128xf32>
    %128 = math.tanh %127 : vector<8x128xf32>
    %129 = vector.extract_strided_slice %114 {offsets = [0, 384], sizes = [8, 128], strides = [1, 1]} : vector<8x512xf32> to vector<8x128xf32>
    %130 = arith.negf %129 : vector<8x128xf32>
    %131 = math.exp %130 : vector<8x128xf32>
    %cst_43 = arith.constant 1.000000e+00 : f32
    %132 = vector.broadcast %cst_43 : f32 to vector<8x128xf32>
    %133 = arith.addf %132, %131 : vector<8x128xf32>
    %134 = arith.divf %132, %133 : vector<8x128xf32>
    %135 = arith.mulf %126, %105 : vector<8x128xf32>
    %136 = arith.mulf %120, %128 : vector<8x128xf32>
    %137 = arith.addf %135, %136 : vector<8x128xf32>
    %138 = math.tanh %137 : vector<8x128xf32>
    %139 = arith.mulf %134, %138 : vector<8x128xf32>
    %c4_i32 = arith.constant 4 : i32
    %c8_i32_44 = arith.constant 8 : i32
    %140 = arith.muli %c4_i32, %c8_i32_44 : i32
    %141 = tpu.assume_multiple %140, 8 : i32
    %142 = arith.index_cast %141 : i32 to index
    %c0_45 = arith.constant 0 : index
    %143 = vector.load %arg9[%142, %c0_45] : memref<64x512xf32, #tpu.memory_space<vmem>>, vector<8x512xf32>
    %c0_46 = arith.constant 0 : index
    %c0_47 = arith.constant 0 : index
    %144 = vector.load %arg8[%c0_46, %c0_47] : memref<128x512xf32, #tpu.memory_space<vmem>>, vector<128x512xf32>
    %cst_48 = arith.constant dense<0.000000e+00> : vector<8x512xf32>
    %145 = tpu.matmul %139, %144, %cst_48 {dimension_numbers = #tpu.dot_dimension_numbers<[1], [0], [0], [1], [0, 0, 1, 1], [], []>} : vector<8x128xf32>, vector<128x512xf32>, vector<8x512xf32> -> vector<8x512xf32>
    %146 = arith.addf %143, %145 : vector<8x512xf32>
    %147 = vector.extract_strided_slice %146 {offsets = [0, 0], sizes = [8, 128], strides = [1, 1]} : vector<8x512xf32> to vector<8x128xf32>
    %148 = arith.negf %147 : vector<8x128xf32>
    %149 = math.exp %148 : vector<8x128xf32>
    %cst_49 = arith.constant 1.000000e+00 : f32
    %150 = vector.broadcast %cst_49 : f32 to vector<8x128xf32>
    %151 = arith.addf %150, %149 : vector<8x128xf32>
    %152 = arith.divf %150, %151 : vector<8x128xf32>
    %153 = vector.extract_strided_slice %146 {offsets = [0, 128], sizes = [8, 128], strides = [1, 1]} : vector<8x512xf32> to vector<8x128xf32>
    %154 = arith.negf %153 : vector<8x128xf32>
    %155 = math.exp %154 : vector<8x128xf32>
    %cst_50 = arith.constant 1.000000e+00 : f32
    %156 = vector.broadcast %cst_50 : f32 to vector<8x128xf32>
    %157 = arith.addf %156, %155 : vector<8x128xf32>
    %158 = arith.divf %156, %157 : vector<8x128xf32>
    %159 = vector.extract_strided_slice %146 {offsets = [0, 256], sizes = [8, 128], strides = [1, 1]} : vector<8x512xf32> to vector<8x128xf32>
    %160 = math.tanh %159 : vector<8x128xf32>
    %161 = vector.extract_strided_slice %146 {offsets = [0, 384], sizes = [8, 128], strides = [1, 1]} : vector<8x512xf32> to vector<8x128xf32>
    %162 = arith.negf %161 : vector<8x128xf32>
    %163 = math.exp %162 : vector<8x128xf32>
    %cst_51 = arith.constant 1.000000e+00 : f32
    %164 = vector.broadcast %cst_51 : f32 to vector<8x128xf32>
    %165 = arith.addf %164, %163 : vector<8x128xf32>
    %166 = arith.divf %164, %165 : vector<8x128xf32>
    %167 = arith.mulf %158, %137 : vector<8x128xf32>
    %168 = arith.mulf %152, %160 : vector<8x128xf32>
    %169 = arith.addf %167, %168 : vector<8x128xf32>
    %170 = math.tanh %169 : vector<8x128xf32>
    %171 = arith.mulf %166, %170 : vector<8x128xf32>
    %c5_i32 = arith.constant 5 : i32
    %c8_i32_52 = arith.constant 8 : i32
    %172 = arith.muli %c5_i32, %c8_i32_52 : i32
    %173 = tpu.assume_multiple %172, 8 : i32
    %174 = arith.index_cast %173 : i32 to index
    %c0_53 = arith.constant 0 : index
    %175 = vector.load %arg9[%174, %c0_53] : memref<64x512xf32, #tpu.memory_space<vmem>>, vector<8x512xf32>
    %c0_54 = arith.constant 0 : index
    %c0_55 = arith.constant 0 : index
    %176 = vector.load %arg8[%c0_54, %c0_55] : memref<128x512xf32, #tpu.memory_space<vmem>>, vector<128x512xf32>
    %cst_56 = arith.constant dense<0.000000e+00> : vector<8x512xf32>
    %177 = tpu.matmul %171, %176, %cst_56 {dimension_numbers = #tpu.dot_dimension_numbers<[1], [0], [0], [1], [0, 0, 1, 1], [], []>} : vector<8x128xf32>, vector<128x512xf32>, vector<8x512xf32> -> vector<8x512xf32>
    %178 = arith.addf %175, %177 : vector<8x512xf32>
    %179 = vector.extract_strided_slice %178 {offsets = [0, 0], sizes = [8, 128], strides = [1, 1]} : vector<8x512xf32> to vector<8x128xf32>
    %180 = arith.negf %179 : vector<8x128xf32>
    %181 = math.exp %180 : vector<8x128xf32>
    %cst_57 = arith.constant 1.000000e+00 : f32
    %182 = vector.broadcast %cst_57 : f32 to vector<8x128xf32>
    %183 = arith.addf %182, %181 : vector<8x128xf32>
    %184 = arith.divf %182, %183 : vector<8x128xf32>
    %185 = vector.extract_strided_slice %178 {offsets = [0, 128], sizes = [8, 128], strides = [1, 1]} : vector<8x512xf32> to vector<8x128xf32>
    %186 = arith.negf %185 : vector<8x128xf32>
    %187 = math.exp %186 : vector<8x128xf32>
    %cst_58 = arith.constant 1.000000e+00 : f32
    %188 = vector.broadcast %cst_58 : f32 to vector<8x128xf32>
    %189 = arith.addf %188, %187 : vector<8x128xf32>
    %190 = arith.divf %188, %189 : vector<8x128xf32>
    %191 = vector.extract_strided_slice %178 {offsets = [0, 256], sizes = [8, 128], strides = [1, 1]} : vector<8x512xf32> to vector<8x128xf32>
    %192 = math.tanh %191 : vector<8x128xf32>
    %193 = vector.extract_strided_slice %178 {offsets = [0, 384], sizes = [8, 128], strides = [1, 1]} : vector<8x512xf32> to vector<8x128xf32>
    %194 = arith.negf %193 : vector<8x128xf32>
    %195 = math.exp %194 : vector<8x128xf32>
    %cst_59 = arith.constant 1.000000e+00 : f32
    %196 = vector.broadcast %cst_59 : f32 to vector<8x128xf32>
    %197 = arith.addf %196, %195 : vector<8x128xf32>
    %198 = arith.divf %196, %197 : vector<8x128xf32>
    %199 = arith.mulf %190, %169 : vector<8x128xf32>
    %200 = arith.mulf %184, %192 : vector<8x128xf32>
    %201 = arith.addf %199, %200 : vector<8x128xf32>
    %202 = math.tanh %201 : vector<8x128xf32>
    %203 = arith.mulf %198, %202 : vector<8x128xf32>
    %c6_i32 = arith.constant 6 : i32
    %c8_i32_60 = arith.constant 8 : i32
    %204 = arith.muli %c6_i32, %c8_i32_60 : i32
    %205 = tpu.assume_multiple %204, 8 : i32
    %206 = arith.index_cast %205 : i32 to index
    %c0_61 = arith.constant 0 : index
    %207 = vector.load %arg9[%206, %c0_61] : memref<64x512xf32, #tpu.memory_space<vmem>>, vector<8x512xf32>
    %c0_62 = arith.constant 0 : index
    %c0_63 = arith.constant 0 : index
    %208 = vector.load %arg8[%c0_62, %c0_63] : memref<128x512xf32, #tpu.memory_space<vmem>>, vector<128x512xf32>
    %cst_64 = arith.constant dense<0.000000e+00> : vector<8x512xf32>
    %209 = tpu.matmul %203, %208, %cst_64 {dimension_numbers = #tpu.dot_dimension_numbers<[1], [0], [0], [1], [0, 0, 1, 1], [], []>} : vector<8x128xf32>, vector<128x512xf32>, vector<8x512xf32> -> vector<8x512xf32>
    %210 = arith.addf %207, %209 : vector<8x512xf32>
    %211 = vector.extract_strided_slice %210 {offsets = [0, 0], sizes = [8, 128], strides = [1, 1]} : vector<8x512xf32> to vector<8x128xf32>
    %212 = arith.negf %211 : vector<8x128xf32>
    %213 = math.exp %212 : vector<8x128xf32>
    %cst_65 = arith.constant 1.000000e+00 : f32
    %214 = vector.broadcast %cst_65 : f32 to vector<8x128xf32>
    %215 = arith.addf %214, %213 : vector<8x128xf32>
    %216 = arith.divf %214, %215 : vector<8x128xf32>
    %217 = vector.extract_strided_slice %210 {offsets = [0, 128], sizes = [8, 128], strides = [1, 1]} : vector<8x512xf32> to vector<8x128xf32>
    %218 = arith.negf %217 : vector<8x128xf32>
    %219 = math.exp %218 : vector<8x128xf32>
    %cst_66 = arith.constant 1.000000e+00 : f32
    %220 = vector.broadcast %cst_66 : f32 to vector<8x128xf32>
    %221 = arith.addf %220, %219 : vector<8x128xf32>
    %222 = arith.divf %220, %221 : vector<8x128xf32>
    %223 = vector.extract_strided_slice %210 {offsets = [0, 256], sizes = [8, 128], strides = [1, 1]} : vector<8x512xf32> to vector<8x128xf32>
    %224 = math.tanh %223 : vector<8x128xf32>
    %225 = vector.extract_strided_slice %210 {offsets = [0, 384], sizes = [8, 128], strides = [1, 1]} : vector<8x512xf32> to vector<8x128xf32>
    %226 = arith.negf %225 : vector<8x128xf32>
    %227 = math.exp %226 : vector<8x128xf32>
    %cst_67 = arith.constant 1.000000e+00 : f32
    %228 = vector.broadcast %cst_67 : f32 to vector<8x128xf32>
    %229 = arith.addf %228, %227 : vector<8x128xf32>
    %230 = arith.divf %228, %229 : vector<8x128xf32>
    %231 = arith.mulf %222, %201 : vector<8x128xf32>
    %232 = arith.mulf %216, %224 : vector<8x128xf32>
    %233 = arith.addf %231, %232 : vector<8x128xf32>
    %234 = math.tanh %233 : vector<8x128xf32>
    %235 = arith.mulf %230, %234 : vector<8x128xf32>
    %c7_i32 = arith.constant 7 : i32
    %c8_i32_68 = arith.constant 8 : i32
    %236 = arith.muli %c7_i32, %c8_i32_68 : i32
    %237 = tpu.assume_multiple %236, 8 : i32
    %238 = arith.index_cast %237 : i32 to index
    %c0_69 = arith.constant 0 : index
    %239 = vector.load %arg9[%238, %c0_69] : memref<64x512xf32, #tpu.memory_space<vmem>>, vector<8x512xf32>
    %c0_70 = arith.constant 0 : index
    %c0_71 = arith.constant 0 : index
    %240 = vector.load %arg8[%c0_70, %c0_71] : memref<128x512xf32, #tpu.memory_space<vmem>>, vector<128x512xf32>
    %cst_72 = arith.constant dense<0.000000e+00> : vector<8x512xf32>
    %241 = tpu.matmul %235, %240, %cst_72 {dimension_numbers = #tpu.dot_dimension_numbers<[1], [0], [0], [1], [0, 0, 1, 1], [], []>} : vector<8x128xf32>, vector<128x512xf32>, vector<8x512xf32> -> vector<8x512xf32>
    %242 = arith.addf %239, %241 : vector<8x512xf32>
    %243 = vector.extract_strided_slice %242 {offsets = [0, 0], sizes = [8, 128], strides = [1, 1]} : vector<8x512xf32> to vector<8x128xf32>
    %244 = arith.negf %243 : vector<8x128xf32>
    %245 = math.exp %244 : vector<8x128xf32>
    %cst_73 = arith.constant 1.000000e+00 : f32
    %246 = vector.broadcast %cst_73 : f32 to vector<8x128xf32>
    %247 = arith.addf %246, %245 : vector<8x128xf32>
    %248 = arith.divf %246, %247 : vector<8x128xf32>
    %249 = vector.extract_strided_slice %242 {offsets = [0, 128], sizes = [8, 128], strides = [1, 1]} : vector<8x512xf32> to vector<8x128xf32>
    %250 = arith.negf %249 : vector<8x128xf32>
    %251 = math.exp %250 : vector<8x128xf32>
    %cst_74 = arith.constant 1.000000e+00 : f32
    %252 = vector.broadcast %cst_74 : f32 to vector<8x128xf32>
    %253 = arith.addf %252, %251 : vector<8x128xf32>
    %254 = arith.divf %252, %253 : vector<8x128xf32>
    %255 = vector.extract_strided_slice %242 {offsets = [0, 256], sizes = [8, 128], strides = [1, 1]} : vector<8x512xf32> to vector<8x128xf32>
    %256 = math.tanh %255 : vector<8x128xf32>
    %257 = vector.extract_strided_slice %242 {offsets = [0, 384], sizes = [8, 128], strides = [1, 1]} : vector<8x512xf32> to vector<8x128xf32>
    %258 = arith.negf %257 : vector<8x128xf32>
    %259 = math.exp %258 : vector<8x128xf32>
    %cst_75 = arith.constant 1.000000e+00 : f32
    %260 = vector.broadcast %cst_75 : f32 to vector<8x128xf32>
    %261 = arith.addf %260, %259 : vector<8x128xf32>
    %262 = arith.divf %260, %261 : vector<8x128xf32>
    %263 = arith.mulf %254, %233 : vector<8x128xf32>
    %264 = arith.mulf %248, %256 : vector<8x128xf32>
    %265 = arith.addf %263, %264 : vector<8x128xf32>
    %266 = math.tanh %265 : vector<8x128xf32>
    %267 = arith.mulf %262, %266 : vector<8x128xf32>
    %c8_i32_76 = arith.constant 8 : i32
    %c0_77 = arith.constant 0 : index
    %c0_78 = arith.constant 0 : index
    %268 = vector.load %arg10[%c0_77, %c0_78] : memref<8x128xf32, #tpu.memory_space<vmem>>, vector<8x128xf32>
    tpu.vector_store %arg10[%c0_77, %c0_78], %267 {strides = array<i32>} : memref<8x128xf32, #tpu.memory_space<vmem>>, vector<8x128xf32>,
    %c0_79 = arith.constant 0 : index
    %c0_80 = arith.constant 0 : index
    %269 = vector.load %arg11[%c0_79, %c0_80] : memref<8x128xf32, #tpu.memory_space<vmem>>, vector<8x128xf32>
    tpu.vector_store %arg11[%c0_79, %c0_80], %265 {strides = array<i32>} : memref<8x128xf32, #tpu.memory_space<vmem>>, vector<8x128xf32>,
    %c0_81 = arith.constant 0 : index
    %c0_82 = arith.constant 0 : index
    %270 = vector.load %arg6[%c0_81, %c0_82] : memref<8x128xf32, #tpu.memory_space<vmem>>, vector<8x128xf32>
    tpu.vector_store %arg6[%c0_81, %c0_82], %267 {strides = array<i32>} : memref<8x128xf32, #tpu.memory_space<vmem>>, vector<8x128xf32>,
    return
  }
  func.func @transform_0(%arg0: i32, %arg1: i32) -> (i32, i32) {
    %c1_i32 = arith.constant 1 : i32
    %0 = arith.muli %arg0, %c1_i32 : i32
    %1 = arith.addi %0, %arg1 : i32
    %c0_i32 = arith.constant 0 : i32
    %c0_i32_0 = arith.constant 0 : i32
    return %1, %c0_i32 : i32, i32
  }
  func.func @transform_3(%arg0: i32, %arg1: i32) -> (i32, i32) {
    %c0_i32 = arith.constant 0 : i32
    %c0_i32_0 = arith.constant 0 : i32
    %c0_i32_1 = arith.constant 0 : i32
    return %c0_i32, %c0_i32_0 : i32, i32
  }
  func.func @transform_4(%arg0: i32, %arg1: i32) -> (i32, i32) {
    %c0_i32 = arith.constant 0 : i32
    %c0_i32_0 = arith.constant 0 : i32
    return %arg0, %c0_i32 : i32, i32
  }
}

</mosaic_0001>

<bundles_post_ra>
// kernel: lstm_shared_layers_forward.3
= control target key start
LH: loop header
LB: loop body
LE: loop exit
PB: predicated region body
PF: predicated region fallthrough
CT: control target
= control target key end

     0   :  { %9 = vsyncpa [#allocation9], 0  ;;  %s3387_s0 = inlined_call_operand.hbm [shape: f32[64,128], index: 0, kind: input, shape index: {}]   ;;  %s3388_s1 = inlined_call_operand.hbm [shape: f32[128,512], index: 1, kind: input, shape index: {}]   ;;  %s3389_s2 = inlined_call_operand.hbm [shape: f32[128,512], index: 2, kind: input, shape index: {}]   ;;  %s3390_s3 = inlined_call_operand.hbm [shape: f32[1,512], index: 3, kind: input, shape index: {}]   ;;  %s3391_s4 = inlined_call_operand.hbm [shape: f32[8,128], index: 4, kind: output, shape index: {}]  }
   0x1   :  { %10 = vsyncpa [#allocation12], 0 }
   0x2   :  { %11 = vsyncpa [#allocation10], 0  ;;  %s2876_s15 = smov [#allocation8]   ;;  %s2756_s19 = scalar_lea.hbm %s3387_s0, 1024 }
   0x3   :  { %s21_s16 = sshll.u32 %s2876_s15, 4  ;;  %p2757_p0 = scmp.ne.s32.totalorder %s3387_s0, %s2756_s19  ;;  %s22_s16 = int_to_ptr.vmem [resolvable:$true] %s21_s16 }
   0x4   :  { %p2760_p1 = scmp.lt.u32.totalorder %s2756_s19, %s3387_s0 }
   0x6   :  { %p2762_p2 = pnand %p2760_p1, %p2757_p0 }
   0x8   :  { %2765 = shalt.err (!%p2762_p2)
}
   0x9   :  { %s2766_s24 = scalar_lea.vmem %s22_s16, 1024  ;;  %p2771_p4 = scmp.lt.s32.totalorder %s22_s16, %s22_s16 }
   0xa   :  { %p2767_p3 = scmp.ne.s32.totalorder %s22_s16, %s2766_s24  ;;  %p2772_p5 = scmp.lt.s32.totalorder %s2766_s24, %s2766_s24 }
   0xc   :  { %p2773_p6 = por %p2772_p5, %p2771_p4 }
   0xe   :  { %p2774_p7 = pnand %p2773_p6, %p2767_p3 }
  0x10   :  { %2777 = shalt.err (!%p2774_p7)
}
  0x11   :  { %s2877_s25 = smov 128   ;;  %s2878_s26 = smov 8  }
  0x12   :  { %27 = dma.hbm_to_vmem [thread:$0]  %s3387_s0, 1024, %s22_s16, [#allocation9], %s2877_s25, %s2877_s25, %s2878_s26  }
  0x13   :  { %s2879_s29 = smov [#allocation11]   ;;  %s2778_s7 = scalar_lea.hbm %s3390_s3, 64 }
  0x14   :  { %s34_s30 = sshll.u32 %s2879_s29, 4  ;;  %p2779_p8 = scmp.ne.s32.totalorder %s3390_s3, %s2778_s7  ;;  %s35_s30 = int_to_ptr.vmem [resolvable:$true] %s34_s30 }
  0x15   :  { %p2782_p9 = scmp.lt.u32.totalorder %s2778_s7, %s3390_s3 }
  0x17   :  { %p2784_p10 = pnand %p2782_p9, %p2779_p8 }
  0x19   :  { %2787 = shalt.err (!%p2784_p10)
}
  0x1a   :  { %s2788_s12 = scalar_lea.vmem %s35_s30, 64  ;;  %p2793_p12 = scmp.lt.s32.totalorder %s35_s30, %s35_s30 }
  0x1b   :  { %p2789_p11 = scmp.ne.s32.totalorder %s35_s30, %s2788_s12  ;;  %p2794_p13 = scmp.lt.s32.totalorder %s2788_s12, %s2788_s12 }
  0x1d   :  { %p2795_p0 = por %p2794_p13, %p2793_p12 }
  0x1f   :  { %p2796_p1 = pnand %p2795_p0, %p2789_p11 }
  0x21   :  { %2799 = shalt.err (!%p2796_p1)
}
  0x22   :  { %37 = dma.hbm_to_vmem [thread:$0]  %s3390_s3, 64, %s35_s30, [#allocation12]  }
  0x23   :  { %2866 = dma.done.wait [#allocation9], 1024  }
  0x24   :  { %2867 = vsyncadd [#allocation9], 4294966272 }
  0x25   :  { %2868 = dma.done.wait [#allocation12], 64  }
  0x26   :  { %2869 = vsyncadd [#allocation12], 4294967232  ;;  %s2880_s14 = smov [#allocation2]   ;;  %s2881_s16 = smov [#allocation3]  }
  0x27   :  { %s57_s15 = sshll.u32 %s2880_s14, 4  ;;  %s69_s17 = sshll.u32 %s2881_s16, 4  ;;  %s58_s15 = int_to_ptr.vmem [resolvable:$true] %s57_s15  ;;  %s70_s17 = int_to_ptr.vmem [resolvable:$true] %s69_s17 }
  0x28   :  { %s2800_s20 = scalar_lea.hbm %s3388_s1, 8192 }
  0x29   :  { %p2801_p2 = scmp.ne.s32.totalorder %s3388_s1, %s2800_s20  ;;  %p2804_p3 = scmp.lt.u32.totalorder %s2800_s20, %s3388_s1 }
  0x2b   :  { %p2806_p4 = pnand %p2804_p3, %p2801_p2 }
  0x2d   :  { %2809 = shalt.err (!%p2806_p4)  }
  0x2e   :  { %s2810_s24 = scalar_lea.vmem %s58_s15, 8192  ;;  %p2815_p6 = scmp.lt.s32.totalorder %s58_s15, %s58_s15 }
  0x2f   :  { %p2811_p5 = scmp.ne.s32.totalorder %s58_s15, %s2810_s24  ;;  %p2816_p7 = scmp.lt.s32.totalorder %s2810_s24, %s2810_s24 }
  0x31   :  { %p2817_p8 = por %p2816_p7, %p2815_p6 }
  0x33   :  { %p2818_p9 = pnand %p2817_p8, %p2811_p5 }
  0x35   :  { %2821 = shalt.err (!%p2818_p9)  }
  0x36   :  { %60 = dma.hbm_to_vmem [thread:$0]  %s3388_s1, 8192, %s58_s15, [#allocation7] }
  0x37   :  { %s2822_s29 = scalar_lea.hbm %s3389_s2, 8192 }
  0x38   :  { %p2823_p10 = scmp.ne.s32.totalorder %s3389_s2, %s2822_s29  ;;  %p2826_p11 = scmp.lt.u32.totalorder %s2822_s29, %s3389_s2 }
  0x3a   :  { %p2828_p12 = pnand %p2826_p11, %p2823_p10 }
  0x3c   :  { %2831 = shalt.err (!%p2828_p12)  }
  0x3d   :  { %s2832_s8 = scalar_lea.vmem %s70_s17, 8192  ;;  %p2837_p0 = scmp.lt.s32.totalorder %s70_s17, %s70_s17 }
  0x3e   :  { %p2833_p13 = scmp.ne.s32.totalorder %s70_s17, %s2832_s8  ;;  %p2838_p1 = scmp.lt.s32.totalorder %s2832_s8, %s2832_s8 }
  0x40   :  { %p2839_p2 = por %p2838_p1, %p2837_p0 }
  0x42   :  { %p2840_p3 = pnand %p2839_p2, %p2833_p13 }
  0x44   :  { %2843 = shalt.err (!%p2840_p3)  }
  0x45   :  { %72 = dma.hbm_to_vmem [thread:$0]  %s3389_s2, 8192, %s70_s17, [#allocation7 + $0x1] }
  0x46   :  { %2870 = dma.done.wait [#allocation7], 8192 }
  0x47   :  { %2871 = vsyncadd [#allocation7], 4294959104 }
  0x48   :  { %2872 = dma.done.wait [#allocation7 + $0x1], 8192 }
  0x49   :  { %2873 = vsyncadd [#allocation7 + $0x1], 4294959104  ;;  %v2882_v0 = vmov 0.0   ;;  %v90_v1 = vld [vmem:[#allocation2 + $0x8] sm:$0xff]  ;;  %v92_v3 = vld [vmem:[#allocation2 + $0x18] sm:$0xff]  ;;  %s2883_s2 = smov [#allocation13]  }
  0x4a   :  { %239 = vmatprep.mubr.f32.mxu0 %v2882_v0  ;;  %352 = vmatprep.mubr.f32.mxu1 %v2882_v0  ;;  %v94_v2 = vld [vmem:[#allocation2 + $0x28] sm:$0xff]  ;;  %v96_v5 = vld [vmem:[#allocation2 + $0x38] sm:$0xff]  ;;  %v89_v6 = vld [vmem:[#allocation2] sm:$0xff]  ;;  %s1924_s10 = sshll.u32 %s2883_s2, 4  ;;  %s1925_s10 = int_to_ptr.vmem [resolvable:$true] %s1924_s10 }
  0x4b   :  { %v1980_v4 = vpack.c.bf16 %v94_v2, %v90_v1  ;;  %v93_v7 = vld [vmem:[#allocation2 + $0x20] sm:$0xff]  ;;  %v2012_v8 = vpack.c.bf16 %v96_v5, %v92_v3  ;;  %v91_v10 = vld [vmem:[#allocation2 + $0x10] sm:$0xff]  ;;  %v98_v12 = vld [vmem:[#allocation2 + $0x48] sm:$0xff]  ;;  %s2844_s11 = scalar_lea.vmem %s1925_s10, 128  ;;  %p2849_p5 = scmp.lt.s32.totalorder %s1925_s10, %s1925_s10 }
  0x4c   :  { %v1982_v9 = vpack.c.bf16 %v93_v7, %v89_v6  ;;  %v95_v11 = vld [vmem:[#allocation2 + $0x30] sm:$0xff]  ;;  %v102_v14 = vld [vmem:[#allocation2 + $0x68] sm:$0xff]  ;;  %v100_v15 = vld [vmem:[#allocation2 + $0x58] sm:$0xff]  ;;  %p2845_p4 = scmp.ne.s32.totalorder %s1925_s10, %s2844_s11  ;;  %p2850_p6 = scmp.lt.s32.totalorder %s2844_s11, %s2844_s11 }
  0x4d   :  { %1981 = vmatprep.subr.bf16.mxu0 %v1980_v4  ;;  %v2014_v13 = vpack.c.bf16 %v95_v11, %v91_v10  ;;  %v104_v16 = vld [vmem:[#allocation2 + $0x78] sm:$0xff]  ;;  %2013 = vmatprep.subr.bf16.mxu1 %v2012_v8  ;;  %v1984_v17 = vpack.c.bf16 %v102_v14, %v98_v12  ;;  %v97_v19 = vld [vmem:[#allocation2 + $0x40] sm:$0xff]  ;;  %v99_v21 = vld [vmem:[#allocation2 + $0x50] sm:$0xff] }
  0x4e   :  { %1983 = vmatpush1.bf16.msra.mxu0 %v1982_v9  ;;  %v2016_v18 = vpack.c.bf16 %v104_v16, %v100_v15  ;;  %v101_v20 = vld [vmem:[#allocation2 + $0x60] sm:$0xff]  ;;  %v103_v23 = vld [vmem:[#allocation2 + $0x70] sm:$0xff]  ;;  %v106_v24 = vld [vmem:[#allocation2 + $0x88] sm:$0xff]  ;;  %p2851_p7 = por %p2850_p6, %p2849_p5 }
  0x4f   :  { %2015 = vmatpush1.bf16.msra.mxu1 %v2014_v13  ;;  %v1986_v22 = vpack.c.bf16 %v101_v20, %v97_v19  ;;  %v110_v25 = vld [vmem:[#allocation2 + $0xa8] sm:$0xff]  ;;  %1985 = vmatprep.subr.bf16.mxu0 %v1984_v17  ;;  %v2018_v26 = vpack.c.bf16 %v103_v23, %v99_v21  ;;  %v108_v28 = vld [vmem:[#allocation2 + $0x98] sm:$0xff]  ;;  %v105_v30 = vld [vmem:[#allocation2 + $0x80] sm:$0xff] }
  0x50   :  { %2017 = vmatprep.subr.bf16.mxu1 %v2016_v18  ;;  %v1988_v27 = vpack.c.bf16 %v110_v25, %v106_v24  ;;  %v112_v29 = vld [vmem:[#allocation2 + $0xb8] sm:$0xff]  ;;  %v109_v32 = vld [vmem:[#allocation2 + $0xa0] sm:$0xff]  ;;  %v107_v33 = vld [vmem:[#allocation2 + $0x90] sm:$0xff]  ;;  %p2852_p8 = pnand %p2851_p7, %p2845_p4 }
  0x51   :  { %v2020_v31 = vpack.c.bf16 %v112_v29, %v108_v28  ;;  %v111_v34 = vld [vmem:[#allocation2 + $0xb0] sm:$0xff]  ;;  %v1990_v35 = vpack.c.bf16 %v109_v32, %v105_v30  ;;  %v114_v36 = vld [vmem:[#allocation2 + $0xc8] sm:$0xff]  ;;  %v116_v38 = vld [vmem:[#allocation2 + $0xd8] sm:$0xff] }
  0x52   :  { %1987 = vmatpush1.bf16.msra.mxu0 %v1986_v22  ;;  %v118_v37 = vld [vmem:[#allocation2 + $0xe8] sm:$0xff]  ;;  %v2022_v39 = vpack.c.bf16 %v111_v34, %v107_v33  ;;  %v120_v41 = vld [vmem:[#allocation2 + $0xf8] sm:$0xff]  ;;  %v113_v42 = vld [vmem:[#allocation2 + $0xc0] sm:$0xff] }
  0x53   :  { %2019 = vmatpush1.bf16.msra.mxu1 %v2018_v26  ;;  %1989 = vmatprep.subr.bf16.mxu0 %v1988_v27  ;;  %v1992_v40 = vpack.c.bf16 %v118_v37, %v114_v36  ;;  %v117_v43 = vld [vmem:[#allocation2 + $0xe0] sm:$0xff]  ;;  %v2024_v44 = vpack.c.bf16 %v120_v41, %v116_v38  ;;  %v115_v45 = vld [vmem:[#allocation2 + $0xd0] sm:$0xff]  ;;  %v122_v47 = vld [vmem:[#allocation2 + $0x108] sm:$0xff] }
  0x54   :  { %2021 = vmatprep.subr.bf16.mxu1 %v2020_v31  ;;  %v119_v46 = vld [vmem:[#allocation2 + $0xf0] sm:$0xff]  ;;  %v126_v48 = vld [vmem:[#allocation2 + $0x128] sm:$0xff]  ;;  %v124_v49 = vld [vmem:[#allocation2 + $0x118] sm:$0xff]  ;;  %v1994_v51 = vpack.c.bf16 %v117_v43, %v113_v42 }
  0x55   :  { %v128_v50 = vld [vmem:[#allocation2 + $0x138] sm:$0xff]  ;;  %v2026_v52 = vpack.c.bf16 %v119_v46, %v115_v45  ;;  %v1996_v53 = vpack.c.bf16 %v126_v48, %v122_v47  ;;  %v121_v54 = vld [vmem:[#allocation2 + $0x100] sm:$0xff]  ;;  %v123_v56 = vld [vmem:[#allocation2 + $0x110] sm:$0xff] }
  0x56   :  { %1991 = vmatpush1.bf16.msra.mxu0 %v1990_v35  ;;  %v125_v55 = vld [vmem:[#allocation2 + $0x120] sm:$0xff]  ;;  %v2028_v57 = vpack.c.bf16 %v128_v50, %v124_v49  ;;  %v127_v58 = vld [vmem:[#allocation2 + $0x130] sm:$0xff]  ;;  %v130_v59 = vld [vmem:[#allocation2 + $0x148] sm:$0xff] }
  0x57   :  { %2023 = vmatpush1.bf16.msra.mxu1 %v2022_v39  ;;  %1993 = vmatprep.subr.bf16.mxu0 %v1992_v40  ;;  %v134_v60 = vld [vmem:[#allocation2 + $0x168] sm:$0xff]  ;;  %v132_v61 = vld [vmem:[#allocation2 + $0x158] sm:$0xff]  ;;  %v1998_v63 = vpack.c.bf16 %v125_v55, %v121_v54  ;;  %v2030_v1 = vpack.c.bf16 %v127_v58, %v123_v56  ;;  %v129_v3 = vld [vmem:[#allocation2 + $0x140] sm:$0xff] }
  0x58   :  { %2025 = vmatprep.subr.bf16.mxu1 %v2024_v44  ;;  %v136_v62 = vld [vmem:[#allocation2 + $0x178] sm:$0xff]  ;;  %v2000_v2 = vpack.c.bf16 %v134_v60, %v130_v59  ;;  %v133_v4 = vld [vmem:[#allocation2 + $0x160] sm:$0xff]  ;;  %v131_v5 = vld [vmem:[#allocation2 + $0x150] sm:$0xff] }
  0x59   :  { %v2032_v6 = vpack.c.bf16 %v136_v62, %v132_v61  ;;  %v135_v7 = vld [vmem:[#allocation2 + $0x170] sm:$0xff]  ;;  %v138_v8 = vld [vmem:[#allocation2 + $0x188] sm:$0xff]  ;;  %v140_v10 = vld [vmem:[#allocation2 + $0x198] sm:$0xff]  ;;  %v2002_v12 = vpack.c.bf16 %v133_v4, %v129_v3 }
  0x5a   :  { %1995 = vmatpush1.bf16.msra.mxu0 %v1994_v51  ;;  %v142_v9 = vld [vmem:[#allocation2 + $0x1a8] sm:$0xff]  ;;  %v144_v11 = vld [vmem:[#allocation2 + $0x1b8] sm:$0xff]  ;;  %v2034_v13 = vpack.c.bf16 %v135_v7, %v131_v5  ;;  %v137_v15 = vld [vmem:[#allocation2 + $0x180] sm:$0xff] }
  0x5b   :  { %2027 = vmatpush1.bf16.msra.mxu1 %v2026_v52  ;;  %1997 = vmatprep.subr.bf16.mxu0 %v1996_v53  ;;  %v2004_v14 = vpack.c.bf16 %v142_v9, %v138_v8  ;;  %v141_v16 = vld [vmem:[#allocation2 + $0x1a0] sm:$0xff]  ;;  %v139_v17 = vld [vmem:[#allocation2 + $0x190] sm:$0xff]  ;;  %v2036_v18 = vpack.c.bf16 %v144_v11, %v140_v10  ;;  %v146_v20 = vld [vmem:[#allocation2 + $0x1c8] sm:$0xff] }
  0x5c   :  { %2029 = vmatprep.subr.bf16.mxu1 %v2028_v57  ;;  %v143_v19 = vld [vmem:[#allocation2 + $0x1b0] sm:$0xff]  ;;  %v150_v21 = vld [vmem:[#allocation2 + $0x1e8] sm:$0xff]  ;;  %v148_v22 = vld [vmem:[#allocation2 + $0x1d8] sm:$0xff]  ;;  %v2006_v24 = vpack.c.bf16 %v141_v16, %v137_v15 }
  0x5d   :  { %v152_v23 = vld [vmem:[#allocation2 + $0x1f8] sm:$0xff]  ;;  %v2038_v25 = vpack.c.bf16 %v143_v19, %v139_v17  ;;  %v2008_v26 = vpack.c.bf16 %v150_v21, %v146_v20  ;;  %v145_v27 = vld [vmem:[#allocation2 + $0x1c0] sm:$0xff]  ;;  %v147_v29 = vld [vmem:[#allocation2 + $0x1d0] sm:$0xff] }
  0x5e   :  { %1999 = vmatpush1.bf16.msra.mxu0 %v1998_v63  ;;  %v149_v28 = vld [vmem:[#allocation2 + $0x1e0] sm:$0xff]  ;;  %v2040_v30 = vpack.c.bf16 %v152_v23, %v148_v22  ;;  %v151_v31 = vld [vmem:[#allocation2 + $0x1f0] sm:$0xff]  ;;  %v443_v32 = vld [vmem:[#allocation3 + $0x8] sm:$0xff] }
  0x5f   :  { %2031 = vmatpush1.bf16.msra.mxu1 %v2030_v1  ;;  %2001 = vmatprep.subr.bf16.mxu0 %v2000_v2  ;;  %v447_v33 = vld [vmem:[#allocation3 + $0x28] sm:$0xff]  ;;  %v445_v34 = vld [vmem:[#allocation3 + $0x18] sm:$0xff]  ;;  %v2010_v36 = vpack.c.bf16 %v149_v28, %v145_v27  ;;  %v2042_v37 = vpack.c.bf16 %v151_v31, %v147_v29  ;;  %v442_v39 = vld [vmem:[#allocation3] sm:$0xff] }
  0x60   :  { %2033 = vmatprep.subr.bf16.mxu1 %v2032_v6  ;;  %v449_v35 = vld [vmem:[#allocation3 + $0x38] sm:$0xff]  ;;  %v2959_v38 = vpack.c.bf16 %v447_v33, %v443_v32  ;;  %v446_v40 = vld [vmem:[#allocation3 + $0x20] sm:$0xff]  ;;  %v444_v42 = vld [vmem:[#allocation3 + $0x10] sm:$0xff] }
  0x61   :  { %v2961_v41 = vpack.c.bf16 %v449_v35, %v445_v34  ;;  %v448_v43 = vld [vmem:[#allocation3 + $0x30] sm:$0xff]  ;;  %v451_v44 = vld [vmem:[#allocation3 + $0x48] sm:$0xff]  ;;  %v81_v46 = vld [vmem:[#allocation8] sm:$0xff]  ;;  %v2963_v47 = vpack.c.bf16 %v446_v40, %v442_v39 }
  0x62   :  { %2003 = vmatpush1.bf16.msra.mxu0 %v2002_v12  ;;  %v455_v45 = vld [vmem:[#allocation3 + $0x68] sm:$0xff]  ;;  %v453_v48 = vld [vmem:[#allocation3 + $0x58] sm:$0xff]  ;;  %v2966_v50 = vpack.c.bf16 %v448_v43, %v444_v42  ;;  %v450_v51 = vld [vmem:[#allocation3 + $0x40] sm:$0xff] }
  0x63   :  { %2035 = vmatpush1.bf16.msra.mxu1 %v2034_v13  ;;  %2005 = vmatprep.subr.bf16.mxu0 %v2004_v14  ;;  %v457_v49 = vld [vmem:[#allocation3 + $0x78] sm:$0xff]  ;;  %v454_v52 = vld [vmem:[#allocation3 + $0x60] sm:$0xff]  ;;  %v2969_v53 = vpack.c.bf16 %v455_v45, %v451_v44  ;;  %v452_v54 = vld [vmem:[#allocation3 + $0x50] sm:$0xff] }
  0x64   :  { %2037 = vmatprep.subr.bf16.mxu1 %v2036_v18  ;;  %v456_v55 = vld [vmem:[#allocation3 + $0x70] sm:$0xff]  ;;  %v2971_v56 = vpack.c.bf16 %v457_v49, %v453_v48  ;;  %v459_v57 = vld [vmem:[#allocation3 + $0x88] sm:$0xff]  ;;  %v2974_v60 = vpack.c.bf16 %v454_v52, %v450_v51  ;;  %v461_v61 = vld [vmem:[#allocation3 + $0x98] sm:$0xff] }
  0x65   :  { %v463_v58 = vld [vmem:[#allocation3 + $0xa8] sm:$0xff]  ;;  %v465_v62 = vld [vmem:[#allocation3 + $0xb8] sm:$0xff]  ;;  %v2978_v63 = vpack.c.bf16 %v456_v55, %v452_v54  ;;  %v458_v1 = vld [vmem:[#allocation3 + $0x80] sm:$0xff] }
  0x66   :  { %2007 = vmatpush1.bf16.msra.mxu0 %v2006_v24  ;;  %v82_v59 = vld [vmem:[#allocation8 + $0x8] sm:$0xff]  ;;  %v462_v2 = vld [vmem:[#allocation3 + $0xa0] sm:$0xff]  ;;  %v2982_v3 = vpack.c.bf16 %v463_v58, %v459_v57  ;;  %v460_v4 = vld [vmem:[#allocation3 + $0x90] sm:$0xff]  ;;  %v2985_v6 = vpack.c.bf16 %v465_v62, %v461_v61 }
  0x67   :  { %2039 = vmatpush1.bf16.msra.mxu1 %v2038_v25  ;;  %2009 = vmatprep.subr.bf16.mxu0 %v2008_v26  ;;  %v464_v5 = vld [vmem:[#allocation3 + $0xb0] sm:$0xff]  ;;  %v467_v7 = vld [vmem:[#allocation3 + $0xc8] sm:$0xff]  ;;  %v2988_v10 = vpack.c.bf16 %v462_v2, %v458_v1  ;;  %v469_v11 = vld [vmem:[#allocation3 + $0xd8] sm:$0xff] }
  0x68   :  { %2041 = vmatprep.subr.bf16.mxu1 %v2040_v30  ;;  %v471_v8 = vld [vmem:[#allocation3 + $0xe8] sm:$0xff]  ;;  %v83_v9 = vld [vmem:[#allocation8 + $0x10] sm:$0xff]  ;;  %v473_v12 = vld [vmem:[#allocation3 + $0xf8] sm:$0xff]  ;;  %v2992_v13 = vpack.c.bf16 %v464_v5, %v460_v4 }
  0x69   :  { %v466_v14 = vld [vmem:[#allocation3 + $0xc0] sm:$0xff]  ;;  %v2996_v16 = vpack.c.bf16 %v471_v8, %v467_v7  ;;  %v468_v17 = vld [vmem:[#allocation3 + $0xd0] sm:$0xff]  ;;  %v2999_v19 = vpack.c.bf16 %v473_v12, %v469_v11  ;;  %v475_v20 = vld [vmem:[#allocation3 + $0x108] sm:$0xff] }
  0x6a   :  { %2011 = vmatpush1.bf16.msra.mxu0 %v2010_v36  ;;  %v470_v15 = vld [vmem:[#allocation3 + $0xe0] sm:$0xff]  ;;  %v472_v18 = vld [vmem:[#allocation3 + $0xf0] sm:$0xff]  ;;  %v479_v21 = vld [vmem:[#allocation3 + $0x128] sm:$0xff] }
  0x6b   :  { %2043 = vmatpush1.bf16.msra.mxu1 %v2042_v37  ;;  %2045 = vmatprep.subr.bf16.mxu0 %v2959_v38  ;;  %v84_v22 = vld [vmem:[#allocation8 + $0x18] sm:$0xff]  ;;  %v3002_v23 = vpack.c.bf16 %v470_v15, %v466_v14  ;;  %v3006_v26 = vpack.c.bf16 %v472_v18, %v468_v17  ;;  %v474_v27 = vld [vmem:[#allocation3 + $0x100] sm:$0xff]  ;;  %v3010_v29 = vpack.c.bf16 %v479_v21, %v475_v20  ;;  %v476_v30 = vld [vmem:[#allocation3 + $0x110] sm:$0xff] }
  0x6c   :  { %2077 = vmatprep.subr.bf16.mxu1 %v2961_v41  ;;  %v477_v24 = vld [vmem:[#allocation3 + $0x118] sm:$0xff]  ;;  %v478_v28 = vld [vmem:[#allocation3 + $0x120] sm:$0xff]  ;;  %v480_v31 = vld [vmem:[#allocation3 + $0x130] sm:$0xff] }
  0x6d   :  { %240 = vmatmul.mubr.f32.vlgmr.msra.gmra.mrb[0].mxu0 %v81_v46  ;;  %v481_v25 = vld [vmem:[#allocation3 + $0x138] sm:$0xff]  ;;  %v483_v33 = vld [vmem:[#allocation3 + $0x148] sm:$0xff]  ;;  %v85_v35 = vld [vmem:[#allocation8 + $0x20] sm:$0xff]  ;;  %v3016_v36 = vpack.c.bf16 %v478_v28, %v474_v27  ;;  %v3020_v40 = vpack.c.bf16 %v480_v31, %v476_v30  ;;  %v155_v28 = vlaneseq }
  0x6e   :  { %353 = vmatmul.mubr.f32.vlgmr.msra.gmra.mrb[0].mxu1 %v81_v46  ;;  %2047 = vmatpush1.bf16.msra.mxu0 %v2963_v47  ;;  %v3013_v32 = vpack.c.bf16 %v481_v25, %v477_v24  ;;  %v487_v34 = vld [vmem:[#allocation3 + $0x168] sm:$0xff]  ;;  %v485_v37 = vld [vmem:[#allocation3 + $0x158] sm:$0xff]  ;;  %v482_v42 = vld [vmem:[#allocation3 + $0x140] sm:$0xff] }
  0x6f   :  { %2079 = vmatpush1.bf16.msra.mxu1 %v2966_v50  ;;  %245 = vmatprep.mubr.f32.mxu0 %v2882_v0  ;;  %v489_v39 = vld [vmem:[#allocation3 + $0x178] sm:$0xff]  ;;  %v486_v43 = vld [vmem:[#allocation3 + $0x160] sm:$0xff]  ;;  %v3024_v44 = vpack.c.bf16 %v487_v34, %v483_v33  ;;  %v484_v45 = vld [vmem:[#allocation3 + $0x150] sm:$0xff]  ;;  %v156_v30 = vshrl.u32 %v155_v28, 7 }
  0x70   :  { %358 = vmatprep.mubr.f32.mxu1 %v2882_v0  ;;  %2049 = vmatprep.subr.bf16.mxu0 %v2969_v53  ;;  %v488_v46 = vld [vmem:[#allocation3 + $0x170] sm:$0xff]  ;;  %v3027_v48 = vpack.c.bf16 %v489_v39, %v485_v37  ;;  %v491_v49 = vld [vmem:[#allocation3 + $0x188] sm:$0xff]  ;;  %v3030_v54 = vpack.c.bf16 %v486_v43, %v482_v42  ;;  %v493_v55 = vld [vmem:[#allocation3 + $0x198] sm:$0xff] }
  0x71   :  { %246 = vmatmul.mubr.f32.gmra.mrb[2].mxu0 %v82_v59  ;;  %2081 = vmatprep.subr.bf16.mxu1 %v2971_v56  ;;  %v495_v51 = vld [vmem:[#allocation3 + $0x1a8] sm:$0xff]  ;;  %v497_v57 = vld [vmem:[#allocation3 + $0x1b8] sm:$0xff]  ;;  %v3034_v58 = vpack.c.bf16 %v488_v46, %v484_v45  ;;  %v494_v61 = vld [vmem:[#allocation3 + $0x1a0] sm:$0xff]  ;;  %v157_v31 = vsub.s32 0, %v156_v30  ;;  %v161_v34 = vsub.s32 1, %v156_v30  ;;  %v169_v42 = vsub.s32 3, %v156_v30 }
  0x72   :  { %359 = vmatmul.mubr.f32.gmra.mrb[2].mxu1 %v82_v59  ;;  %2051 = vmatpush1.bf16.msra.mxu0 %v2974_v60  ;;  %v86_v52 = vld [vmem:[#allocation8 + $0x28] sm:$0xff]  ;;  %v490_v59 = vld [vmem:[#allocation3 + $0x180] sm:$0xff]  ;;  %v3038_v62 = vpack.c.bf16 %v495_v51, %v491_v49  ;;  %v492_v1 = vld [vmem:[#allocation3 + $0x190] sm:$0xff]  ;;  %v3041_v4 = vpack.c.bf16 %v497_v57, %v493_v55 }
  0x73   :  { %2083 = vmatpush1.bf16.msra.mxu1 %v2978_v63  ;;  %251 = vmatprep.mubr.f32.mxu0 %v2882_v0  ;;  %v496_v2 = vld [vmem:[#allocation3 + $0x1b0] sm:$0xff]  ;;  %v499_v5 = vld [vmem:[#allocation3 + $0x1c8] sm:$0xff]  ;;  %v501_v11 = vld [vmem:[#allocation3 + $0x1d8] sm:$0xff] }
  0x74   :  { %364 = vmatprep.mubr.f32.mxu1 %v2882_v0  ;;  %2053 = vmatprep.subr.bf16.mxu0 %v2982_v3  ;;  %v503_v7 = vld [vmem:[#allocation3 + $0x1e8] sm:$0xff]  ;;  %v87_v8 = vld [vmem:[#allocation8 + $0x30] sm:$0xff]  ;;  %v505_v12 = vld [vmem:[#allocation3 + $0x1f8] sm:$0xff]  ;;  %v3048_v14 = vpack.c.bf16 %v496_v2, %v492_v1 }
  0x75   :  { %252 = vmatmul.mubr.f32.gmra.mrb[4].mxu0 %v83_v9  ;;  %2085 = vmatprep.subr.bf16.mxu1 %v2985_v6  ;;  %v498_v15 = vld [vmem:[#allocation3 + $0x1c0] sm:$0xff]  ;;  %v3052_v18 = vpack.c.bf16 %v503_v7, %v499_v5  ;;  %v500_v20 = vld [vmem:[#allocation3 + $0x1d0] sm:$0xff]  ;;  %v88_v24 = vld [vmem:[#allocation8 + $0x38] sm:$0xff] }
  0x76   :  { %365 = vmatmul.mubr.f32.gmra.mrb[4].mxu1 %v83_v9  ;;  %2055 = vmatpush1.bf16.msra.mxu0 %v2988_v10  ;;  %v3044_v9 = vpack.c.bf16 %v494_v61, %v490_v59  ;;  %v502_v17 = vld [vmem:[#allocation3 + $0x1e0] sm:$0xff]  ;;  %v504_v21 = vld [vmem:[#allocation3 + $0x1f0] sm:$0xff]  ;;  %v165_v59 = vsub.s32 2, %v156_v30 }
  0x77   :  { %2087 = vmatpush1.bf16.msra.mxu1 %v2992_v13  ;;  %257 = vmatprep.mubr.f32.mxu0 %v2882_v0  ;;  %v3058_v25 = vpack.c.bf16 %v502_v17, %v498_v15  ;;  %v3062_v27 = vpack.c.bf16 %v504_v21, %v500_v20  ;;  %v153_v33 = vld [vmem:[#allocation11] sm:$0xf] }
  0x78   :  { %370 = vmatprep.mubr.f32.mxu1 %v2882_v0  ;;  %2057 = vmatprep.subr.bf16.mxu0 %v2996_v16  ;;  %v3111_v37 = vrot.slane %v153_v33, %v161_v34  ;;  %v3115_v57 = vrot.slane %v153_v33, %v169_v42  ;;  %v3118_v1 = vrot.slane %v153_v33, %v165_v59 }
  0x79   :  { %258 = vmatmul.mubr.f32.gmra.mrb[6].mxu0 %v84_v22  ;;  %2089 = vmatprep.subr.bf16.mxu1 %v2999_v19 }
  0x7a   :  { %371 = vmatmul.mubr.f32.gmra.mrb[6].mxu1 %v84_v22  ;;  %2059 = vmatpush1.bf16.msra.mxu0 %v3002_v23  ;;  %v3055_v22 = vpack.c.bf16 %v505_v12, %v501_v11 }
  0x7b   :  { %2091 = vmatpush1.bf16.msra.mxu1 %v3006_v26  ;;  %263 = vmatprep.mubr.f32.mxu0 %v2882_v0 }
  0x7c   :  { %376 = vmatprep.mubr.f32.mxu1 %v2882_v0  ;;  %2061 = vmatprep.subr.bf16.mxu0 %v3010_v29 }
  0x7d   :  { %264 = vmatmul.mubr.f32.gmra.mrb[8].mxu0 %v85_v35  ;;  %2093 = vmatprep.subr.bf16.mxu1 %v3013_v32 }
  0x7e   :  { %377 = vmatmul.mubr.f32.gmra.mrb[8].mxu1 %v85_v35  ;;  %2063 = vmatpush1.bf16.msra.mxu0 %v3016_v36  ;;  %v3109_v35 = vrot.slane %v153_v33, %v157_v31 }
  0x7f   :  { %2095 = vmatpush1.bf16.msra.mxu1 %v3020_v40  ;;  %269 = vmatprep.mubr.f32.mxu0 %v2882_v0 }
  0x80   :  { %382 = vmatprep.mubr.f32.mxu1 %v2882_v0  ;;  %2065 = vmatprep.subr.bf16.mxu0 %v3024_v44 }
  0x81   :  { %270 = vmatmul.mubr.f32.gmra.mrb[10].mxu0 %v86_v52  ;;  %2097 = vmatprep.subr.bf16.mxu1 %v3027_v48 }
  0x82   :  { %383 = vmatmul.mubr.f32.gmra.mrb[10].mxu1 %v86_v52  ;;  %2067 = vmatpush1.bf16.msra.mxu0 %v3030_v54 }
  0x83   :  { %2099 = vmatpush1.bf16.msra.mxu1 %v3034_v58  ;;  %275 = vmatprep.mubr.f32.mxu0 %v2882_v0 }
  0x84   :  { %388 = vmatprep.mubr.f32.mxu1 %v2882_v0  ;;  %2069 = vmatprep.subr.bf16.mxu0 %v3038_v62 }
  0x85   :  { %276 = vmatmul.mubr.f32.gmra.mrb[12].mxu0 %v87_v8  ;;  %2101 = vmatprep.subr.bf16.mxu1 %v3041_v4 }
  0x86   :  { %389 = vmatmul.mubr.f32.gmra.mrb[12].mxu1 %v87_v8  ;;  %2071 = vmatpush1.bf16.msra.mxu0 %v3044_v9 }
  0x87   :  { %2103 = vmatpush1.bf16.msra.mxu1 %v3048_v14  ;;  %281 = vmatprep.mubr.f32.mxu0 %v2882_v0 }
  0x88   :  { %394 = vmatprep.mubr.f32.mxu1 %v2882_v0  ;;  %2073 = vmatprep.subr.bf16.mxu0 %v3052_v18 }
  0x89   :  { %282 = vmatmul.mubr.f32.gmra.mrb[14].mxu0 %v88_v24  ;;  %2105 = vmatprep.subr.bf16.mxu1 %v3055_v22 }
  0x8a   :  { %395 = vmatmul.mubr.f32.gmra.mrb[14].mxu1 %v88_v24  ;;  %2075 = vmatpush1.bf16.msra.mxu0 %v3058_v25 }
  0x8b   :  { %2107 = vmatpush1.bf16.msra.mxu1 %v3062_v27  ;;  %570 = vmatprep.mubr.f32.mxu0 %v2882_v0 }
  0x8c   :  { %641 = vmatprep.mubr.f32.mxu1 %v2882_v0  ;;  %2109 = vmatprep.subr.bf16.mxu0 %v2959_v38 }
  0x8d   :  { %571 = vmatmul.mubr.f32.vlgmr.msra.gmra.mrb[0].mxu0 %v2882_v0  ;;  %2141 = vmatprep.subr.bf16.mxu1 %v2961_v41 }
  0x8e   :  { %642 = vmatmul.mubr.f32.vlgmr.msra.gmra.mrb[0].mxu1 %v2882_v0  ;;  %2111 = vmatpush1.bf16.msra.mxu0 %v2963_v47 }
  0x8f   :  { %2143 = vmatpush1.bf16.msra.mxu1 %v2966_v50  ;;  %2113 = vmatprep.subr.bf16.mxu0 %v2969_v53 }
  0x90   :  { %2145 = vmatprep.subr.bf16.mxu1 %v2971_v56  ;;  %747 = vmatprep.mubr.f32.mxu0 %v2882_v0 }
  0x91   :  { %818 = vmatprep.mubr.f32.mxu1 %v2882_v0 }
  0x92   :  { %2115 = vmatpush1.bf16.msra.mxu0 %v2974_v60 }
  0x93   :  { %2147 = vmatpush1.bf16.msra.mxu1 %v2978_v63  ;;  %2117 = vmatprep.subr.bf16.mxu0 %v2982_v3 }
  0x94   :  { %2149 = vmatprep.subr.bf16.mxu1 %v2985_v6 }
  0x96   :  { %2119 = vmatpush1.bf16.msra.mxu0 %v2988_v10 }
  0x97   :  { %2151 = vmatpush1.bf16.msra.mxu1 %v2992_v13  ;;  %2121 = vmatprep.subr.bf16.mxu0 %v2996_v16 }
  0x98   :  { %2153 = vmatprep.subr.bf16.mxu1 %v2999_v19 }
  0x9a   :  { %2123 = vmatpush1.bf16.msra.mxu0 %v3002_v23 }
  0x9b   :  { %2155 = vmatpush1.bf16.msra.mxu1 %v3006_v26  ;;  %2125 = vmatprep.subr.bf16.mxu0 %v3010_v29 }
  0x9c   :  { %2157 = vmatprep.subr.bf16.mxu1 %v3013_v32 }
  0x9e   :  { %2127 = vmatpush1.bf16.msra.mxu0 %v3016_v36 }
  0x9f   :  { %2159 = vmatpush1.bf16.msra.mxu1 %v3020_v40  ;;  %2129 = vmatprep.subr.bf16.mxu0 %v3024_v44 }
  0xa0   :  { %2161 = vmatprep.subr.bf16.mxu1 %v3027_v48 }
  0xa2   :  { %2131 = vmatpush1.bf16.msra.mxu0 %v3030_v54 }
  0xa3   :  { %2163 = vmatpush1.bf16.msra.mxu1 %v3034_v58  ;;  %2133 = vmatprep.subr.bf16.mxu0 %v3038_v62 }
  0xa4   :  { %2165 = vmatprep.subr.bf16.mxu1 %v3041_v4 }
  0xa6   :  { %2135 = vmatpush1.bf16.msra.mxu0 %v3044_v9 }
  0xa7   :  { %2167 = vmatpush1.bf16.msra.mxu1 %v3048_v14  ;;  %2137 = vmatprep.subr.bf16.mxu0 %v3052_v18 }
  0xa8   :  { %2169 = vmatprep.subr.bf16.mxu1 %v3055_v22 }
  0xaa   :  { %2139 = vmatpush1.bf16.msra.mxu0 %v3058_v25 }
  0xab   :  { %2171 = vmatpush1.bf16.msra.mxu1 %v3062_v27  ;;  %2173 = vmatprep.subr.bf16.mxu0 %v2959_v38 }
  0xac   :  { %2205 = vmatprep.subr.bf16.mxu1 %v2961_v41 }
 0x160   :  { %v572_v39 = vpop.f32.mrb[0].mxu0 }
 0x161   :  { %v2556_v43 = vadd.f32 %v572_v39, %v3109_v35  ;;  %v643_v45 = vpop.f32.mrb[0].mxu1  ;;  %v574_v46 = vpop.f32.mrb[1].mxu0 }
 0x162   :  { %v2557_v49 = vadd.f32 %v574_v46, %v3111_v37  ;;  %v645_v51 = vpop.f32.mrb[1].mxu1  ;;  %v2572_v5 = vadd.f32 %v643_v45, %v3118_v1 }
 0x163   :  { %v1954_v52 = vmul.f32 -1.442695, %v2556_v43  ;;  %v2573_v61 = vadd.f32 %v645_v51, %v3115_v57 }
 0x164   :  { %v1955_v55 = vmul.f32 -1.442695, %v2557_v49 }
 0x165   :  { %2628 = vpow2.f32 %v1954_v52  ;;  %v1956_v2 = vmul.f32 -1.442695, %v2573_v61 }
 0x166   :  { %2630 = vpow2.f32 %v1955_v55 }
 0x167   :  { %2632 = vpow2.f32 %v1956_v2 }
 0x168   :  { %2634 = vtanh.f32 %v2572_v5 }
 0x16f   :  { %v2629_v7 = vpop.eup %2628 }
 0x170   :  { %v2631_v8 = vpop.eup %2630  ;;  %v655_v11 = vadd.f32 1.0, %v2629_v7 }
 0x171   :  { %v661_v12 = vadd.f32 1.0, %v2631_v8  ;;  %v2633_v15 = vpop.eup %2632 }
 0x172   :  { %2636 = vrcp.f32 %v655_v11  ;;  %v2635_v17 = vpop.eup %2634  ;;  %v668_v28 = vadd.f32 1.0, %v2633_v15 }
 0x173   :  { %2638 = vrcp.f32 %v661_v12 }
 0x174   :  { %2640 = vrcp.f32 %v668_v28 }
 0x17c   :  { %v2637_v20 = vpop.eup %2636 }
 0x17d   :  { %v2639_v21 = vpop.eup %2638  ;;  %v672_v24 = vmul.f32 %v2637_v20, %v2635_v17 }
 0x17e   :  { %v671_v30 = vmul.f32 0.0, %v2639_v21  ;;  %v2641_v33 = vpop.eup %2640 }
 0x180   :  { %v3121_v31 = vadd.f32 %v672_v24, %v671_v30 }
 0x182   :  { %2642 = vtanh.f32 %v3121_v31 }
 0x18c   :  { %v2643_v34 = vpop.eup %2642 }
 0x18d   :  { %v675_v39 = vmul.f32 %v2643_v34, %v2641_v33 }
 0x18f   :  { %748 = vmatmul.mubr.f32.vlgmr.msra.gmra.mrb[2].mxu0 %v675_v39  ;;  %819 = vmatmul.mubr.f32.vlgmr.msra.gmra.mrb[2].mxu1 %v675_v39 }
 0x190   :  { %2175 = vmatpush1.bf16.msra.mxu0 %v2963_v47  ;;  %2207 = vmatpush1.bf16.msra.mxu1 %v2966_v50 }
 0x191   :  { %2177 = vmatprep.subr.bf16.mxu0 %v2969_v53  ;;  %2209 = vmatprep.subr.bf16.mxu1 %v2971_v56 }
 0x192   :  { %924 = vmatprep.mubr.f32.mxu0 %v2882_v0  ;;  %995 = vmatprep.mubr.f32.mxu1 %v2882_v0 }
 0x194   :  { %2179 = vmatpush1.bf16.msra.mxu0 %v2974_v60  ;;  %2211 = vmatpush1.bf16.msra.mxu1 %v2978_v63 }
 0x195   :  { %2181 = vmatprep.subr.bf16.mxu0 %v2982_v3  ;;  %2213 = vmatprep.subr.bf16.mxu1 %v2985_v6 }
 0x198   :  { %2183 = vmatpush1.bf16.msra.mxu0 %v2988_v10  ;;  %2215 = vmatpush1.bf16.msra.mxu1 %v2992_v13 }
 0x199   :  { %2185 = vmatprep.subr.bf16.mxu0 %v2996_v16  ;;  %2217 = vmatprep.subr.bf16.mxu1 %v2999_v19 }
 0x19c   :  { %2187 = vmatpush1.bf16.msra.mxu0 %v3002_v23  ;;  %2219 = vmatpush1.bf16.msra.mxu1 %v3006_v26 }
 0x19d   :  { %2189 = vmatprep.subr.bf16.mxu0 %v3010_v29  ;;  %2221 = vmatprep.subr.bf16.mxu1 %v3013_v32 }
 0x1a0   :  { %2191 = vmatpush1.bf16.msra.mxu0 %v3016_v36  ;;  %2223 = vmatpush1.bf16.msra.mxu1 %v3020_v40 }
 0x1a1   :  { %2193 = vmatprep.subr.bf16.mxu0 %v3024_v44  ;;  %2225 = vmatprep.subr.bf16.mxu1 %v3027_v48 }
 0x1a4   :  { %2195 = vmatpush1.bf16.msra.mxu0 %v3030_v54  ;;  %2227 = vmatpush1.bf16.msra.mxu1 %v3034_v58 }
 0x1a5   :  { %2197 = vmatprep.subr.bf16.mxu0 %v3038_v62  ;;  %2229 = vmatprep.subr.bf16.mxu1 %v3041_v4 }
 0x1a8   :  { %2199 = vmatpush1.bf16.msra.mxu0 %v3044_v9  ;;  %2231 = vmatpush1.bf16.msra.mxu1 %v3048_v14 }
 0x1a9   :  { %2201 = vmatprep.subr.bf16.mxu0 %v3052_v18  ;;  %2233 = vmatprep.subr.bf16.mxu1 %v3055_v22 }
 0x1ac   :  { %2203 = vmatpush1.bf16.msra.mxu0 %v3058_v25  ;;  %2235 = vmatpush1.bf16.msra.mxu1 %v3062_v27 }
 0x1ad   :  { %2237 = vmatprep.subr.bf16.mxu0 %v2959_v38  ;;  %2269 = vmatprep.subr.bf16.mxu1 %v2961_v41 }
 0x262   :  { %v749_v42 = vpop.f32.mrb[2].mxu0  ;;  %v820_v43 = vpop.f32.mrb[2].mxu1 }
 0x263   :  { %v2558_v45 = vadd.f32 %v749_v42, %v3109_v35  ;;  %v751_v46 = vpop.f32.mrb[3].mxu0  ;;  %v822_v49 = vpop.f32.mrb[3].mxu1  ;;  %v2574_v2 = vadd.f32 %v820_v43, %v3118_v1 }
 0x264   :  { %v2559_v51 = vadd.f32 %v751_v46, %v3111_v37  ;;  %v2575_v59 = vadd.f32 %v822_v49, %v3115_v57 }
 0x265   :  { %v1957_v52 = vmul.f32 -1.442695, %v2558_v45 }
 0x266   :  { %v1958_v55 = vmul.f32 -1.442695, %v2559_v51  ;;  %v1959_v61 = vmul.f32 -1.442695, %v2575_v59 }
 0x267   :  { %2644 = vpow2.f32 %v1957_v52 }
 0x268   :  { %2646 = vpow2.f32 %v1958_v55 }
 0x269   :  { %2648 = vpow2.f32 %v1959_v61 }
 0x26a   :  { %2650 = vtanh.f32 %v2574_v2 }
 0x271   :  { %v2645_v5 = vpop.eup %2644 }
 0x272   :  { %v2647_v7 = vpop.eup %2646  ;;  %v832_v8 = vadd.f32 1.0, %v2645_v5 }
 0x273   :  { %v838_v11 = vadd.f32 1.0, %v2647_v7  ;;  %v2649_v12 = vpop.eup %2648 }
 0x274   :  { %2652 = vrcp.f32 %v832_v8  ;;  %v2651_v15 = vpop.eup %2650  ;;  %v845_v24 = vadd.f32 1.0, %v2649_v12 }
 0x275   :  { %2654 = vrcp.f32 %v838_v11 }
 0x276   :  { %2656 = vrcp.f32 %v845_v24 }
 0x27e   :  { %v2653_v17 = vpop.eup %2652 }
 0x27f   :  { %v2655_v20 = vpop.eup %2654  ;;  %v849_v21 = vmul.f32 %v2653_v17, %v2651_v15 }
 0x280   :  { %v848_v28 = vmul.f32 %v2655_v20, %v3121_v31  ;;  %v2657_v33 = vpop.eup %2656 }
 0x282   :  { %v3163_v30 = vadd.f32 %v849_v21, %v848_v28 }
 0x284   :  { %2658 = vtanh.f32 %v3163_v30 }
 0x28e   :  { %v2659_v34 = vpop.eup %2658 }
 0x28f   :  { %v852_v39 = vmul.f32 %v2659_v34, %v2657_v33 }
 0x291   :  { %925 = vmatmul.mubr.f32.vlgmr.msra.gmra.mrb[4].mxu0 %v852_v39  ;;  %996 = vmatmul.mubr.f32.vlgmr.msra.gmra.mrb[4].mxu1 %v852_v39 }
 0x292   :  { %2239 = vmatpush1.bf16.msra.mxu0 %v2963_v47  ;;  %2271 = vmatpush1.bf16.msra.mxu1 %v2966_v50 }
 0x293   :  { %2241 = vmatprep.subr.bf16.mxu0 %v2969_v53  ;;  %2273 = vmatprep.subr.bf16.mxu1 %v2971_v56 }
 0x294   :  { %1101 = vmatprep.mubr.f32.mxu0 %v2882_v0  ;;  %1172 = vmatprep.mubr.f32.mxu1 %v2882_v0 }
 0x296   :  { %2243 = vmatpush1.bf16.msra.mxu0 %v2974_v60  ;;  %2275 = vmatpush1.bf16.msra.mxu1 %v2978_v63 }
 0x297   :  { %2245 = vmatprep.subr.bf16.mxu0 %v2982_v3  ;;  %2277 = vmatprep.subr.bf16.mxu1 %v2985_v6 }
 0x29a   :  { %2247 = vmatpush1.bf16.msra.mxu0 %v2988_v10  ;;  %2279 = vmatpush1.bf16.msra.mxu1 %v2992_v13 }
 0x29b   :  { %2249 = vmatprep.subr.bf16.mxu0 %v2996_v16  ;;  %2281 = vmatprep.subr.bf16.mxu1 %v2999_v19 }
 0x29e   :  { %2251 = vmatpush1.bf16.msra.mxu0 %v3002_v23  ;;  %2283 = vmatpush1.bf16.msra.mxu1 %v3006_v26 }
 0x29f   :  { %2253 = vmatprep.subr.bf16.mxu0 %v3010_v29  ;;  %2285 = vmatprep.subr.bf16.mxu1 %v3013_v32 }
 0x2a2   :  { %2255 = vmatpush1.bf16.msra.mxu0 %v3016_v36  ;;  %2287 = vmatpush1.bf16.msra.mxu1 %v3020_v40 }
 0x2a3   :  { %2257 = vmatprep.subr.bf16.mxu0 %v3024_v44  ;;  %2289 = vmatprep.subr.bf16.mxu1 %v3027_v48 }
 0x2a6   :  { %2259 = vmatpush1.bf16.msra.mxu0 %v3030_v54  ;;  %2291 = vmatpush1.bf16.msra.mxu1 %v3034_v58 }
 0x2a7   :  { %2261 = vmatprep.subr.bf16.mxu0 %v3038_v62  ;;  %2293 = vmatprep.subr.bf16.mxu1 %v3041_v4 }
 0x2aa   :  { %2263 = vmatpush1.bf16.msra.mxu0 %v3044_v9  ;;  %2295 = vmatpush1.bf16.msra.mxu1 %v3048_v14 }
 0x2ab   :  { %2265 = vmatprep.subr.bf16.mxu0 %v3052_v18  ;;  %2297 = vmatprep.subr.bf16.mxu1 %v3055_v22 }
 0x2ae   :  { %2267 = vmatpush1.bf16.msra.mxu0 %v3058_v25  ;;  %2299 = vmatpush1.bf16.msra.mxu1 %v3062_v27 }
 0x2af   :  { %2301 = vmatprep.subr.bf16.mxu0 %v2959_v38  ;;  %2333 = vmatprep.subr.bf16.mxu1 %v2961_v41 }
 0x364   :  { %v926_v31 = vpop.f32.mrb[4].mxu0  ;;  %v997_v42 = vpop.f32.mrb[4].mxu1 }
 0x365   :  { %v2560_v43 = vadd.f32 %v926_v31, %v3109_v35  ;;  %v928_v45 = vpop.f32.mrb[5].mxu0  ;;  %v999_v46 = vpop.f32.mrb[5].mxu1  ;;  %v2576_v61 = vadd.f32 %v997_v42, %v3118_v1 }
 0x366   :  { %v2561_v49 = vadd.f32 %v928_v45, %v3111_v37  ;;  %v2577_v55 = vadd.f32 %v999_v46, %v3115_v57 }
 0x367   :  { %v1960_v51 = vmul.f32 -1.442695, %v2560_v43 }
 0x368   :  { %v1961_v52 = vmul.f32 -1.442695, %v2561_v49  ;;  %v1962_v59 = vmul.f32 -1.442695, %v2577_v55 }
 0x369   :  { %2660 = vpow2.f32 %v1960_v51 }
 0x36a   :  { %2662 = vpow2.f32 %v1961_v52 }
 0x36b   :  { %2664 = vpow2.f32 %v1962_v59 }
 0x36c   :  { %2666 = vtanh.f32 %v2576_v61 }
 0x373   :  { %v2661_v2 = vpop.eup %2660 }
 0x374   :  { %v2663_v5 = vpop.eup %2662  ;;  %v1009_v7 = vadd.f32 1.0, %v2661_v2 }
 0x375   :  { %v1015_v8 = vadd.f32 1.0, %v2663_v5  ;;  %v2665_v11 = vpop.eup %2664 }
 0x376   :  { %2668 = vrcp.f32 %v1009_v7  ;;  %v2667_v12 = vpop.eup %2666  ;;  %v1022_v21 = vadd.f32 1.0, %v2665_v11 }
 0x377   :  { %2670 = vrcp.f32 %v1015_v8 }
 0x378   :  { %2672 = vrcp.f32 %v1022_v21 }
 0x380   :  { %v2669_v15 = vpop.eup %2668 }
 0x381   :  { %v2671_v17 = vpop.eup %2670  ;;  %v1026_v20 = vmul.f32 %v2669_v15, %v2667_v12 }
 0x382   :  { %v1025_v24 = vmul.f32 %v2671_v17, %v3163_v30  ;;  %v2673_v33 = vpop.eup %2672 }
 0x384   :  { %v3205_v28 = vadd.f32 %v1026_v20, %v1025_v24 }
 0x386   :  { %2674 = vtanh.f32 %v3205_v28 }
 0x390   :  { %v2675_v34 = vpop.eup %2674 }
 0x391   :  { %v1029_v39 = vmul.f32 %v2675_v34, %v2673_v33 }
 0x393   :  { %1102 = vmatmul.mubr.f32.vlgmr.msra.gmra.mrb[6].mxu0 %v1029_v39  ;;  %1173 = vmatmul.mubr.f32.vlgmr.msra.gmra.mrb[6].mxu1 %v1029_v39 }
 0x394   :  { %2303 = vmatpush1.bf16.msra.mxu0 %v2963_v47  ;;  %2335 = vmatpush1.bf16.msra.mxu1 %v2966_v50 }
 0x395   :  { %2305 = vmatprep.subr.bf16.mxu0 %v2969_v53  ;;  %2337 = vmatprep.subr.bf16.mxu1 %v2971_v56 }
 0x396   :  { %1278 = vmatprep.mubr.f32.mxu0 %v2882_v0  ;;  %1349 = vmatprep.mubr.f32.mxu1 %v2882_v0 }
 0x398   :  { %2307 = vmatpush1.bf16.msra.mxu0 %v2974_v60  ;;  %2339 = vmatpush1.bf16.msra.mxu1 %v2978_v63 }
 0x399   :  { %2309 = vmatprep.subr.bf16.mxu0 %v2982_v3  ;;  %2341 = vmatprep.subr.bf16.mxu1 %v2985_v6 }
 0x39c   :  { %2311 = vmatpush1.bf16.msra.mxu0 %v2988_v10  ;;  %2343 = vmatpush1.bf16.msra.mxu1 %v2992_v13 }
 0x39d   :  { %2313 = vmatprep.subr.bf16.mxu0 %v2996_v16  ;;  %2345 = vmatprep.subr.bf16.mxu1 %v2999_v19 }
 0x3a0   :  { %2315 = vmatpush1.bf16.msra.mxu0 %v3002_v23  ;;  %2347 = vmatpush1.bf16.msra.mxu1 %v3006_v26 }
 0x3a1   :  { %2317 = vmatprep.subr.bf16.mxu0 %v3010_v29  ;;  %2349 = vmatprep.subr.bf16.mxu1 %v3013_v32 }
 0x3a4   :  { %2319 = vmatpush1.bf16.msra.mxu0 %v3016_v36  ;;  %2351 = vmatpush1.bf16.msra.mxu1 %v3020_v40 }
 0x3a5   :  { %2321 = vmatprep.subr.bf16.mxu0 %v3024_v44  ;;  %2353 = vmatprep.subr.bf16.mxu1 %v3027_v48 }
 0x3a8   :  { %2323 = vmatpush1.bf16.msra.mxu0 %v3030_v54  ;;  %2355 = vmatpush1.bf16.msra.mxu1 %v3034_v58 }
 0x3a9   :  { %2325 = vmatprep.subr.bf16.mxu0 %v3038_v62  ;;  %2357 = vmatprep.subr.bf16.mxu1 %v3041_v4 }
 0x3ac   :  { %2327 = vmatpush1.bf16.msra.mxu0 %v3044_v9  ;;  %2359 = vmatpush1.bf16.msra.mxu1 %v3048_v14 }
 0x3ad   :  { %2329 = vmatprep.subr.bf16.mxu0 %v3052_v18  ;;  %2361 = vmatprep.subr.bf16.mxu1 %v3055_v22 }
 0x3b0   :  { %2331 = vmatpush1.bf16.msra.mxu0 %v3058_v25  ;;  %2363 = vmatpush1.bf16.msra.mxu1 %v3062_v27 }
 0x3b1   :  { %2365 = vmatprep.subr.bf16.mxu0 %v2959_v38  ;;  %2397 = vmatprep.subr.bf16.mxu1 %v2961_v41 }
 0x466   :  { %v1103_v30 = vpop.f32.mrb[6].mxu0  ;;  %v1174_v31 = vpop.f32.mrb[6].mxu1 }
 0x467   :  { %v2562_v42 = vadd.f32 %v1103_v30, %v3109_v35  ;;  %v1105_v43 = vpop.f32.mrb[7].mxu0  ;;  %v1176_v45 = vpop.f32.mrb[7].mxu1  ;;  %v2578_v59 = vadd.f32 %v1174_v31, %v3118_v1 }
 0x468   :  { %v2563_v46 = vadd.f32 %v1105_v43, %v3111_v37  ;;  %v2579_v52 = vadd.f32 %v1176_v45, %v3115_v57 }
 0x469   :  { %v1963_v49 = vmul.f32 -1.442695, %v2562_v42 }
 0x46a   :  { %v1964_v51 = vmul.f32 -1.442695, %v2563_v46  ;;  %v1965_v55 = vmul.f32 -1.442695, %v2579_v52 }
 0x46b   :  { %2676 = vpow2.f32 %v1963_v49 }
 0x46c   :  { %2678 = vpow2.f32 %v1964_v51 }
 0x46d   :  { %2680 = vpow2.f32 %v1965_v55 }
 0x46e   :  { %2682 = vtanh.f32 %v2578_v59 }
 0x475   :  { %v2677_v61 = vpop.eup %2676 }
 0x476   :  { %v2679_v2 = vpop.eup %2678  ;;  %v1186_v5 = vadd.f32 1.0, %v2677_v61 }
 0x477   :  { %v1192_v7 = vadd.f32 1.0, %v2679_v2  ;;  %v2681_v8 = vpop.eup %2680 }
 0x478   :  { %2684 = vrcp.f32 %v1186_v5  ;;  %v2683_v11 = vpop.eup %2682  ;;  %v1199_v20 = vadd.f32 1.0, %v2681_v8 }
 0x479   :  { %2686 = vrcp.f32 %v1192_v7 }
 0x47a   :  { %2688 = vrcp.f32 %v1199_v20 }
 0x482   :  { %v2685_v12 = vpop.eup %2684 }
 0x483   :  { %v2687_v15 = vpop.eup %2686  ;;  %v1203_v17 = vmul.f32 %v2685_v12, %v2683_v11 }
 0x484   :  { %v1202_v21 = vmul.f32 %v2687_v15, %v3205_v28  ;;  %v2689_v33 = vpop.eup %2688 }
 0x486   :  { %v3247_v24 = vadd.f32 %v1203_v17, %v1202_v21 }
 0x488   :  { %2690 = vtanh.f32 %v3247_v24 }
 0x492   :  { %v2691_v34 = vpop.eup %2690 }
 0x493   :  { %v1206_v39 = vmul.f32 %v2691_v34, %v2689_v33 }
 0x495   :  { %1279 = vmatmul.mubr.f32.vlgmr.msra.gmra.mrb[8].mxu0 %v1206_v39  ;;  %1350 = vmatmul.mubr.f32.vlgmr.msra.gmra.mrb[8].mxu1 %v1206_v39 }
 0x496   :  { %2367 = vmatpush1.bf16.msra.mxu0 %v2963_v47  ;;  %2399 = vmatpush1.bf16.msra.mxu1 %v2966_v50 }
 0x497   :  { %2369 = vmatprep.subr.bf16.mxu0 %v2969_v53  ;;  %2401 = vmatprep.subr.bf16.mxu1 %v2971_v56 }
 0x498   :  { %1455 = vmatprep.mubr.f32.mxu0 %v2882_v0  ;;  %1526 = vmatprep.mubr.f32.mxu1 %v2882_v0 }
 0x49a   :  { %2371 = vmatpush1.bf16.msra.mxu0 %v2974_v60  ;;  %2403 = vmatpush1.bf16.msra.mxu1 %v2978_v63 }
 0x49b   :  { %2373 = vmatprep.subr.bf16.mxu0 %v2982_v3  ;;  %2405 = vmatprep.subr.bf16.mxu1 %v2985_v6 }
 0x49e   :  { %2375 = vmatpush1.bf16.msra.mxu0 %v2988_v10  ;;  %2407 = vmatpush1.bf16.msra.mxu1 %v2992_v13 }
 0x49f   :  { %2377 = vmatprep.subr.bf16.mxu0 %v2996_v16  ;;  %2409 = vmatprep.subr.bf16.mxu1 %v2999_v19 }
 0x4a2   :  { %2379 = vmatpush1.bf16.msra.mxu0 %v3002_v23  ;;  %2411 = vmatpush1.bf16.msra.mxu1 %v3006_v26 }
 0x4a3   :  { %2381 = vmatprep.subr.bf16.mxu0 %v3010_v29  ;;  %2413 = vmatprep.subr.bf16.mxu1 %v3013_v32 }
 0x4a6   :  { %2383 = vmatpush1.bf16.msra.mxu0 %v3016_v36  ;;  %2415 = vmatpush1.bf16.msra.mxu1 %v3020_v40 }
 0x4a7   :  { %2385 = vmatprep.subr.bf16.mxu0 %v3024_v44  ;;  %2417 = vmatprep.subr.bf16.mxu1 %v3027_v48 }
 0x4aa   :  { %2387 = vmatpush1.bf16.msra.mxu0 %v3030_v54  ;;  %2419 = vmatpush1.bf16.msra.mxu1 %v3034_v58 }
 0x4ab   :  { %2389 = vmatprep.subr.bf16.mxu0 %v3038_v62  ;;  %2421 = vmatprep.subr.bf16.mxu1 %v3041_v4 }
 0x4ae   :  { %2391 = vmatpush1.bf16.msra.mxu0 %v3044_v9  ;;  %2423 = vmatpush1.bf16.msra.mxu1 %v3048_v14 }
 0x4af   :  { %2393 = vmatprep.subr.bf16.mxu0 %v3052_v18  ;;  %2425 = vmatprep.subr.bf16.mxu1 %v3055_v22 }
 0x4b2   :  { %2395 = vmatpush1.bf16.msra.mxu0 %v3058_v25  ;;  %2427 = vmatpush1.bf16.msra.mxu1 %v3062_v27 }
 0x4b3   :  { %2429 = vmatprep.subr.bf16.mxu0 %v2959_v38  ;;  %2461 = vmatprep.subr.bf16.mxu1 %v2961_v41 }
 0x568   :  { %v1280_v28 = vpop.f32.mrb[8].mxu0  ;;  %v1351_v30 = vpop.f32.mrb[8].mxu1 }
 0x569   :  { %v2564_v31 = vadd.f32 %v1280_v28, %v3109_v35  ;;  %v1282_v42 = vpop.f32.mrb[9].mxu0  ;;  %v1353_v43 = vpop.f32.mrb[9].mxu1  ;;  %v2580_v55 = vadd.f32 %v1351_v30, %v3118_v1 }
 0x56a   :  { %v2565_v45 = vadd.f32 %v1282_v42, %v3111_v37  ;;  %v2581_v51 = vadd.f32 %v1353_v43, %v3115_v57 }
 0x56b   :  { %v1966_v46 = vmul.f32 -1.442695, %v2564_v31 }
 0x56c   :  { %v1967_v49 = vmul.f32 -1.442695, %v2565_v45  ;;  %v1968_v52 = vmul.f32 -1.442695, %v2581_v51 }
 0x56d   :  { %2692 = vpow2.f32 %v1966_v46 }
 0x56e   :  { %2694 = vpow2.f32 %v1967_v49 }
 0x56f   :  { %2696 = vpow2.f32 %v1968_v52 }
 0x570   :  { %2698 = vtanh.f32 %v2580_v55 }
 0x577   :  { %v2693_v59 = vpop.eup %2692 }
 0x578   :  { %v2695_v61 = vpop.eup %2694  ;;  %v1363_v2 = vadd.f32 1.0, %v2693_v59 }
 0x579   :  { %v1369_v5 = vadd.f32 1.0, %v2695_v61  ;;  %v2697_v7 = vpop.eup %2696 }
 0x57a   :  { %2700 = vrcp.f32 %v1363_v2  ;;  %v2699_v8 = vpop.eup %2698  ;;  %v1376_v17 = vadd.f32 1.0, %v2697_v7 }
 0x57b   :  { %2702 = vrcp.f32 %v1369_v5 }
 0x57c   :  { %2704 = vrcp.f32 %v1376_v17 }
 0x584   :  { %v2701_v11 = vpop.eup %2700 }
 0x585   :  { %v2703_v12 = vpop.eup %2702  ;;  %v1380_v15 = vmul.f32 %v2701_v11, %v2699_v8 }
 0x586   :  { %v1379_v20 = vmul.f32 %v2703_v12, %v3247_v24  ;;  %v2705_v33 = vpop.eup %2704 }
 0x588   :  { %v3289_v21 = vadd.f32 %v1380_v15, %v1379_v20 }
 0x58a   :  { %2706 = vtanh.f32 %v3289_v21 }
 0x594   :  { %v2707_v34 = vpop.eup %2706 }
 0x595   :  { %v1383_v39 = vmul.f32 %v2707_v34, %v2705_v33 }
 0x597   :  { %1456 = vmatmul.mubr.f32.vlgmr.msra.gmra.mrb[10].mxu0 %v1383_v39  ;;  %1527 = vmatmul.mubr.f32.vlgmr.msra.gmra.mrb[10].mxu1 %v1383_v39 }
 0x598   :  { %2431 = vmatpush1.bf16.msra.mxu0 %v2963_v47  ;;  %2463 = vmatpush1.bf16.msra.mxu1 %v2966_v50 }
 0x599   :  { %2433 = vmatprep.subr.bf16.mxu0 %v2969_v53  ;;  %2465 = vmatprep.subr.bf16.mxu1 %v2971_v56 }
 0x59a   :  { %1632 = vmatprep.mubr.f32.mxu0 %v2882_v0  ;;  %1703 = vmatprep.mubr.f32.mxu1 %v2882_v0 }
 0x59c   :  { %2435 = vmatpush1.bf16.msra.mxu0 %v2974_v60  ;;  %2467 = vmatpush1.bf16.msra.mxu1 %v2978_v63 }
 0x59d   :  { %2437 = vmatprep.subr.bf16.mxu0 %v2982_v3  ;;  %2469 = vmatprep.subr.bf16.mxu1 %v2985_v6 }
 0x5a0   :  { %2439 = vmatpush1.bf16.msra.mxu0 %v2988_v10  ;;  %2471 = vmatpush1.bf16.msra.mxu1 %v2992_v13 }
 0x5a1   :  { %2441 = vmatprep.subr.bf16.mxu0 %v2996_v16  ;;  %2473 = vmatprep.subr.bf16.mxu1 %v2999_v19 }
 0x5a4   :  { %2443 = vmatpush1.bf16.msra.mxu0 %v3002_v23  ;;  %2475 = vmatpush1.bf16.msra.mxu1 %v3006_v26 }
 0x5a5   :  { %2445 = vmatprep.subr.bf16.mxu0 %v3010_v29  ;;  %2477 = vmatprep.subr.bf16.mxu1 %v3013_v32 }
 0x5a8   :  { %2447 = vmatpush1.bf16.msra.mxu0 %v3016_v36  ;;  %2479 = vmatpush1.bf16.msra.mxu1 %v3020_v40 }
 0x5a9   :  { %2449 = vmatprep.subr.bf16.mxu0 %v3024_v44  ;;  %2481 = vmatprep.subr.bf16.mxu1 %v3027_v48 }
 0x5ac   :  { %2451 = vmatpush1.bf16.msra.mxu0 %v3030_v54  ;;  %2483 = vmatpush1.bf16.msra.mxu1 %v3034_v58 }
 0x5ad   :  { %2453 = vmatprep.subr.bf16.mxu0 %v3038_v62  ;;  %2485 = vmatprep.subr.bf16.mxu1 %v3041_v4 }
 0x5b0   :  { %2455 = vmatpush1.bf16.msra.mxu0 %v3044_v9  ;;  %2487 = vmatpush1.bf16.msra.mxu1 %v3048_v14 }
 0x5b1   :  { %2457 = vmatprep.subr.bf16.mxu0 %v3052_v18  ;;  %2489 = vmatprep.subr.bf16.mxu1 %v3055_v22 }
 0x5b4   :  { %2459 = vmatpush1.bf16.msra.mxu0 %v3058_v25  ;;  %2491 = vmatpush1.bf16.msra.mxu1 %v3062_v27 }
 0x5b5   :  { %2493 = vmatprep.subr.bf16.mxu0 %v2959_v38  ;;  %2525 = vmatprep.subr.bf16.mxu1 %v2961_v41 }
 0x66a   :  { %v1457_v24 = vpop.f32.mrb[10].mxu0  ;;  %v1528_v28 = vpop.f32.mrb[10].mxu1 }
 0x66b   :  { %v2566_v30 = vadd.f32 %v1457_v24, %v3109_v35  ;;  %v1459_v31 = vpop.f32.mrb[11].mxu0  ;;  %v1530_v42 = vpop.f32.mrb[11].mxu1  ;;  %v2582_v52 = vadd.f32 %v1528_v28, %v3118_v1 }
 0x66c   :  { %v2567_v43 = vadd.f32 %v1459_v31, %v3111_v37  ;;  %v2583_v49 = vadd.f32 %v1530_v42, %v3115_v57 }
 0x66d   :  { %v1969_v45 = vmul.f32 -1.442695, %v2566_v30 }
 0x66e   :  { %v1970_v46 = vmul.f32 -1.442695, %v2567_v43  ;;  %v1971_v51 = vmul.f32 -1.442695, %v2583_v49 }
 0x66f   :  { %2708 = vpow2.f32 %v1969_v45 }
 0x670   :  { %2710 = vpow2.f32 %v1970_v46 }
 0x671   :  { %2712 = vpow2.f32 %v1971_v51 }
 0x672   :  { %2714 = vtanh.f32 %v2582_v52 }
 0x679   :  { %v2709_v38 = vpop.eup %2708 }
 0x67a   :  { %v2711_v55 = vpop.eup %2710  ;;  %v1540_v41 = vadd.f32 1.0, %v2709_v38 }
 0x67b   :  { %v1546_v59 = vadd.f32 1.0, %v2711_v55  ;;  %v2713_v61 = vpop.eup %2712 }
 0x67c   :  { %2716 = vrcp.f32 %v1540_v41  ;;  %v2715_v2 = vpop.eup %2714  ;;  %v1553_v11 = vadd.f32 1.0, %v2713_v61 }
 0x67d   :  { %2718 = vrcp.f32 %v1546_v59 }
 0x67e   :  { %2720 = vrcp.f32 %v1553_v11 }
 0x686   :  { %v2717_v5 = vpop.eup %2716 }
 0x687   :  { %v2719_v7 = vpop.eup %2718  ;;  %v1557_v8 = vmul.f32 %v2717_v5, %v2715_v2 }
 0x688   :  { %v1556_v12 = vmul.f32 %v2719_v7, %v3289_v21  ;;  %v2721_v17 = vpop.eup %2720 }
 0x68a   :  { %v3331_v15 = vadd.f32 %v1557_v8, %v1556_v12 }
 0x68c   :  { %2722 = vtanh.f32 %v3331_v15 }
 0x696   :  { %v2723_v20 = vpop.eup %2722 }
 0x697   :  { %v1560_v33 = vmul.f32 %v2723_v20, %v2721_v17 }
 0x699   :  { %1633 = vmatmul.mubr.f32.vlgmr.msra.gmra.mrb[12].mxu0 %v1560_v33  ;;  %1704 = vmatmul.mubr.f32.vlgmr.msra.gmra.mrb[12].mxu1 %v1560_v33 }
 0x69a   :  { %2495 = vmatpush1.bf16.msra.mxu0 %v2963_v47  ;;  %2527 = vmatpush1.bf16.msra.mxu1 %v2966_v50 }
 0x69b   :  { %2497 = vmatprep.subr.bf16.mxu0 %v2969_v53  ;;  %2529 = vmatprep.subr.bf16.mxu1 %v2971_v56 }
 0x69c   :  { %1809 = vmatprep.mubr.f32.mxu0 %v2882_v0  ;;  %1880 = vmatprep.mubr.f32.mxu1 %v2882_v0 }
 0x69e   :  { %2499 = vmatpush1.bf16.msra.mxu0 %v2974_v60  ;;  %2531 = vmatpush1.bf16.msra.mxu1 %v2978_v63 }
 0x69f   :  { %2501 = vmatprep.subr.bf16.mxu0 %v2982_v3  ;;  %2533 = vmatprep.subr.bf16.mxu1 %v2985_v6 }
 0x6a2   :  { %2503 = vmatpush1.bf16.msra.mxu0 %v2988_v10  ;;  %2535 = vmatpush1.bf16.msra.mxu1 %v2992_v13 }
 0x6a3   :  { %2505 = vmatprep.subr.bf16.mxu0 %v2996_v16  ;;  %2537 = vmatprep.subr.bf16.mxu1 %v2999_v19 }
 0x6a6   :  { %2507 = vmatpush1.bf16.msra.mxu0 %v3002_v23  ;;  %2539 = vmatpush1.bf16.msra.mxu1 %v3006_v26 }
 0x6a7   :  { %2509 = vmatprep.subr.bf16.mxu0 %v3010_v29  ;;  %2541 = vmatprep.subr.bf16.mxu1 %v3013_v32 }
 0x6aa   :  { %2511 = vmatpush1.bf16.msra.mxu0 %v3016_v36  ;;  %2543 = vmatpush1.bf16.msra.mxu1 %v3020_v40 }
 0x6ab   :  { %2513 = vmatprep.subr.bf16.mxu0 %v3024_v44  ;;  %2545 = vmatprep.subr.bf16.mxu1 %v3027_v48 }
 0x6ae   :  { %2515 = vmatpush1.bf16.msra.mxu0 %v3030_v54  ;;  %2547 = vmatpush1.bf16.msra.mxu1 %v3034_v58 }
 0x6af   :  { %2517 = vmatprep.subr.bf16.mxu0 %v3038_v62  ;;  %2549 = vmatprep.subr.bf16.mxu1 %v3041_v4 }
 0x6b2   :  { %2519 = vmatpush1.bf16.msra.mxu0 %v3044_v9  ;;  %2551 = vmatpush1.bf16.msra.mxu1 %v3048_v14 }
 0x6b3   :  { %2521 = vmatprep.subr.bf16.mxu0 %v3052_v18  ;;  %2553 = vmatprep.subr.bf16.mxu1 %v3055_v22 }
 0x6b6   :  { %2523 = vmatpush1.bf16.msra.mxu0 %v3058_v25  ;;  %2555 = vmatpush1.bf16.msra.mxu1 %v3062_v27 }
 0x76c   :  { %v1634_v0 = vpop.f32.mrb[12].mxu0  ;;  %v1705_v47 = vpop.f32.mrb[12].mxu1 }
 0x76d   :  { %v2568_v50 = vadd.f32 %v1634_v0, %v3109_v35  ;;  %v1636_v53 = vpop.f32.mrb[13].mxu0  ;;  %v1707_v56 = vpop.f32.mrb[13].mxu1  ;;  %v2584_v13 = vadd.f32 %v1705_v47, %v3118_v1 }
 0x76e   :  { %v2569_v60 = vadd.f32 %v1636_v53, %v3111_v37  ;;  %v2585_v6 = vadd.f32 %v1707_v56, %v3115_v57 }
 0x76f   :  { %v1972_v63 = vmul.f32 -1.442695, %v2568_v50 }
 0x770   :  { %v1973_v3 = vmul.f32 -1.442695, %v2569_v60  ;;  %v1974_v10 = vmul.f32 -1.442695, %v2585_v6 }
 0x771   :  { %2724 = vpow2.f32 %v1972_v63 }
 0x772   :  { %2726 = vpow2.f32 %v1973_v3 }
 0x773   :  { %2728 = vpow2.f32 %v1974_v10 }
 0x774   :  { %2730 = vtanh.f32 %v2584_v13 }
 0x77b   :  { %v2725_v16 = vpop.eup %2724 }
 0x77c   :  { %v2727_v19 = vpop.eup %2726  ;;  %v1717_v23 = vadd.f32 1.0, %v2725_v16 }
 0x77d   :  { %v1723_v26 = vadd.f32 1.0, %v2727_v19  ;;  %v2729_v29 = vpop.eup %2728 }
 0x77e   :  { %2732 = vrcp.f32 %v1717_v23  ;;  %v2731_v32 = vpop.eup %2730  ;;  %v1730_v48 = vadd.f32 1.0, %v2729_v29 }
 0x77f   :  { %2734 = vrcp.f32 %v1723_v26 }
 0x780   :  { %2736 = vrcp.f32 %v1730_v48 }
 0x788   :  { %v2733_v36 = vpop.eup %2732 }
 0x789   :  { %v2735_v40 = vpop.eup %2734  ;;  %v1734_v44 = vmul.f32 %v2733_v36, %v2731_v32 }
 0x78a   :  { %v1733_v54 = vmul.f32 %v2735_v40, %v3331_v15  ;;  %v2737_v62 = vpop.eup %2736 }
 0x78c   :  { %v1735_v58 = vadd.f32 %v1734_v44, %v1733_v54 }
 0x78e   :  { %2738 = vtanh.f32 %v1735_v58 }
 0x798   :  { %v2739_v4 = vpop.eup %2738 }
 0x799   :  { %v1737_v9 = vmul.f32 %v2739_v4, %v2737_v62 }
 0x79b   :  { %1810 = vmatmul.mubr.f32.vlgmr.msra.gmra.mrb[14].mxu0 %v1737_v9  ;;  %1881 = vmatmul.mubr.f32.vlgmr.msra.gmra.mrb[14].mxu1 %v1737_v9 }
 0x86e   :  { %v1811_v14 = vpop.f32.mrb[14].mxu0  ;;  %v1882_v18 = vpop.f32.mrb[14].mxu1 }
 0x86f   :  { %v2570_v22 = vadd.f32 %v1811_v14, %v3109_v35  ;;  %v1813_v25 = vpop.f32.mrb[15].mxu0  ;;  %v1884_v27 = vpop.f32.mrb[15].mxu1  ;;  %v2586_v30 = vadd.f32 %v1882_v18, %v3118_v1 }
 0x870   :  { %v2571_v21 = vadd.f32 %v1813_v25, %v3111_v37  ;;  %v2587_v24 = vadd.f32 %v1884_v27, %v3115_v57 }
 0x871   :  { %v1975_v34 = vmul.f32 -1.442695, %v2570_v22 }
 0x872   :  { %v1976_v39 = vmul.f32 -1.442695, %v2571_v21  ;;  %v1977_v28 = vmul.f32 -1.442695, %v2587_v24 }
 0x873   :  { %2740 = vpow2.f32 %v1975_v34 }
 0x874   :  { %2742 = vpow2.f32 %v1976_v39 }
 0x875   :  { %2744 = vpow2.f32 %v1977_v28 }
 0x876   :  { %2746 = vtanh.f32 %v2586_v30 }
 0x87d   :  { %v2741_v31 = vpop.eup %2740 }
 0x87e   :  { %v2743_v42 = vpop.eup %2742  ;;  %v1894_v43 = vadd.f32 1.0, %v2741_v31 }
 0x87f   :  { %v1900_v45 = vadd.f32 1.0, %v2743_v42  ;;  %v2745_v35 = vpop.eup %2744 }
 0x880   :  { %2748 = vrcp.f32 %v1894_v43  ;;  %v2747_v46 = vpop.eup %2746  ;;  %v1907_v52 = vadd.f32 1.0, %v2745_v35 }
 0x881   :  { %2750 = vrcp.f32 %v1900_v45 }
 0x882   :  { %2752 = vrcp.f32 %v1907_v52 }
 0x88a   :  { %v2749_v37 = vpop.eup %2748 }
 0x88b   :  { %v2751_v49 = vpop.eup %2750  ;;  %v1911_v51 = vmul.f32 %v2749_v37, %v2747_v46 }
 0x88c   :  { %v1910_v38 = vmul.f32 %v2751_v49, %v1735_v58  ;;  %v2753_v57 = vpop.eup %2752 }
 0x88e   :  { %v1912_v55 = vadd.f32 %v1911_v51, %v1910_v38 }
 0x890   :  { %2754 = vtanh.f32 %v1912_v55 }
 0x89a   :  { %v2755_v1 = vpop.eup %2754 }
 0x89b   :  { %v1914_v41 = vmul.f32 %v2755_v1, %v2753_v57 }
 0x89d   :  { %1917 = vst [vmem:[#allocation13] sm:$0xff] %v1914_v41 }
 0x89e   :  { %2855 = shalt.err (!%p2852_p8)
}
 0x89f   :  { %s2856_s13 = scalar_lea.hbm %s3391_s4, 128 }
 0x8a0   :  { %p2857_p9 = scmp.ne.s32.totalorder %s3391_s4, %s2856_s13  ;;  %p2860_p10 = scmp.lt.u32.totalorder %s2856_s13, %s3391_s4 }
 0x8a2   :  { %p2862_p11 = pnand %p2860_p10, %p2857_p9 }
 0x8a4   :  { %2865 = shalt.err (!%p2862_p11)
}
 0x8a5   :  { %1927 = dma.vmem_to_hbm [thread:$0]  %s1925_s10, 128, %s3391_s4, [#allocation10]  }
 0x8a6   :  { %2874 = dma.done.wait [#allocation10], 128  }
 0x8a7   :  { %2875 = vsyncadd [#allocation10], 4294967168 }
 0x8a8   :  { %1931 = vsyncpa [#allocation9], 1 }
 0x8a9   :  { %1932 = vsyncpa [#allocation12], 1 }
 0x8aa   :  { %1933 = vsyncpa [#allocation10], 1 }
 0x8ab   :  { %1934 = vsyncmov [#allocation7] }
 0x8ae   :  { %s1935_s20 = vpop.sfrf %1934 }
 0x8af   :  { %p1978_p12 = scmp.ne.s32.totalorder %s1935_s20, 0 }
 0x8b1   :  { %1939 = shalt.err (%p1978_p12)  }
 0x8b2   :  { %1941 = vsyncmov [#allocation7 + $0x1] }
 0x8b5   :  { %s1942_s21 = vpop.sfrf %1941 }
 0x8b6   :  { %p1979_p13 = scmp.ne.s32.totalorder %s1942_s21, 0 }
 0x8b8   :  { %1946 = shalt.err (%p1979_p13)  }

// kernel: lstm_shared_layers_forward.2
= control target key start
LH: loop header
LB: loop body
LE: loop exit
PB: predicated region body
PF: predicated region fallthrough
CT: control target
= control target key end

     0   :  { %9 = vsyncpa [#allocation9], 0  ;;  %s3854_s0 = inlined_call_operand.hbm [shape: f32[64,8], index: 0, kind: input, shape index: {}]   ;;  %s3855_s1 = inlined_call_operand.hbm [shape: f32[8,512], index: 1, kind: input, shape index: {}]   ;;  %s3856_s2 = inlined_call_operand.hbm [shape: f32[128,512], index: 2, kind: input, shape index: {}]   ;;  %s3857_s3 = inlined_call_operand.hbm [shape: f32[1,512], index: 3, kind: input, shape index: {}]   ;;  %s3858_s4 = inlined_call_operand.hbm [shape: f32[64,128], index: 4, kind: output, shape index: {}]  }
   0x1   :  { %10 = vsyncpa [#allocation12], 0 }
   0x2   :  { %11 = vsyncpa [#allocation10], 0  ;;  %s3265_s15 = smov [#allocation8]   ;;  %s3145_s19 = scalar_lea.hbm %s3854_s0, 1024 }
   0x3   :  { %s21_s16 = sshll.u32 %s3265_s15, 4  ;;  %p3146_p0 = scmp.ne.s32.totalorder %s3854_s0, %s3145_s19  ;;  %s22_s16 = int_to_ptr.vmem [resolvable:$true] %s21_s16 }
   0x4   :  { %p3149_p1 = scmp.lt.u32.totalorder %s3145_s19, %s3854_s0 }
   0x6   :  { %p3151_p2 = pnand %p3149_p1, %p3146_p0 }
   0x8   :  { %3154 = shalt.err (!%p3151_p2)
}
   0x9   :  { %s3155_s24 = scalar_lea.vmem %s22_s16, 1024  ;;  %p3160_p4 = scmp.lt.s32.totalorder %s22_s16, %s22_s16 }
   0xa   :  { %p3156_p3 = scmp.ne.s32.totalorder %s22_s16, %s3155_s24  ;;  %p3161_p5 = scmp.lt.s32.totalorder %s3155_s24, %s3155_s24 }
   0xc   :  { %p3162_p6 = por %p3161_p5, %p3160_p4 }
   0xe   :  { %p3163_p7 = pnand %p3162_p6, %p3156_p3 }
  0x10   :  { %3166 = shalt.err (!%p3163_p7)
}
  0x11   :  { %s3266_s25 = smov 128   ;;  %s3267_s26 = smov 8  }
  0x12   :  { %27 = dma.hbm_to_vmem [thread:$0]  %s3854_s0, 1024, %s22_s16, [#allocation9], %s3266_s25, %s3266_s25, %s3267_s26  }
  0x13   :  { %s3268_s29 = smov [#allocation11]   ;;  %s3167_s7 = scalar_lea.hbm %s3857_s3, 64 }
  0x14   :  { %s34_s30 = sshll.u32 %s3268_s29, 4  ;;  %p3168_p8 = scmp.ne.s32.totalorder %s3857_s3, %s3167_s7  ;;  %s35_s30 = int_to_ptr.vmem [resolvable:$true] %s34_s30 }
  0x15   :  { %p3171_p9 = scmp.lt.u32.totalorder %s3167_s7, %s3857_s3 }
  0x17   :  { %p3173_p10 = pnand %p3171_p9, %p3168_p8 }
  0x19   :  { %3176 = shalt.err (!%p3173_p10)
}
  0x1a   :  { %s3177_s12 = scalar_lea.vmem %s35_s30, 64  ;;  %p3182_p12 = scmp.lt.s32.totalorder %s35_s30, %s35_s30 }
  0x1b   :  { %p3178_p11 = scmp.ne.s32.totalorder %s35_s30, %s3177_s12  ;;  %p3183_p13 = scmp.lt.s32.totalorder %s3177_s12, %s3177_s12 }
  0x1d   :  { %p3184_p0 = por %p3183_p13, %p3182_p12 }
  0x1f   :  { %p3185_p1 = pnand %p3184_p0, %p3178_p11 }
  0x21   :  { %3188 = shalt.err (!%p3185_p1)
}
  0x22   :  { %37 = dma.hbm_to_vmem [thread:$0]  %s3857_s3, 64, %s35_s30, [#allocation12]  }
  0x23   :  { %3255 = dma.done.wait [#allocation9], 1024  }
  0x24   :  { %3256 = vsyncadd [#allocation9], 4294966272 }
  0x25   :  { %3257 = dma.done.wait [#allocation12], 64  }
  0x26   :  { %3258 = vsyncadd [#allocation12], 4294967232  ;;  %s3269_s14 = smov [#allocation2]   ;;  %s3270_s16 = smov [#allocation3]  }
  0x27   :  { %s59_s15 = sshll.u32 %s3269_s14, 4  ;;  %s71_s17 = sshll.u32 %s3270_s16, 4  ;;  %s60_s15 = int_to_ptr.vmem [resolvable:$true] %s59_s15  ;;  %s72_s17 = int_to_ptr.vmem [resolvable:$true] %s71_s17 }
  0x28   :  { %s3189_s20 = scalar_lea.hbm %s3855_s1, 512 }
  0x29   :  { %p3190_p2 = scmp.ne.s32.totalorder %s3855_s1, %s3189_s20  ;;  %p3193_p3 = scmp.lt.u32.totalorder %s3189_s20, %s3855_s1 }
  0x2b   :  { %p3195_p4 = pnand %p3193_p3, %p3190_p2 }
  0x2d   :  { %3198 = shalt.err (!%p3195_p4)  }
  0x2e   :  { %s3199_s24 = scalar_lea.vmem %s60_s15, 512  ;;  %p3204_p6 = scmp.lt.s32.totalorder %s60_s15, %s60_s15 }
  0x2f   :  { %p3200_p5 = scmp.ne.s32.totalorder %s60_s15, %s3199_s24  ;;  %p3205_p7 = scmp.lt.s32.totalorder %s3199_s24, %s3199_s24 }
  0x31   :  { %p3206_p8 = por %p3205_p7, %p3204_p6 }
  0x33   :  { %p3207_p9 = pnand %p3206_p8, %p3200_p5 }
  0x35   :  { %3210 = shalt.err (!%p3207_p9)  }
  0x36   :  { %62 = dma.hbm_to_vmem [thread:$0]  %s3855_s1, 512, %s60_s15, [#allocation7] }
  0x37   :  { %s3211_s5 = scalar_lea.hbm %s3856_s2, 8192 }
  0x38   :  { %p3212_p10 = scmp.ne.s32.totalorder %s3856_s2, %s3211_s5  ;;  %p3215_p11 = scmp.lt.u32.totalorder %s3211_s5, %s3856_s2 }
  0x3a   :  { %p3217_p12 = pnand %p3215_p11, %p3212_p10 }
  0x3c   :  { %3220 = shalt.err (!%p3217_p12)  }
  0x3d   :  { %s3221_s10 = scalar_lea.vmem %s72_s17, 8192  ;;  %p3226_p0 = scmp.lt.s32.totalorder %s72_s17, %s72_s17 }
  0x3e   :  { %p3222_p13 = scmp.ne.s32.totalorder %s72_s17, %s3221_s10  ;;  %p3227_p1 = scmp.lt.s32.totalorder %s3221_s10, %s3221_s10 }
  0x40   :  { %p3228_p2 = por %p3227_p1, %p3226_p0 }
  0x42   :  { %p3229_p3 = pnand %p3228_p2, %p3222_p13 }
  0x44   :  { %3232 = shalt.err (!%p3229_p3)  }
  0x45   :  { %74 = dma.hbm_to_vmem [thread:$0]  %s3856_s2, 8192, %s72_s17, [#allocation7 + $0x1] }
  0x46   :  { %3259 = dma.done.wait [#allocation7], 512 }
  0x47   :  { %3260 = vsyncadd [#allocation7], 4294966784 }
  0x48   :  { %3261 = dma.done.wait [#allocation7 + $0x1], 8192 }
  0x49   :  { %3262 = vsyncadd [#allocation7 + $0x1], 4294959104  ;;  %v3271_v0 = vmov 0.0   ;;  %v94_v1 = vld [vmem:[#allocation2 + $0x8] sm:$0xff]  ;;  %v96_v2 = vld [vmem:[#allocation2 + $0x18] sm:$0xff]  ;;  %vm119_vm0 = vcmask 64512  }
  0x4a   :  { %208 = vmatprep.mubr.f32.mxu0 %v3271_v0  ;;  %321 = vmatprep.mubr.f32.mxu1 %v3271_v0  ;;  %v93_v3 = vld [vmem:[#allocation2] sm:$0xff]  ;;  %v95_v4 = vld [vmem:[#allocation2 + $0x10] sm:$0xff]  ;;  %v412_v6 = vld [vmem:[#allocation3 + $0x8] sm:$0xff]  ;;  %s3272_s2 = smov [#allocation13]  }
  0x4b   :  { %144 = vmatprep.subr.mxu0 %v94_v1  ;;  %257 = vmatprep.subr.mxu1 %v96_v2  ;;  %v85_v5 = vld [vmem:[#allocation8] sm:$0xff]  ;;  %v416_v7 = vld [vmem:[#allocation3 + $0x28] sm:$0xff]  ;;  %v414_v8 = vld [vmem:[#allocation3 + $0x18] sm:$0xff]  ;;  %s2358_s12 = sshll.u32 %s3272_s2, 4  ;;  %s2359_s12 = int_to_ptr.vmem [resolvable:$true] %s2358_s12 }
  0x4c   :  { %145 = vmatpush1.msra.mxu0 %v93_v3  ;;  %258 = vmatpush1.msra.mxu1 %v95_v4  ;;  %v418_v9 = vld [vmem:[#allocation3 + $0x38] sm:$0xff]  ;;  %v3353_v10 = vpack.c.bf16 %v416_v7, %v412_v6  ;;  %v411_v12 = vld [vmem:[#allocation3] sm:$0xff]  ;;  %v413_v14 = vld [vmem:[#allocation3 + $0x10] sm:$0xff]  ;;  %s3233_s0 = scalar_lea.vmem %s2359_s12, 1024  ;;  %p3238_p5 = scmp.lt.s32.totalorder %s2359_s12, %s2359_s12 }
  0x4d   :  { %2391 = vmatmul.mubr.msk.f32.vlgmr.msra.gmra.mrb[0].mxu0 %vm119_vm0, %v85_v5  ;;  %2399 = vmatmul.mubr.msk.f32.vlgmr.msra.gmra.mrb[0].mxu1 %vm119_vm0, %v85_v5  ;;  %v3355_v11 = vpack.c.bf16 %v418_v9, %v414_v8  ;;  %v415_v13 = vld [vmem:[#allocation3 + $0x20] sm:$0xff]  ;;  %v417_v16 = vld [vmem:[#allocation3 + $0x30] sm:$0xff]  ;;  %v86_v17 = vld [vmem:[#allocation8 + $0x8] sm:$0xff]  ;;  %p3234_p4 = scmp.ne.s32.totalorder %s2359_s12, %s3233_s0  ;;  %p3239_p6 = scmp.lt.s32.totalorder %s3233_s0, %s3233_s0 }
  0x4e   :  { %v3357_v15 = vpack.c.bf16 %v415_v13, %v411_v12  ;;  %214 = vmatprep.mubr.f32.mxu0 %v3271_v0  ;;  %327 = vmatprep.mubr.f32.mxu1 %v3271_v0  ;;  %v420_v18 = vld [vmem:[#allocation3 + $0x48] sm:$0xff]  ;;  %v3363_v19 = vpack.c.bf16 %v417_v16, %v413_v14  ;;  %v422_v21 = vld [vmem:[#allocation3 + $0x58] sm:$0xff]  ;;  %v419_v25 = vld [vmem:[#allocation3 + $0x40] sm:$0xff] }
  0x4f   :  { %2434 = vmatprep.subr.bf16.mxu0 %v3353_v10  ;;  %2466 = vmatprep.subr.bf16.mxu1 %v3355_v11  ;;  %v424_v20 = vld [vmem:[#allocation3 + $0x68] sm:$0xff]  ;;  %v426_v22 = vld [vmem:[#allocation3 + $0x78] sm:$0xff]  ;;  %v423_v26 = vld [vmem:[#allocation3 + $0x60] sm:$0xff]  ;;  %p3240_p7 = por %p3239_p6, %p3238_p5 }
  0x50   :  { %2436 = vmatpush1.bf16.msra.mxu0 %v3357_v15  ;;  %v3366_v23 = vpack.c.bf16 %v424_v20, %v420_v18  ;;  %v3368_v24 = vpack.c.bf16 %v426_v22, %v422_v21  ;;  %v421_v27 = vld [vmem:[#allocation3 + $0x50] sm:$0xff]  ;;  %2468 = vmatpush1.bf16.msra.mxu1 %v3363_v19  ;;  %v3372_v28 = vpack.c.bf16 %v423_v26, %v419_v25  ;;  %v428_v31 = vld [vmem:[#allocation3 + $0x88] sm:$0xff]  ;;  %v430_v34 = vld [vmem:[#allocation3 + $0x98] sm:$0xff] }
  0x51   :  { %2392 = vmatmul.mubr.msk.f32.gmra.mrb[2].mxu0 %vm119_vm0, %v86_v17  ;;  %v425_v29 = vld [vmem:[#allocation3 + $0x70] sm:$0xff]  ;;  %2400 = vmatmul.mubr.msk.f32.gmra.mrb[2].mxu1 %vm119_vm0, %v86_v17  ;;  %v432_v33 = vld [vmem:[#allocation3 + $0xa8] sm:$0xff]  ;;  %v434_v35 = vld [vmem:[#allocation3 + $0xb8] sm:$0xff]  ;;  %p3241_p8 = pnand %p3240_p7, %p3234_p4 }
  0x52   :  { %v87_v30 = vld [vmem:[#allocation8 + $0x10] sm:$0xff]  ;;  %2438 = vmatprep.subr.bf16.mxu0 %v3366_v23  ;;  %v3376_v32 = vpack.c.bf16 %v425_v29, %v421_v27  ;;  %2470 = vmatprep.subr.bf16.mxu1 %v3368_v24  ;;  %v3380_v36 = vpack.c.bf16 %v432_v33, %v428_v31  ;;  %v3382_v37 = vpack.c.bf16 %v434_v35, %v430_v34  ;;  %v427_v38 = vld [vmem:[#allocation3 + $0x80] sm:$0xff]  ;;  %v88_v43 = vld [vmem:[#allocation8 + $0x18] sm:$0xff] }
  0x53   :  { %220 = vmatprep.mubr.f32.mxu0 %v3271_v0  ;;  %v431_v39 = vld [vmem:[#allocation3 + $0xa0] sm:$0xff]  ;;  %v429_v40 = vld [vmem:[#allocation3 + $0x90] sm:$0xff]  ;;  %333 = vmatprep.mubr.f32.mxu1 %v3271_v0  ;;  %v436_v44 = vld [vmem:[#allocation3 + $0xc8] sm:$0xff] }
  0x54   :  { %2440 = vmatpush1.bf16.msra.mxu0 %v3372_v28  ;;  %v3386_v41 = vpack.c.bf16 %v431_v39, %v427_v38  ;;  %v433_v42 = vld [vmem:[#allocation3 + $0xb0] sm:$0xff]  ;;  %2472 = vmatpush1.bf16.msra.mxu1 %v3376_v32  ;;  %v440_v46 = vld [vmem:[#allocation3 + $0xe8] sm:$0xff]  ;;  %v438_v47 = vld [vmem:[#allocation3 + $0xd8] sm:$0xff] }
  0x55   :  { %2393 = vmatmul.mubr.msk.f32.gmra.mrb[4].mxu0 %vm119_vm0, %v87_v30  ;;  %v3390_v45 = vpack.c.bf16 %v433_v42, %v429_v40  ;;  %v442_v48 = vld [vmem:[#allocation3 + $0xf8] sm:$0xff]  ;;  %2401 = vmatmul.mubr.msk.f32.gmra.mrb[4].mxu1 %vm119_vm0, %v87_v30  ;;  %v3394_v49 = vpack.c.bf16 %v440_v46, %v436_v44  ;;  %v435_v50 = vld [vmem:[#allocation3 + $0xc0] sm:$0xff]  ;;  %v437_v52 = vld [vmem:[#allocation3 + $0xd0] sm:$0xff] }
  0x56   :  { %2442 = vmatprep.subr.bf16.mxu0 %v3380_v36  ;;  %v439_v51 = vld [vmem:[#allocation3 + $0xe0] sm:$0xff]  ;;  %2474 = vmatprep.subr.bf16.mxu1 %v3382_v37  ;;  %v3398_v53 = vpack.c.bf16 %v442_v48, %v438_v47  ;;  %v441_v54 = vld [vmem:[#allocation3 + $0xf0] sm:$0xff]  ;;  %v444_v55 = vld [vmem:[#allocation3 + $0x108] sm:$0xff] }
  0x57   :  { %226 = vmatprep.mubr.f32.mxu0 %v3271_v0  ;;  %339 = vmatprep.mubr.f32.mxu1 %v3271_v0  ;;  %v3402_v56 = vpack.c.bf16 %v439_v51, %v435_v50  ;;  %v448_v57 = vld [vmem:[#allocation3 + $0x128] sm:$0xff]  ;;  %v446_v58 = vld [vmem:[#allocation3 + $0x118] sm:$0xff]  ;;  %v3406_v60 = vpack.c.bf16 %v441_v54, %v437_v52  ;;  %v443_v61 = vld [vmem:[#allocation3 + $0x100] sm:$0xff] }
  0x58   :  { %2444 = vmatpush1.bf16.msra.mxu0 %v3386_v41  ;;  %v450_v59 = vld [vmem:[#allocation3 + $0x138] sm:$0xff]  ;;  %2476 = vmatpush1.bf16.msra.mxu1 %v3390_v45  ;;  %v447_v62 = vld [vmem:[#allocation3 + $0x120] sm:$0xff]  ;;  %v3410_v1 = vpack.c.bf16 %v448_v57, %v444_v55  ;;  %v445_v2 = vld [vmem:[#allocation3 + $0x110] sm:$0xff] }
  0x59   :  { %2394 = vmatmul.mubr.msk.f32.gmra.mrb[6].mxu0 %vm119_vm0, %v88_v43  ;;  %2402 = vmatmul.mubr.msk.f32.gmra.mrb[6].mxu1 %vm119_vm0, %v88_v43  ;;  %v89_v63 = vld [vmem:[#allocation8 + $0x20] sm:$0xff]  ;;  %v449_v3 = vld [vmem:[#allocation3 + $0x130] sm:$0xff]  ;;  %v3414_v4 = vpack.c.bf16 %v450_v59, %v446_v58  ;;  %v452_v5 = vld [vmem:[#allocation3 + $0x148] sm:$0xff]  ;;  %v3418_v7 = vpack.c.bf16 %v447_v62, %v443_v61  ;;  %v99_v62 = vlaneseq }
  0x5a   :  { %2446 = vmatprep.subr.bf16.mxu0 %v3394_v49  ;;  %2478 = vmatprep.subr.bf16.mxu1 %v3398_v53  ;;  %v456_v6 = vld [vmem:[#allocation3 + $0x168] sm:$0xff]  ;;  %v454_v8 = vld [vmem:[#allocation3 + $0x158] sm:$0xff]  ;;  %v3422_v12 = vpack.c.bf16 %v449_v3, %v445_v2  ;;  %v451_v13 = vld [vmem:[#allocation3 + $0x140] sm:$0xff] }
  0x5b   :  { %232 = vmatprep.mubr.f32.mxu0 %v3271_v0  ;;  %345 = vmatprep.mubr.f32.mxu1 %v3271_v0  ;;  %v458_v9 = vld [vmem:[#allocation3 + $0x178] sm:$0xff]  ;;  %v455_v14 = vld [vmem:[#allocation3 + $0x160] sm:$0xff]  ;;  %v90_v16 = vld [vmem:[#allocation8 + $0x28] sm:$0xff]  ;;  %v3426_v17 = vpack.c.bf16 %v456_v6, %v452_v5 }
  0x5c   :  { %2448 = vmatpush1.bf16.msra.mxu0 %v3402_v56  ;;  %2480 = vmatpush1.bf16.msra.mxu1 %v3406_v60  ;;  %v453_v18 = vld [vmem:[#allocation3 + $0x150] sm:$0xff]  ;;  %v3430_v21 = vpack.c.bf16 %v458_v9, %v454_v8  ;;  %v460_v22 = vld [vmem:[#allocation3 + $0x188] sm:$0xff]  ;;  %v3434_v26 = vpack.c.bf16 %v455_v14, %v451_v13  ;;  %v462_v27 = vld [vmem:[#allocation3 + $0x198] sm:$0xff] }
  0x5d   :  { %2395 = vmatmul.mubr.msk.f32.gmra.mrb[8].mxu0 %vm119_vm0, %v89_v63  ;;  %2403 = vmatmul.mubr.msk.f32.gmra.mrb[8].mxu1 %vm119_vm0, %v89_v63  ;;  %v457_v20 = vld [vmem:[#allocation3 + $0x170] sm:$0xff]  ;;  %v464_v25 = vld [vmem:[#allocation3 + $0x1a8] sm:$0xff]  ;;  %v466_v29 = vld [vmem:[#allocation3 + $0x1b8] sm:$0xff]  ;;  %v100_v63 = vshrl.u32 %v99_v62, 7 }
  0x5e   :  { %2450 = vmatprep.subr.bf16.mxu0 %v3410_v1  ;;  %2482 = vmatprep.subr.bf16.mxu1 %v3414_v4  ;;  %v3438_v30 = vpack.c.bf16 %v457_v20, %v453_v18  ;;  %v459_v31 = vld [vmem:[#allocation3 + $0x180] sm:$0xff]  ;;  %v91_v34 = vld [vmem:[#allocation8 + $0x30] sm:$0xff]  ;;  %v3442_v35 = vpack.c.bf16 %v464_v25, %v460_v22  ;;  %v3446_v40 = vpack.c.bf16 %v466_v29, %v462_v27  ;;  %v468_v42 = vld [vmem:[#allocation3 + $0x1c8] sm:$0xff] }
  0x5f   :  { %238 = vmatprep.mubr.f32.mxu0 %v3271_v0  ;;  %351 = vmatprep.mubr.f32.mxu1 %v3271_v0  ;;  %v463_v33 = vld [vmem:[#allocation3 + $0x1a0] sm:$0xff]  ;;  %v461_v38 = vld [vmem:[#allocation3 + $0x190] sm:$0xff]  ;;  %v472_v43 = vld [vmem:[#allocation3 + $0x1e8] sm:$0xff]  ;;  %v101_v2 = vsub.s32 0, %v100_v63  ;;  %v105_v5 = vsub.s32 1, %v100_v63  ;;  %v113_v13 = vsub.s32 3, %v100_v63 }
  0x60   :  { %2452 = vmatpush1.bf16.msra.mxu0 %v3418_v7  ;;  %2484 = vmatpush1.bf16.msra.mxu1 %v3422_v12  ;;  %v465_v39 = vld [vmem:[#allocation3 + $0x1b0] sm:$0xff]  ;;  %v3450_v44 = vpack.c.bf16 %v463_v33, %v459_v31  ;;  %v470_v46 = vld [vmem:[#allocation3 + $0x1d8] sm:$0xff]  ;;  %v467_v50 = vld [vmem:[#allocation3 + $0x1c0] sm:$0xff]  ;;  %v3458_v54 = vpack.c.bf16 %v472_v43, %v468_v42  ;;  %v109_v27 = vsub.s32 2, %v100_v63 }
  0x61   :  { %2396 = vmatmul.mubr.msk.f32.gmra.mrb[10].mxu0 %vm119_vm0, %v90_v16  ;;  %2404 = vmatmul.mubr.msk.f32.gmra.mrb[10].mxu1 %vm119_vm0, %v90_v16  ;;  %v474_v47 = vld [vmem:[#allocation3 + $0x1f8] sm:$0xff]  ;;  %v3454_v48 = vpack.c.bf16 %v465_v39, %v461_v38  ;;  %v471_v51 = vld [vmem:[#allocation3 + $0x1e0] sm:$0xff]  ;;  %v469_v55 = vld [vmem:[#allocation3 + $0x1d0] sm:$0xff] }
  0x62   :  { %2454 = vmatprep.subr.bf16.mxu0 %v3426_v17  ;;  %2486 = vmatprep.subr.bf16.mxu1 %v3430_v21  ;;  %v92_v52 = vld [vmem:[#allocation8 + $0x38] sm:$0xff]  ;;  %v473_v57 = vld [vmem:[#allocation3 + $0x1f0] sm:$0xff]  ;;  %v3462_v58 = vpack.c.bf16 %v474_v47, %v470_v46  ;;  %v3466_v59 = vpack.c.bf16 %v471_v51, %v467_v50  ;;  %v97_v3 = vld [vmem:[#allocation11] sm:$0xf] }
  0x63   :  { %244 = vmatprep.mubr.f32.mxu0 %v3271_v0  ;;  %357 = vmatprep.mubr.f32.mxu1 %v3271_v0  ;;  %v3470_v61 = vpack.c.bf16 %v473_v57, %v469_v55  ;;  %v3517_v6 = vrot.slane %v97_v3, %v101_v2  ;;  %v3519_v8 = vrot.slane %v97_v3, %v105_v5 }
  0x64   :  { %2456 = vmatpush1.bf16.msra.mxu0 %v3434_v26  ;;  %2488 = vmatpush1.bf16.msra.mxu1 %v3438_v30  ;;  %v3523_v25 = vrot.slane %v97_v3, %v113_v13  ;;  %v3526_v31 = vrot.slane %v97_v3, %v109_v27 }
  0x65   :  { %2397 = vmatmul.mubr.msk.f32.gmra.mrb[12].mxu0 %vm119_vm0, %v91_v34  ;;  %2405 = vmatmul.mubr.msk.f32.gmra.mrb[12].mxu1 %vm119_vm0, %v91_v34 }
  0x66   :  { %2458 = vmatprep.subr.bf16.mxu0 %v3442_v35  ;;  %2490 = vmatprep.subr.bf16.mxu1 %v3446_v40 }
  0x67   :  { %250 = vmatprep.mubr.f32.mxu0 %v3271_v0  ;;  %363 = vmatprep.mubr.f32.mxu1 %v3271_v0 }
  0x68   :  { %2460 = vmatpush1.bf16.msra.mxu0 %v3450_v44  ;;  %2492 = vmatpush1.bf16.msra.mxu1 %v3454_v48 }
  0x69   :  { %2398 = vmatmul.mubr.msk.f32.gmra.mrb[14].mxu0 %vm119_vm0, %v92_v52  ;;  %2406 = vmatmul.mubr.msk.f32.gmra.mrb[14].mxu1 %vm119_vm0, %v92_v52 }
  0x6a   :  { %2462 = vmatprep.subr.bf16.mxu0 %v3458_v54  ;;  %2494 = vmatprep.subr.bf16.mxu1 %v3462_v58 }
  0x6b   :  { %539 = vmatprep.mubr.f32.mxu0 %v3271_v0  ;;  %610 = vmatprep.mubr.f32.mxu1 %v3271_v0 }
  0x6c   :  { %2464 = vmatpush1.bf16.msra.mxu0 %v3466_v59  ;;  %2496 = vmatpush1.bf16.msra.mxu1 %v3470_v61 }
  0x6d   :  { %2498 = vmatprep.subr.bf16.mxu0 %v3353_v10  ;;  %2530 = vmatprep.subr.bf16.mxu1 %v3355_v11 }
  0x6f   :  { %540 = vmatmul.mubr.f32.vlgmr.msra.gmra.mrb[0].mxu0 %v3271_v0  ;;  %611 = vmatmul.mubr.f32.vlgmr.msra.gmra.mrb[0].mxu1 %v3271_v0 }
  0x70   :  { %2500 = vmatpush1.bf16.msra.mxu0 %v3357_v15  ;;  %2532 = vmatpush1.bf16.msra.mxu1 %v3363_v19 }
  0x71   :  { %2502 = vmatprep.subr.bf16.mxu0 %v3366_v23  ;;  %2534 = vmatprep.subr.bf16.mxu1 %v3368_v24 }
  0x72   :  { %781 = vmatprep.mubr.f32.mxu0 %v3271_v0  ;;  %852 = vmatprep.mubr.f32.mxu1 %v3271_v0 }
  0x74   :  { %2504 = vmatpush1.bf16.msra.mxu0 %v3372_v28  ;;  %2536 = vmatpush1.bf16.msra.mxu1 %v3376_v32 }
  0x75   :  { %2506 = vmatprep.subr.bf16.mxu0 %v3380_v36  ;;  %2538 = vmatprep.subr.bf16.mxu1 %v3382_v37 }
  0x78   :  { %2508 = vmatpush1.bf16.msra.mxu0 %v3386_v41  ;;  %2540 = vmatpush1.bf16.msra.mxu1 %v3390_v45 }
  0x79   :  { %2510 = vmatprep.subr.bf16.mxu0 %v3394_v49  ;;  %2542 = vmatprep.subr.bf16.mxu1 %v3398_v53 }
  0x7c   :  { %2512 = vmatpush1.bf16.msra.mxu0 %v3402_v56  ;;  %2544 = vmatpush1.bf16.msra.mxu1 %v3406_v60 }
  0x7d   :  { %2514 = vmatprep.subr.bf16.mxu0 %v3410_v1  ;;  %2546 = vmatprep.subr.bf16.mxu1 %v3414_v4 }
  0x80   :  { %2516 = vmatpush1.bf16.msra.mxu0 %v3418_v7  ;;  %2548 = vmatpush1.bf16.msra.mxu1 %v3422_v12 }
  0x81   :  { %2518 = vmatprep.subr.bf16.mxu0 %v3426_v17  ;;  %2550 = vmatprep.subr.bf16.mxu1 %v3430_v21 }
  0x84   :  { %2520 = vmatpush1.bf16.msra.mxu0 %v3434_v26  ;;  %2552 = vmatpush1.bf16.msra.mxu1 %v3438_v30 }
  0x85   :  { %2522 = vmatprep.subr.bf16.mxu0 %v3442_v35  ;;  %2554 = vmatprep.subr.bf16.mxu1 %v3446_v40 }
  0x88   :  { %2524 = vmatpush1.bf16.msra.mxu0 %v3450_v44  ;;  %2556 = vmatpush1.bf16.msra.mxu1 %v3454_v48 }
  0x89   :  { %2526 = vmatprep.subr.bf16.mxu0 %v3458_v54  ;;  %2558 = vmatprep.subr.bf16.mxu1 %v3462_v58 }
  0x8c   :  { %2528 = vmatpush1.bf16.msra.mxu0 %v3466_v59  ;;  %2560 = vmatpush1.bf16.msra.mxu1 %v3470_v61 }
  0x8d   :  { %2562 = vmatprep.subr.bf16.mxu0 %v3353_v10  ;;  %2594 = vmatprep.subr.bf16.mxu1 %v3355_v11 }
 0x142   :  { %v541_v9 = vpop.f32.mrb[0].mxu0  ;;  %v612_v16 = vpop.f32.mrb[0].mxu1 }
 0x143   :  { %v2945_v14 = vadd.f32 %v541_v9, %v3517_v6  ;;  %v543_v18 = vpop.f32.mrb[1].mxu0  ;;  %v614_v10 = vpop.f32.mrb[1].mxu1  ;;  %v2961_v34 = vadd.f32 %v612_v16, %v3526_v31 }
 0x144   :  { %v2946_v20 = vadd.f32 %v543_v18, %v3519_v8  ;;  %v2962_v29 = vadd.f32 %v614_v10, %v3523_v25 }
 0x145   :  { %v2407_v22 = vmul.f32 -1.442695, %v2945_v14 }
 0x146   :  { %v2408_v11 = vmul.f32 -1.442695, %v2946_v20  ;;  %v2409_v33 = vmul.f32 -1.442695, %v2962_v29 }
 0x147   :  { %3017 = vpow2.f32 %v2407_v22 }
 0x148   :  { %3019 = vpow2.f32 %v2408_v11 }
 0x149   :  { %3021 = vpow2.f32 %v2409_v33 }
 0x14a   :  { %3023 = vtanh.f32 %v2961_v34 }
 0x151   :  { %v3018_v38 = vpop.eup %3017 }
 0x152   :  { %v3020_v39 = vpop.eup %3019  ;;  %v624_v42 = vadd.f32 1.0, %v3018_v38 }
 0x153   :  { %v630_v43 = vadd.f32 1.0, %v3020_v39  ;;  %v3022_v46 = vpop.eup %3021 }
 0x154   :  { %3025 = vrcp.f32 %v624_v42  ;;  %v3024_v47 = vpop.eup %3023  ;;  %v637_v55 = vadd.f32 1.0, %v3022_v46 }
 0x155   :  { %3027 = vrcp.f32 %v630_v43 }
 0x156   :  { %3029 = vrcp.f32 %v637_v55 }
 0x15e   :  { %v3026_v50 = vpop.eup %3025 }
 0x15f   :  { %v3028_v51 = vpop.eup %3027  ;;  %v641_v52 = vmul.f32 %v3026_v50, %v3024_v47  ;;  %v1140_v50 = vld [vmem:[#allocation3 + $0x8] sm:$0xff] }
 0x160   :  { %v640_v57 = vmul.f32 0.0, %v3028_v51  ;;  %v3030_v63 = vpop.eup %3029  ;;  %v1144_v51 = vld [vmem:[#allocation3 + $0x28] sm:$0xff] }
 0x161   :  { %v3574_v55 = vpack.c.bf16 %v1144_v51, %v1140_v50  ;;  %v1400_v50 = vld [vmem:[#allocation3 + $0x90] sm:$0xff] }
 0x162   :  { %v3529_v62 = vadd.f32 %v641_v52, %v640_v57  ;;  %v1142_v52 = vld [vmem:[#allocation3 + $0x18] sm:$0xff]  ;;  %v1404_v51 = vld [vmem:[#allocation3 + $0xb0] sm:$0xff] }
 0x163   :  { %v1146_v57 = vld [vmem:[#allocation3 + $0x38] sm:$0xff] }
 0x164   :  { %3031 = vtanh.f32 %v3529_v62 }
 0x16e   :  { %v3032_v2 = vpop.eup %3031 }
 0x16f   :  { %v644_v3 = vmul.f32 %v3032_v2, %v3030_v63  ;;  %v1143_v63 = vld [vmem:[#allocation3 + $0x20] sm:$0xff]  ;;  %v3576_v2 = vpack.c.bf16 %v1146_v57, %v1142_v52  ;;  %v3647_v52 = vpack.c.bf16 %v1404_v51, %v1400_v50  ;;  %v1407_v57 = vld [vmem:[#allocation3 + $0xc8] sm:$0xff]  ;;  %v1432_v50 = vld [vmem:[#allocation3 + $0x190] sm:$0xff] }
 0x171   :  { %645 = vst [vmem:[#allocation13] sm:$0xff] %v644_v3  ;;  %782 = vmatmul.mubr.f32.vlgmr.msra.gmra.mrb[2].mxu0 %v644_v3  ;;  %853 = vmatmul.mubr.f32.vlgmr.msra.gmra.mrb[2].mxu1 %v644_v3 }
 0x172   :  { %2564 = vmatpush1.bf16.msra.mxu0 %v3357_v15  ;;  %2596 = vmatpush1.bf16.msra.mxu1 %v3363_v19 }
 0x173   :  { %2566 = vmatprep.subr.bf16.mxu0 %v3366_v23  ;;  %2598 = vmatprep.subr.bf16.mxu1 %v3368_v24 }
 0x174   :  { %1024 = vmatprep.mubr.f32.mxu0 %v3271_v0  ;;  %1095 = vmatprep.mubr.f32.mxu1 %v3271_v0 }
 0x176   :  { %2568 = vmatpush1.bf16.msra.mxu0 %v3372_v28  ;;  %2600 = vmatpush1.bf16.msra.mxu1 %v3376_v32 }
 0x177   :  { %2570 = vmatprep.subr.bf16.mxu0 %v3380_v36  ;;  %2602 = vmatprep.subr.bf16.mxu1 %v3382_v37 }
 0x17a   :  { %2572 = vmatpush1.bf16.msra.mxu0 %v3386_v41  ;;  %2604 = vmatpush1.bf16.msra.mxu1 %v3390_v45 }
 0x17b   :  { %2574 = vmatprep.subr.bf16.mxu0 %v3394_v49  ;;  %2606 = vmatprep.subr.bf16.mxu1 %v3398_v53 }
 0x17e   :  { %2576 = vmatpush1.bf16.msra.mxu0 %v3402_v56  ;;  %2608 = vmatpush1.bf16.msra.mxu1 %v3406_v60 }
 0x17f   :  { %2578 = vmatprep.subr.bf16.mxu0 %v3410_v1  ;;  %2610 = vmatprep.subr.bf16.mxu1 %v3414_v4 }
 0x182   :  { %2580 = vmatpush1.bf16.msra.mxu0 %v3418_v7  ;;  %2612 = vmatpush1.bf16.msra.mxu1 %v3422_v12 }
 0x183   :  { %2582 = vmatprep.subr.bf16.mxu0 %v3426_v17  ;;  %2614 = vmatprep.subr.bf16.mxu1 %v3430_v21 }
 0x186   :  { %2584 = vmatpush1.bf16.msra.mxu0 %v3434_v26  ;;  %2616 = vmatpush1.bf16.msra.mxu1 %v3438_v30 }
 0x187   :  { %2586 = vmatprep.subr.bf16.mxu0 %v3442_v35  ;;  %2618 = vmatprep.subr.bf16.mxu1 %v3446_v40 }
 0x18a   :  { %2588 = vmatpush1.bf16.msra.mxu0 %v3450_v44  ;;  %2620 = vmatpush1.bf16.msra.mxu1 %v3454_v48 }
 0x18b   :  { %2590 = vmatprep.subr.bf16.mxu0 %v3458_v54  ;;  %2622 = vmatprep.subr.bf16.mxu1 %v3462_v58 }
 0x18e   :  { %2592 = vmatpush1.bf16.msra.mxu0 %v3466_v59  ;;  %2624 = vmatpush1.bf16.msra.mxu1 %v3470_v61 }
 0x18f   :  { %2626 = vmatprep.subr.bf16.mxu0 %v3574_v55  ;;  %2658 = vmatprep.subr.bf16.mxu1 %v3576_v2 }
 0x244   :  { %v783_v15 = vpop.f32.mrb[2].mxu0  ;;  %v854_v19 = vpop.f32.mrb[2].mxu1 }
 0x245   :  { %v2947_v23 = vadd.f32 %v783_v15, %v3517_v6  ;;  %v785_v24 = vpop.f32.mrb[3].mxu0  ;;  %v856_v28 = vpop.f32.mrb[3].mxu1  ;;  %v2963_v16 = vadd.f32 %v854_v19, %v3526_v31  ;;  %v1141_v15 = vld [vmem:[#allocation3 + $0x10] sm:$0xff] }
 0x246   :  { %v2948_v32 = vadd.f32 %v785_v24, %v3519_v8  ;;  %v2964_v13 = vadd.f32 %v856_v28, %v3523_v25  ;;  %v1145_v19 = vld [vmem:[#allocation3 + $0x30] sm:$0xff]  ;;  %v1148_v24 = vld [vmem:[#allocation3 + $0x48] sm:$0xff] }
 0x247   :  { %v2410_v5 = vmul.f32 -1.442695, %v2947_v23  ;;  %v3581_v23 = vpack.c.bf16 %v1145_v19, %v1141_v15  ;;  %v1152_v28 = vld [vmem:[#allocation3 + $0x68] sm:$0xff]  ;;  %v1413_v19 = vld [vmem:[#allocation3 + $0xf8] sm:$0xff] }
 0x248   :  { %v2411_v9 = vmul.f32 -1.442695, %v2948_v32  ;;  %v2412_v14 = vmul.f32 -1.442695, %v2964_v13  ;;  %v1150_v32 = vld [vmem:[#allocation3 + $0x58] sm:$0xff]  ;;  %v1147_v13 = vld [vmem:[#allocation3 + $0x40] sm:$0xff] }
 0x249   :  { %3033 = vpow2.f32 %v2410_v5  ;;  %v3586_v5 = vpack.c.bf16 %v1152_v28, %v1148_v24  ;;  %v1406_v24 = vld [vmem:[#allocation3 + $0xc0] sm:$0xff] }
 0x24a   :  { %3035 = vpow2.f32 %v2411_v9  ;;  %v1154_v9 = vld [vmem:[#allocation3 + $0x78] sm:$0xff]  ;;  %v1410_v28 = vld [vmem:[#allocation3 + $0xe0] sm:$0xff] }
 0x24b   :  { %3037 = vpow2.f32 %v2412_v14  ;;  %v1151_v14 = vld [vmem:[#allocation3 + $0x60] sm:$0xff] }
 0x24c   :  { %3039 = vtanh.f32 %v2963_v16  ;;  %v3588_v16 = vpack.c.bf16 %v1154_v9, %v1150_v32  ;;  %v3656_v9 = vpack.c.bf16 %v1410_v28, %v1406_v24  ;;  %v1441_v28 = vld [vmem:[#allocation3 + $0x1d8] sm:$0xff] }
 0x253   :  { %v3034_v18 = vpop.eup %3033 }
 0x254   :  { %v3036_v20 = vpop.eup %3035  ;;  %v866_v10 = vadd.f32 1.0, %v3034_v18  ;;  %v3590_v18 = vpack.c.bf16 %v1151_v14, %v1147_v13  ;;  %v1408_v13 = vld [vmem:[#allocation3 + $0xd0] sm:$0xff] }
 0x255   :  { %v872_v22 = vadd.f32 1.0, %v3036_v20  ;;  %v3038_v11 = vpop.eup %3037  ;;  %v1149_v20 = vld [vmem:[#allocation3 + $0x50] sm:$0xff] }
 0x256   :  { %3041 = vrcp.f32 %v866_v10  ;;  %v3040_v27 = vpop.eup %3039  ;;  %v879_v38 = vadd.f32 1.0, %v3038_v11  ;;  %v1153_v10 = vld [vmem:[#allocation3 + $0x70] sm:$0xff] }
 0x257   :  { %3043 = vrcp.f32 %v872_v22  ;;  %v3593_v22 = vpack.c.bf16 %v1153_v10, %v1149_v20  ;;  %v1412_v14 = vld [vmem:[#allocation3 + $0xf0] sm:$0xff]  ;;  %v1415_v10 = vld [vmem:[#allocation3 + $0x108] sm:$0xff] }
 0x258   :  { %3045 = vrcp.f32 %v879_v38  ;;  %v3659_v20 = vpack.c.bf16 %v1412_v14, %v1408_v13  ;;  %v1445_v13 = vld [vmem:[#allocation3 + $0x1f8] sm:$0xff]  ;;  %v1438_v14 = vld [vmem:[#allocation3 + $0x1c0] sm:$0xff] }
 0x260   :  { %v3042_v29 = vpop.eup %3041 }
 0x261   :  { %v3044_v33 = vpop.eup %3043  ;;  %v883_v34 = vmul.f32 %v3042_v29, %v3040_v27  ;;  %v1399_v29 = vld [vmem:[#allocation3 + $0x88] sm:$0xff] }
 0x262   :  { %v882_v39 = vmul.f32 %v3044_v33, %v3529_v62  ;;  %v3046_v43 = vpop.eup %3045  ;;  %v1139_v62 = vld [vmem:[#allocation3] sm:$0xff]  ;;  %v1403_v33 = vld [vmem:[#allocation3 + $0xa8] sm:$0xff] }
 0x263   :  { %v3578_v3 = vpack.c.bf16 %v1143_v63, %v1139_v62  ;;  %v3640_v38 = vpack.c.bf16 %v1403_v33, %v1399_v29  ;;  %v1411_v62 = vld [vmem:[#allocation3 + $0xe8] sm:$0xff]  ;;  %v1409_v63 = vld [vmem:[#allocation3 + $0xd8] sm:$0xff] }
 0x264   :  { %v3569_v42 = vadd.f32 %v883_v34, %v882_v39  ;;  %v1401_v34 = vld [vmem:[#allocation3 + $0x98] sm:$0xff]  ;;  %v3652_v15 = vpack.c.bf16 %v1411_v62, %v1407_v57  ;;  %v3654_v32 = vpack.c.bf16 %v1413_v19, %v1409_v63  ;;  %v1436_v57 = vld [vmem:[#allocation3 + $0x1b0] sm:$0xff]  ;;  %v1439_v62 = vld [vmem:[#allocation3 + $0x1c8] sm:$0xff] }
 0x265   :  { %v1405_v39 = vld [vmem:[#allocation3 + $0xb8] sm:$0xff]  ;;  %v1443_v63 = vld [vmem:[#allocation3 + $0x1e8] sm:$0xff]  ;;  %v3695_v19 = vpack.c.bf16 %v1436_v57, %v1432_v50 }
 0x266   :  { %3047 = vtanh.f32 %v3569_v42  ;;  %v1433_v29 = vld [vmem:[#allocation3 + $0x198] sm:$0xff]  ;;  %v3697_v24 = vpack.c.bf16 %v1443_v63, %v1439_v62 }
 0x267   :  { %v1437_v33 = vld [vmem:[#allocation3 + $0x1b8] sm:$0xff] }
 0x270   :  { %v3048_v46 = vpop.eup %3047 }
 0x271   :  { %v886_v47 = vmul.f32 %v3048_v46, %v3046_v43  ;;  %v1402_v43 = vld [vmem:[#allocation3 + $0xa0] sm:$0xff]  ;;  %v3642_v46 = vpack.c.bf16 %v1405_v39, %v1401_v34  ;;  %v3688_v39 = vpack.c.bf16 %v1437_v33, %v1433_v29 }
 0x273   :  { %888 = vst [vmem:[#allocation13 + $0x8] sm:$0xff] %v886_v47  ;;  %1025 = vmatmul.mubr.f32.vlgmr.msra.gmra.mrb[4].mxu0 %v886_v47  ;;  %1096 = vmatmul.mubr.f32.vlgmr.msra.gmra.mrb[4].mxu1 %v886_v47 }
 0x274   :  { %1267 = vmatprep.mubr.f32.mxu0 %v3271_v0  ;;  %1338 = vmatprep.mubr.f32.mxu1 %v3271_v0 }
 0x275   :  { %2628 = vmatpush1.bf16.msra.mxu0 %v3578_v3  ;;  %2660 = vmatpush1.bf16.msra.mxu1 %v3581_v23 }
 0x276   :  { %2630 = vmatprep.subr.bf16.mxu0 %v3586_v5  ;;  %2662 = vmatprep.subr.bf16.mxu1 %v3588_v16 }
 0x279   :  { %2632 = vmatpush1.bf16.msra.mxu0 %v3590_v18  ;;  %2664 = vmatpush1.bf16.msra.mxu1 %v3593_v22 }
 0x27a   :  { %2634 = vmatprep.subr.bf16.mxu0 %v3380_v36  ;;  %2666 = vmatprep.subr.bf16.mxu1 %v3382_v37 }
 0x27d   :  { %2636 = vmatpush1.bf16.msra.mxu0 %v3386_v41  ;;  %2668 = vmatpush1.bf16.msra.mxu1 %v3390_v45 }
 0x27e   :  { %2638 = vmatprep.subr.bf16.mxu0 %v3394_v49  ;;  %2670 = vmatprep.subr.bf16.mxu1 %v3398_v53 }
 0x281   :  { %2640 = vmatpush1.bf16.msra.mxu0 %v3402_v56  ;;  %2672 = vmatpush1.bf16.msra.mxu1 %v3406_v60 }
 0x282   :  { %2642 = vmatprep.subr.bf16.mxu0 %v3410_v1  ;;  %2674 = vmatprep.subr.bf16.mxu1 %v3414_v4 }
 0x285   :  { %2644 = vmatpush1.bf16.msra.mxu0 %v3418_v7  ;;  %2676 = vmatpush1.bf16.msra.mxu1 %v3422_v12 }
 0x286   :  { %2646 = vmatprep.subr.bf16.mxu0 %v3426_v17  ;;  %2678 = vmatprep.subr.bf16.mxu1 %v3430_v21 }
 0x289   :  { %2648 = vmatpush1.bf16.msra.mxu0 %v3434_v26  ;;  %2680 = vmatpush1.bf16.msra.mxu1 %v3438_v30 }
 0x28a   :  { %2650 = vmatprep.subr.bf16.mxu0 %v3442_v35  ;;  %2682 = vmatprep.subr.bf16.mxu1 %v3446_v40 }
 0x28d   :  { %2652 = vmatpush1.bf16.msra.mxu0 %v3450_v44  ;;  %2684 = vmatpush1.bf16.msra.mxu1 %v3454_v48 }
 0x28e   :  { %2654 = vmatprep.subr.bf16.mxu0 %v3458_v54  ;;  %2686 = vmatprep.subr.bf16.mxu1 %v3462_v58 }
 0x291   :  { %2656 = vmatpush1.bf16.msra.mxu0 %v3466_v59  ;;  %2688 = vmatpush1.bf16.msra.mxu1 %v3470_v61 }
 0x292   :  { %2690 = vmatprep.subr.bf16.mxu0 %v3574_v55  ;;  %2722 = vmatprep.subr.bf16.mxu1 %v3576_v2 }
 0x346   :  { %v1026_v36 = vpop.f32.mrb[4].mxu0  ;;  %v1097_v37 = vpop.f32.mrb[4].mxu1 }
 0x347   :  { %v2949_v41 = vadd.f32 %v1026_v36, %v3517_v6  ;;  %v1028_v45 = vpop.f32.mrb[5].mxu0  ;;  %v1099_v49 = vpop.f32.mrb[5].mxu1  ;;  %v2965_v7 = vadd.f32 %v1097_v37, %v3526_v31  ;;  %v1419_v36 = vld [vmem:[#allocation3 + $0x128] sm:$0xff]  ;;  %v1417_v37 = vld [vmem:[#allocation3 + $0x118] sm:$0xff] }
 0x348   :  { %v2950_v53 = vadd.f32 %v1028_v45, %v3519_v8  ;;  %v2966_v1 = vadd.f32 %v1099_v49, %v3523_v25  ;;  %v1421_v45 = vld [vmem:[#allocation3 + $0x138] sm:$0xff]  ;;  %v1414_v49 = vld [vmem:[#allocation3 + $0x100] sm:$0xff] }
 0x349   :  { %v2413_v56 = vmul.f32 -1.442695, %v2949_v41  ;;  %v3664_v41 = vpack.c.bf16 %v1419_v36, %v1415_v10  ;;  %v3700_v10 = vpack.c.bf16 %v1445_v13, %v1441_v28  ;;  %v1442_v36 = vld [vmem:[#allocation3 + $0x1e0] sm:$0xff] }
 0x34a   :  { %v2414_v60 = vmul.f32 -1.442695, %v2950_v53  ;;  %v2415_v4 = vmul.f32 -1.442695, %v2966_v1  ;;  %v1418_v53 = vld [vmem:[#allocation3 + $0x120] sm:$0xff]  ;;  %v1416_v1 = vld [vmem:[#allocation3 + $0x110] sm:$0xff] }
 0x34b   :  { %3049 = vpow2.f32 %v2413_v56  ;;  %v3666_v56 = vpack.c.bf16 %v1421_v45, %v1417_v37  ;;  %v1440_v37 = vld [vmem:[#allocation3 + $0x1d0] sm:$0xff] }
 0x34c   :  { %3051 = vpow2.f32 %v2414_v60  ;;  %v3668_v60 = vpack.c.bf16 %v1418_v53, %v1414_v49  ;;  %v1444_v45 = vld [vmem:[#allocation3 + $0x1f0] sm:$0xff]  ;;  %v3703_v49 = vpack.c.bf16 %v1442_v36, %v1438_v14 }
 0x34d   :  { %3053 = vpow2.f32 %v2415_v4  ;;  %v1420_v4 = vld [vmem:[#allocation3 + $0x130] sm:$0xff]  ;;  %v3707_v53 = vpack.c.bf16 %v1444_v45, %v1440_v37 }
 0x34e   :  { %3055 = vtanh.f32 %v2965_v7  ;;  %v3671_v7 = vpack.c.bf16 %v1420_v4, %v1416_v1 }
 0x355   :  { %v3050_v12 = vpop.eup %3049 }
 0x356   :  { %v3052_v17 = vpop.eup %3051  ;;  %v1109_v21 = vadd.f32 1.0, %v3050_v12  ;;  %v1423_v12 = vld [vmem:[#allocation3 + $0x148] sm:$0xff] }
 0x357   :  { %v1115_v26 = vadd.f32 1.0, %v3052_v17  ;;  %v3054_v30 = vpop.eup %3053  ;;  %v1427_v17 = vld [vmem:[#allocation3 + $0x168] sm:$0xff] }
 0x358   :  { %3057 = vrcp.f32 %v1109_v21  ;;  %v3056_v35 = vpop.eup %3055  ;;  %v1122_v54 = vadd.f32 1.0, %v3054_v30  ;;  %v1425_v21 = vld [vmem:[#allocation3 + $0x158] sm:$0xff] }
 0x359   :  { %3059 = vrcp.f32 %v1115_v26  ;;  %v3675_v26 = vpack.c.bf16 %v1427_v17, %v1423_v12  ;;  %v1429_v30 = vld [vmem:[#allocation3 + $0x178] sm:$0xff] }
 0x35a   :  { %3061 = vrcp.f32 %v1122_v54  ;;  %v1424_v54 = vld [vmem:[#allocation3 + $0x150] sm:$0xff] }
 0x362   :  { %v3058_v40 = vpop.eup %3057 }
 0x363   :  { %v3060_v44 = vpop.eup %3059  ;;  %v1126_v48 = vmul.f32 %v3058_v40, %v3056_v35  ;;  %v1422_v35 = vld [vmem:[#allocation3 + $0x140] sm:$0xff] }
 0x364   :  { %v1125_v58 = vmul.f32 %v3060_v44, %v3569_v42  ;;  %v3062_v61 = vpop.eup %3061  ;;  %v1398_v42 = vld [vmem:[#allocation3 + $0x80] sm:$0xff]  ;;  %v3678_v44 = vpack.c.bf16 %v1429_v30, %v1425_v21 }
 0x365   :  { %v3644_v47 = vpack.c.bf16 %v1402_v43, %v1398_v42  ;;  %v1426_v40 = vld [vmem:[#allocation3 + $0x160] sm:$0xff] }
 0x366   :  { %v3629_v59 = vadd.f32 %v1126_v48, %v1125_v58  ;;  %v3680_v48 = vpack.c.bf16 %v1426_v40, %v1422_v35  ;;  %v1428_v58 = vld [vmem:[#allocation3 + $0x170] sm:$0xff]  ;;  %v1430_v42 = vld [vmem:[#allocation3 + $0x180] sm:$0xff] }
 0x367   :  { %v1434_v43 = vld [vmem:[#allocation3 + $0x1a0] sm:$0xff] }
 0x368   :  { %3063 = vtanh.f32 %v3629_v59  ;;  %v3691_v51 = vpack.c.bf16 %v1434_v43, %v1430_v42 }
 0x372   :  { %v3064_v11 = vpop.eup %3063 }
 0x373   :  { %v1129_v27 = vmul.f32 %v3064_v11, %v3062_v61  ;;  %v1431_v61 = vld [vmem:[#allocation3 + $0x188] sm:$0xff]  ;;  %v3683_v11 = vpack.c.bf16 %v1428_v58, %v1424_v54 }
 0x375   :  { %1131 = vst [vmem:[#allocation13 + $0x10] sm:$0xff] %v1129_v27  ;;  %1268 = vmatmul.mubr.f32.vlgmr.msra.gmra.mrb[6].mxu0 %v1129_v27  ;;  %1339 = vmatmul.mubr.f32.vlgmr.msra.gmra.mrb[6].mxu1 %v1129_v27  ;;  %v1435_v27 = vld [vmem:[#allocation3 + $0x1a8] sm:$0xff] }
 0x376   :  { %2692 = vmatpush1.bf16.msra.mxu0 %v3578_v3  ;;  %2724 = vmatpush1.bf16.msra.mxu1 %v3581_v23  ;;  %v3686_v34 = vpack.c.bf16 %v1435_v27, %v1431_v61 }
 0x377   :  { %2694 = vmatprep.subr.bf16.mxu0 %v3586_v5  ;;  %2726 = vmatprep.subr.bf16.mxu1 %v3588_v16 }
 0x378   :  { %1510 = vmatprep.mubr.f32.mxu0 %v3271_v0  ;;  %1581 = vmatprep.mubr.f32.mxu1 %v3271_v0 }
 0x37a   :  { %2696 = vmatpush1.bf16.msra.mxu0 %v3590_v18  ;;  %2728 = vmatpush1.bf16.msra.mxu1 %v3593_v22 }
 0x37b   :  { %2698 = vmatprep.subr.bf16.mxu0 %v3640_v38  ;;  %2730 = vmatprep.subr.bf16.mxu1 %v3642_v46 }
 0x37e   :  { %2700 = vmatpush1.bf16.msra.mxu0 %v3644_v47  ;;  %2732 = vmatpush1.bf16.msra.mxu1 %v3647_v52 }
 0x37f   :  { %2702 = vmatprep.subr.bf16.mxu0 %v3652_v15  ;;  %2734 = vmatprep.subr.bf16.mxu1 %v3654_v32 }
 0x382   :  { %2704 = vmatpush1.bf16.msra.mxu0 %v3656_v9  ;;  %2736 = vmatpush1.bf16.msra.mxu1 %v3659_v20 }
 0x383   :  { %2706 = vmatprep.subr.bf16.mxu0 %v3664_v41  ;;  %2738 = vmatprep.subr.bf16.mxu1 %v3666_v56 }
 0x386   :  { %2708 = vmatpush1.bf16.msra.mxu0 %v3668_v60  ;;  %2740 = vmatpush1.bf16.msra.mxu1 %v3671_v7 }
 0x387   :  { %2710 = vmatprep.subr.bf16.mxu0 %v3675_v26  ;;  %2742 = vmatprep.subr.bf16.mxu1 %v3678_v44 }
 0x38a   :  { %2712 = vmatpush1.bf16.msra.mxu0 %v3680_v48  ;;  %2744 = vmatpush1.bf16.msra.mxu1 %v3683_v11 }
 0x38b   :  { %2714 = vmatprep.subr.bf16.mxu0 %v3686_v34  ;;  %2746 = vmatprep.subr.bf16.mxu1 %v3688_v39 }
 0x38e   :  { %2716 = vmatpush1.bf16.msra.mxu0 %v3691_v51  ;;  %2748 = vmatpush1.bf16.msra.mxu1 %v3695_v19 }
 0x38f   :  { %2718 = vmatprep.subr.bf16.mxu0 %v3697_v24  ;;  %2750 = vmatprep.subr.bf16.mxu1 %v3700_v10 }
 0x392   :  { %2720 = vmatpush1.bf16.msra.mxu0 %v3703_v49  ;;  %2752 = vmatpush1.bf16.msra.mxu1 %v3707_v53 }
 0x393   :  { %2754 = vmatprep.subr.bf16.mxu0 %v3574_v55  ;;  %2786 = vmatprep.subr.bf16.mxu1 %v3576_v2 }
 0x448   :  { %v1269_v1 = vpop.f32.mrb[6].mxu0  ;;  %v1340_v4 = vpop.f32.mrb[6].mxu1 }
 0x449   :  { %v2951_v12 = vadd.f32 %v1269_v1, %v3517_v6  ;;  %v1271_v17 = vpop.f32.mrb[7].mxu0  ;;  %v1342_v21 = vpop.f32.mrb[7].mxu1  ;;  %v2967_v61 = vadd.f32 %v1340_v4, %v3526_v31 }
 0x44a   :  { %v2952_v30 = vadd.f32 %v1271_v17, %v3519_v8  ;;  %v2968_v54 = vadd.f32 %v1342_v21, %v3523_v25 }
 0x44b   :  { %v2416_v35 = vmul.f32 -1.442695, %v2951_v12 }
 0x44c   :  { %v2417_v40 = vmul.f32 -1.442695, %v2952_v30  ;;  %v2418_v58 = vmul.f32 -1.442695, %v2968_v54 }
 0x44d   :  { %3065 = vpow2.f32 %v2416_v35 }
 0x44e   :  { %3067 = vpow2.f32 %v2417_v40 }
 0x44f   :  { %3069 = vpow2.f32 %v2418_v58 }
 0x450   :  { %3071 = vtanh.f32 %v2967_v61 }
 0x457   :  { %v3066_v27 = vpop.eup %3065 }
 0x458   :  { %v3068_v29 = vpop.eup %3067  ;;  %v1352_v33 = vadd.f32 1.0, %v3066_v27 }
 0x459   :  { %v1358_v42 = vadd.f32 1.0, %v3068_v29  ;;  %v3070_v43 = vpop.eup %3069 }
 0x45a   :  { %3073 = vrcp.f32 %v1352_v33  ;;  %v3072_v50 = vpop.eup %3071  ;;  %v1365_v28 = vadd.f32 1.0, %v3070_v43 }
 0x45b   :  { %3075 = vrcp.f32 %v1358_v42 }
 0x45c   :  { %3077 = vrcp.f32 %v1365_v28 }
 0x464   :  { %v3074_v57 = vpop.eup %3073 }
 0x465   :  { %v3076_v62 = vpop.eup %3075  ;;  %v1369_v63 = vmul.f32 %v3074_v57, %v3072_v50 }
 0x466   :  { %v1368_v13 = vmul.f32 %v3076_v62, %v3629_v59  ;;  %v3078_v36 = vpop.eup %3077 }
 0x468   :  { %v3719_v14 = vadd.f32 %v1369_v63, %v1368_v13 }
 0x46a   :  { %3079 = vtanh.f32 %v3719_v14 }
 0x474   :  { %v3080_v37 = vpop.eup %3079 }
 0x475   :  { %v1372_v45 = vmul.f32 %v3080_v37, %v3078_v36 }
 0x477   :  { %1374 = vst [vmem:[#allocation13 + $0x18] sm:$0xff] %v1372_v45  ;;  %1511 = vmatmul.mubr.f32.vlgmr.msra.gmra.mrb[8].mxu0 %v1372_v45  ;;  %1582 = vmatmul.mubr.f32.vlgmr.msra.gmra.mrb[8].mxu1 %v1372_v45 }
 0x478   :  { %2756 = vmatpush1.bf16.msra.mxu0 %v3578_v3  ;;  %2788 = vmatpush1.bf16.msra.mxu1 %v3581_v23 }
 0x479   :  { %2758 = vmatprep.subr.bf16.mxu0 %v3586_v5  ;;  %2790 = vmatprep.subr.bf16.mxu1 %v3588_v16 }
 0x47a   :  { %1753 = vmatprep.mubr.f32.mxu0 %v3271_v0  ;;  %1824 = vmatprep.mubr.f32.mxu1 %v3271_v0 }
 0x47c   :  { %2760 = vmatpush1.bf16.msra.mxu0 %v3590_v18  ;;  %2792 = vmatpush1.bf16.msra.mxu1 %v3593_v22 }
 0x47d   :  { %2762 = vmatprep.subr.bf16.mxu0 %v3640_v38  ;;  %2794 = vmatprep.subr.bf16.mxu1 %v3642_v46 }
 0x480   :  { %2764 = vmatpush1.bf16.msra.mxu0 %v3644_v47  ;;  %2796 = vmatpush1.bf16.msra.mxu1 %v3647_v52 }
 0x481   :  { %2766 = vmatprep.subr.bf16.mxu0 %v3652_v15  ;;  %2798 = vmatprep.subr.bf16.mxu1 %v3654_v32 }
 0x484   :  { %2768 = vmatpush1.bf16.msra.mxu0 %v3656_v9  ;;  %2800 = vmatpush1.bf16.msra.mxu1 %v3659_v20 }
 0x485   :  { %2770 = vmatprep.subr.bf16.mxu0 %v3664_v41  ;;  %2802 = vmatprep.subr.bf16.mxu1 %v3666_v56 }
 0x488   :  { %2772 = vmatpush1.bf16.msra.mxu0 %v3668_v60  ;;  %2804 = vmatpush1.bf16.msra.mxu1 %v3671_v7 }
 0x489   :  { %2774 = vmatprep.subr.bf16.mxu0 %v3675_v26  ;;  %2806 = vmatprep.subr.bf16.mxu1 %v3678_v44 }
 0x48c   :  { %2776 = vmatpush1.bf16.msra.mxu0 %v3680_v48  ;;  %2808 = vmatpush1.bf16.msra.mxu1 %v3683_v11 }
 0x48d   :  { %2778 = vmatprep.subr.bf16.mxu0 %v3686_v34  ;;  %2810 = vmatprep.subr.bf16.mxu1 %v3688_v39 }
 0x490   :  { %2780 = vmatpush1.bf16.msra.mxu0 %v3691_v51  ;;  %2812 = vmatpush1.bf16.msra.mxu1 %v3695_v19 }
 0x491   :  { %2782 = vmatprep.subr.bf16.mxu0 %v3697_v24  ;;  %2814 = vmatprep.subr.bf16.mxu1 %v3700_v10 }
 0x494   :  { %2784 = vmatpush1.bf16.msra.mxu0 %v3703_v49  ;;  %2816 = vmatpush1.bf16.msra.mxu1 %v3707_v53 }
 0x495   :  { %2818 = vmatprep.subr.bf16.mxu0 %v3574_v55  ;;  %2850 = vmatprep.subr.bf16.mxu1 %v3576_v2 }
 0x54a   :  { %v1512_v59 = vpop.f32.mrb[8].mxu0  ;;  %v1583_v1 = vpop.f32.mrb[8].mxu1 }
 0x54b   :  { %v2953_v4 = vadd.f32 %v1512_v59, %v3517_v6  ;;  %v1514_v12 = vpop.f32.mrb[9].mxu0  ;;  %v1585_v17 = vpop.f32.mrb[9].mxu1  ;;  %v2969_v58 = vadd.f32 %v1583_v1, %v3526_v31 }
 0x54c   :  { %v2954_v21 = vadd.f32 %v1514_v12, %v3519_v8  ;;  %v2970_v40 = vadd.f32 %v1585_v17, %v3523_v25 }
 0x54d   :  { %v2419_v30 = vmul.f32 -1.442695, %v2953_v4 }
 0x54e   :  { %v2420_v35 = vmul.f32 -1.442695, %v2954_v21  ;;  %v2421_v54 = vmul.f32 -1.442695, %v2970_v40 }
 0x54f   :  { %3081 = vpow2.f32 %v2419_v30 }
 0x550   :  { %3083 = vpow2.f32 %v2420_v35 }
 0x551   :  { %3085 = vpow2.f32 %v2421_v54 }
 0x552   :  { %3087 = vtanh.f32 %v2969_v58 }
 0x559   :  { %v3082_v55 = vpop.eup %3081 }
 0x55a   :  { %v3084_v61 = vpop.eup %3083  ;;  %v1595_v2 = vadd.f32 1.0, %v3082_v55 }
 0x55b   :  { %v1601_v27 = vadd.f32 1.0, %v3084_v61  ;;  %v3086_v29 = vpop.eup %3085 }
 0x55c   :  { %3089 = vrcp.f32 %v1595_v2  ;;  %v3088_v33 = vpop.eup %3087  ;;  %v1608_v57 = vadd.f32 1.0, %v3086_v29 }
 0x55d   :  { %3091 = vrcp.f32 %v1601_v27 }
 0x55e   :  { %3093 = vrcp.f32 %v1608_v57 }
 0x566   :  { %v3090_v42 = vpop.eup %3089 }
 0x567   :  { %v3092_v43 = vpop.eup %3091  ;;  %v1612_v50 = vmul.f32 %v3090_v42, %v3088_v33  ;;  %v2112_v42 = vld [vmem:[#allocation3 + $0x8] sm:$0xff] }
 0x568   :  { %v1611_v62 = vmul.f32 %v3092_v43, %v3719_v14  ;;  %v3094_v28 = vpop.eup %3093  ;;  %v2116_v43 = vld [vmem:[#allocation3 + $0x28] sm:$0xff] }
 0x569   :  { %v2881_v57 = vpack.c.bf16 %v2116_v43, %v2112_v42 }
 0x56a   :  { %v3761_v63 = vadd.f32 %v1612_v50, %v1611_v62  ;;  %v2114_v50 = vld [vmem:[#allocation3 + $0x18] sm:$0xff] }
 0x56b   :  { %v2118_v62 = vld [vmem:[#allocation3 + $0x38] sm:$0xff] }
 0x56c   :  { %3095 = vtanh.f32 %v3761_v63 }
 0x576   :  { %v3096_v13 = vpop.eup %3095 }
 0x577   :  { %v1615_v36 = vmul.f32 %v3096_v13, %v3094_v28  ;;  %v2115_v28 = vld [vmem:[#allocation3 + $0x20] sm:$0xff]  ;;  %v2913_v13 = vpack.c.bf16 %v2118_v62, %v2114_v50 }
 0x579   :  { %1617 = vst [vmem:[#allocation13 + $0x20] sm:$0xff] %v1615_v36  ;;  %1754 = vmatmul.mubr.f32.vlgmr.msra.gmra.mrb[10].mxu0 %v1615_v36  ;;  %1825 = vmatmul.mubr.f32.vlgmr.msra.gmra.mrb[10].mxu1 %v1615_v36 }
 0x57a   :  { %2820 = vmatpush1.bf16.msra.mxu0 %v3578_v3  ;;  %2852 = vmatpush1.bf16.msra.mxu1 %v3581_v23 }
 0x57b   :  { %2822 = vmatprep.subr.bf16.mxu0 %v3586_v5  ;;  %2854 = vmatprep.subr.bf16.mxu1 %v3588_v16 }
 0x57c   :  { %1996 = vmatprep.mubr.f32.mxu0 %v3271_v0  ;;  %2067 = vmatprep.mubr.f32.mxu1 %v3271_v0 }
 0x57e   :  { %2824 = vmatpush1.bf16.msra.mxu0 %v3590_v18  ;;  %2856 = vmatpush1.bf16.msra.mxu1 %v3593_v22 }
 0x57f   :  { %2826 = vmatprep.subr.bf16.mxu0 %v3640_v38  ;;  %2858 = vmatprep.subr.bf16.mxu1 %v3642_v46 }
 0x582   :  { %2828 = vmatpush1.bf16.msra.mxu0 %v3644_v47  ;;  %2860 = vmatpush1.bf16.msra.mxu1 %v3647_v52 }
 0x583   :  { %2830 = vmatprep.subr.bf16.mxu0 %v3652_v15  ;;  %2862 = vmatprep.subr.bf16.mxu1 %v3654_v32 }
 0x586   :  { %2832 = vmatpush1.bf16.msra.mxu0 %v3656_v9  ;;  %2864 = vmatpush1.bf16.msra.mxu1 %v3659_v20 }
 0x587   :  { %2834 = vmatprep.subr.bf16.mxu0 %v3664_v41  ;;  %2866 = vmatprep.subr.bf16.mxu1 %v3666_v56 }
 0x58a   :  { %2836 = vmatpush1.bf16.msra.mxu0 %v3668_v60  ;;  %2868 = vmatpush1.bf16.msra.mxu1 %v3671_v7 }
 0x58b   :  { %2838 = vmatprep.subr.bf16.mxu0 %v3675_v26  ;;  %2870 = vmatprep.subr.bf16.mxu1 %v3678_v44 }
 0x58e   :  { %2840 = vmatpush1.bf16.msra.mxu0 %v3680_v48  ;;  %2872 = vmatpush1.bf16.msra.mxu1 %v3683_v11 }
 0x58f   :  { %2842 = vmatprep.subr.bf16.mxu0 %v3686_v34  ;;  %2874 = vmatprep.subr.bf16.mxu1 %v3688_v39 }
 0x592   :  { %2844 = vmatpush1.bf16.msra.mxu0 %v3691_v51  ;;  %2876 = vmatpush1.bf16.msra.mxu1 %v3695_v19 }
 0x593   :  { %2846 = vmatprep.subr.bf16.mxu0 %v3697_v24  ;;  %2878 = vmatprep.subr.bf16.mxu1 %v3700_v10 }
 0x596   :  { %2848 = vmatpush1.bf16.msra.mxu0 %v3703_v49  ;;  %2880 = vmatpush1.bf16.msra.mxu1 %v3707_v53 }
 0x597   :  { %2882 = vmatprep.subr.bf16.mxu0 %v2881_v57  ;;  %2914 = vmatprep.subr.bf16.mxu1 %v2913_v13 }
 0x64c   :  { %v1755_v3 = vpop.f32.mrb[10].mxu0  ;;  %v1826_v23 = vpop.f32.mrb[10].mxu1 }
 0x64d   :  { %v2955_v5 = vadd.f32 %v1755_v3, %v3517_v6  ;;  %v1757_v16 = vpop.f32.mrb[11].mxu0  ;;  %v1828_v18 = vpop.f32.mrb[11].mxu1  ;;  %v2971_v1 = vadd.f32 %v1826_v23, %v3526_v31  ;;  %v2113_v3 = vld [vmem:[#allocation3 + $0x10] sm:$0xff] }
 0x64e   :  { %v2956_v22 = vadd.f32 %v1757_v16, %v3519_v8  ;;  %v2972_v45 = vadd.f32 %v1828_v18, %v3523_v25  ;;  %v2117_v23 = vld [vmem:[#allocation3 + $0x30] sm:$0xff]  ;;  %v2120_v16 = vld [vmem:[#allocation3 + $0x48] sm:$0xff] }
 0x64f   :  { %v2422_v14 = vmul.f32 -1.442695, %v2955_v5  ;;  %v2915_v5 = vpack.c.bf16 %v2117_v23, %v2113_v3  ;;  %v2124_v18 = vld [vmem:[#allocation3 + $0x68] sm:$0xff] }
 0x650   :  { %v2423_v37 = vmul.f32 -1.442695, %v2956_v22  ;;  %v2424_v59 = vmul.f32 -1.442695, %v2972_v45  ;;  %v2122_v22 = vld [vmem:[#allocation3 + $0x58] sm:$0xff]  ;;  %v2123_v45 = vld [vmem:[#allocation3 + $0x60] sm:$0xff] }
 0x651   :  { %3097 = vpow2.f32 %v2422_v14  ;;  %v2126_v14 = vld [vmem:[#allocation3 + $0x78] sm:$0xff] }
 0x652   :  { %3099 = vpow2.f32 %v2423_v37  ;;  %v2119_v37 = vld [vmem:[#allocation3 + $0x40] sm:$0xff] }
 0x653   :  { %3101 = vpow2.f32 %v2424_v59  ;;  %v2917_v59 = vpack.c.bf16 %v2126_v14, %v2122_v22 }
 0x654   :  { %3103 = vtanh.f32 %v2971_v1  ;;  %v2887_v1 = vpack.c.bf16 %v2123_v45, %v2119_v37 }
 0x65b   :  { %v3098_v4 = vpop.eup %3097 }
 0x65c   :  { %v3100_v12 = vpop.eup %3099  ;;  %v1838_v17 = vadd.f32 1.0, %v3098_v4  ;;  %v2121_v4 = vld [vmem:[#allocation3 + $0x50] sm:$0xff] }
 0x65d   :  { %v1844_v21 = vadd.f32 1.0, %v3100_v12  ;;  %v3102_v30 = vpop.eup %3101  ;;  %v2125_v12 = vld [vmem:[#allocation3 + $0x70] sm:$0xff] }
 0x65e   :  { %3105 = vrcp.f32 %v1838_v17  ;;  %v3104_v35 = vpop.eup %3103  ;;  %v1851_v55 = vadd.f32 1.0, %v3102_v30  ;;  %v2919_v17 = vpack.c.bf16 %v2125_v12, %v2121_v4 }
 0x65f   :  { %3107 = vrcp.f32 %v1844_v21 }
 0x660   :  { %3109 = vrcp.f32 %v1851_v55 }
 0x668   :  { %v3106_v40 = vpop.eup %3105 }
 0x669   :  { %v3108_v54 = vpop.eup %3107  ;;  %v1855_v58 = vmul.f32 %v3106_v40, %v3104_v35 }
 0x66a   :  { %v1854_v61 = vmul.f32 %v3108_v54, %v3761_v63  ;;  %v3110_v27 = vpop.eup %3109  ;;  %v2111_v63 = vld [vmem:[#allocation3] sm:$0xff] }
 0x66b   :  { %v2883_v36 = vpack.c.bf16 %v2115_v28, %v2111_v63 }
 0x66c   :  { %v3801_v2 = vadd.f32 %v1855_v58, %v1854_v61 }
 0x66e   :  { %3111 = vtanh.f32 %v3801_v2 }
 0x678   :  { %v3112_v29 = vpop.eup %3111 }
 0x679   :  { %v1858_v33 = vmul.f32 %v3112_v29, %v3110_v27 }
 0x67b   :  { %1860 = vst [vmem:[#allocation13 + $0x28] sm:$0xff] %v1858_v33  ;;  %1997 = vmatmul.mubr.f32.vlgmr.msra.gmra.mrb[12].mxu0 %v1858_v33  ;;  %2068 = vmatmul.mubr.f32.vlgmr.msra.gmra.mrb[12].mxu1 %v1858_v33 }
 0x67c   :  { %2239 = vmatprep.mubr.f32.mxu0 %v3271_v0  ;;  %2310 = vmatprep.mubr.f32.mxu1 %v3271_v0  ;;  %v2885_v0 = vpack.c.bf16 %v2124_v18, %v2120_v16 }
 0x67d   :  { %2884 = vmatpush1.bf16.msra.mxu0 %v2883_v36  ;;  %2916 = vmatpush1.bf16.msra.mxu1 %v2915_v5 }
 0x67e   :  { %2886 = vmatprep.subr.bf16.mxu0 %v2885_v0  ;;  %2918 = vmatprep.subr.bf16.mxu1 %v2917_v59 }
 0x681   :  { %2888 = vmatpush1.bf16.msra.mxu0 %v2887_v1  ;;  %2920 = vmatpush1.bf16.msra.mxu1 %v2919_v17 }
 0x682   :  { %2890 = vmatprep.subr.bf16.mxu0 %v3640_v38  ;;  %2922 = vmatprep.subr.bf16.mxu1 %v3642_v46 }
 0x685   :  { %2892 = vmatpush1.bf16.msra.mxu0 %v3644_v47  ;;  %2924 = vmatpush1.bf16.msra.mxu1 %v3647_v52 }
 0x686   :  { %2894 = vmatprep.subr.bf16.mxu0 %v3652_v15  ;;  %2926 = vmatprep.subr.bf16.mxu1 %v3654_v32 }
 0x689   :  { %2896 = vmatpush1.bf16.msra.mxu0 %v3656_v9  ;;  %2928 = vmatpush1.bf16.msra.mxu1 %v3659_v20 }
 0x68a   :  { %2898 = vmatprep.subr.bf16.mxu0 %v3664_v41  ;;  %2930 = vmatprep.subr.bf16.mxu1 %v3666_v56 }
 0x68d   :  { %2900 = vmatpush1.bf16.msra.mxu0 %v3668_v60  ;;  %2932 = vmatpush1.bf16.msra.mxu1 %v3671_v7 }
 0x68e   :  { %2902 = vmatprep.subr.bf16.mxu0 %v3675_v26  ;;  %2934 = vmatprep.subr.bf16.mxu1 %v3678_v44 }
 0x691   :  { %2904 = vmatpush1.bf16.msra.mxu0 %v3680_v48  ;;  %2936 = vmatpush1.bf16.msra.mxu1 %v3683_v11 }
 0x692   :  { %2906 = vmatprep.subr.bf16.mxu0 %v3686_v34  ;;  %2938 = vmatprep.subr.bf16.mxu1 %v3688_v39 }
 0x695   :  { %2908 = vmatpush1.bf16.msra.mxu0 %v3691_v51  ;;  %2940 = vmatpush1.bf16.msra.mxu1 %v3695_v19 }
 0x696   :  { %2910 = vmatprep.subr.bf16.mxu0 %v3697_v24  ;;  %2942 = vmatprep.subr.bf16.mxu1 %v3700_v10 }
 0x699   :  { %2912 = vmatpush1.bf16.msra.mxu0 %v3703_v49  ;;  %2944 = vmatpush1.bf16.msra.mxu1 %v3707_v53 }
 0x74e   :  { %v1998_v38 = vpop.f32.mrb[12].mxu0  ;;  %v2069_v46 = vpop.f32.mrb[12].mxu1 }
 0x74f   :  { %v2957_v47 = vadd.f32 %v1998_v38, %v3517_v6  ;;  %v2000_v52 = vpop.f32.mrb[13].mxu0  ;;  %v2071_v15 = vpop.f32.mrb[13].mxu1  ;;  %v2973_v60 = vadd.f32 %v2069_v46, %v3526_v31 }
 0x750   :  { %v2958_v32 = vadd.f32 %v2000_v52, %v3519_v8  ;;  %v2974_v41 = vadd.f32 %v2071_v15, %v3523_v25 }
 0x751   :  { %v2425_v9 = vmul.f32 -1.442695, %v2957_v47 }
 0x752   :  { %v2426_v20 = vmul.f32 -1.442695, %v2958_v32  ;;  %v2427_v56 = vmul.f32 -1.442695, %v2974_v41 }
 0x753   :  { %3113 = vpow2.f32 %v2425_v9 }
 0x754   :  { %3115 = vpow2.f32 %v2426_v20 }
 0x755   :  { %3117 = vpow2.f32 %v2427_v56 }
 0x756   :  { %3119 = vtanh.f32 %v2973_v60 }
 0x75d   :  { %v3114_v7 = vpop.eup %3113 }
 0x75e   :  { %v3116_v26 = vpop.eup %3115  ;;  %v2081_v44 = vadd.f32 1.0, %v3114_v7 }
 0x75f   :  { %v2087_v48 = vadd.f32 1.0, %v3116_v26  ;;  %v3118_v11 = vpop.eup %3117 }
 0x760   :  { %3121 = vrcp.f32 %v2081_v44  ;;  %v3120_v34 = vpop.eup %3119  ;;  %v2094_v24 = vadd.f32 1.0, %v3118_v11 }
 0x761   :  { %3123 = vrcp.f32 %v2087_v48 }
 0x762   :  { %3125 = vrcp.f32 %v2094_v24 }
 0x76a   :  { %v3122_v39 = vpop.eup %3121 }
 0x76b   :  { %v3124_v51 = vpop.eup %3123  ;;  %v2098_v19 = vmul.f32 %v3122_v39, %v3120_v34 }
 0x76c   :  { %v2097_v10 = vmul.f32 %v3124_v51, %v3801_v2  ;;  %v3126_v53 = vpop.eup %3125 }
 0x76e   :  { %v2099_v49 = vadd.f32 %v2098_v19, %v2097_v10 }
 0x770   :  { %3127 = vtanh.f32 %v2099_v49 }
 0x77a   :  { %v3128_v21 = vpop.eup %3127 }
 0x77b   :  { %v2101_v30 = vmul.f32 %v3128_v21, %v3126_v53 }
 0x77d   :  { %2103 = vst [vmem:[#allocation13 + $0x30] sm:$0xff] %v2101_v30  ;;  %2240 = vmatmul.mubr.f32.vlgmr.msra.gmra.mrb[14].mxu0 %v2101_v30  ;;  %2311 = vmatmul.mubr.f32.vlgmr.msra.gmra.mrb[14].mxu1 %v2101_v30 }
 0x850   :  { %v2241_v35 = vpop.f32.mrb[14].mxu0  ;;  %v2312_v40 = vpop.f32.mrb[14].mxu1 }
 0x851   :  { %v2959_v54 = vadd.f32 %v2241_v35, %v3517_v6  ;;  %v2243_v58 = vpop.f32.mrb[15].mxu0  ;;  %v2314_v55 = vpop.f32.mrb[15].mxu1  ;;  %v2975_v42 = vadd.f32 %v2312_v40, %v3526_v31 }
 0x852   :  { %v2960_v61 = vadd.f32 %v2243_v58, %v3519_v8  ;;  %v2976_v2 = vadd.f32 %v2314_v55, %v3523_v25 }
 0x853   :  { %v2428_v27 = vmul.f32 -1.442695, %v2959_v54 }
 0x854   :  { %v2429_v29 = vmul.f32 -1.442695, %v2960_v61  ;;  %v2430_v33 = vmul.f32 -1.442695, %v2976_v2 }
 0x855   :  { %3129 = vpow2.f32 %v2428_v27 }
 0x856   :  { %3131 = vpow2.f32 %v2429_v29 }
 0x857   :  { %3133 = vpow2.f32 %v2430_v33 }
 0x858   :  { %3135 = vtanh.f32 %v2975_v42 }
 0x85f   :  { %v3130_v43 = vpop.eup %3129 }
 0x860   :  { %v3132_v50 = vpop.eup %3131  ;;  %v2324_v57 = vadd.f32 1.0, %v3130_v43 }
 0x861   :  { %v2330_v62 = vadd.f32 1.0, %v3132_v50  ;;  %v3134_v6 = vpop.eup %3133 }
 0x862   :  { %3137 = vrcp.f32 %v2324_v57  ;;  %v3136_v63 = vpop.eup %3135  ;;  %v2337_v36 = vadd.f32 1.0, %v3134_v6 }
 0x863   :  { %3139 = vrcp.f32 %v2330_v62 }
 0x864   :  { %3141 = vrcp.f32 %v2337_v36 }
 0x86c   :  { %v3138_v8 = vpop.eup %3137 }
 0x86d   :  { %v3140_v28 = vpop.eup %3139  ;;  %v2341_v13 = vmul.f32 %v3138_v8, %v3136_v63 }
 0x86e   :  { %v2340_v3 = vmul.f32 %v3140_v28, %v2099_v49  ;;  %v3142_v25 = vpop.eup %3141 }
 0x870   :  { %v2342_v23 = vadd.f32 %v2341_v13, %v2340_v3 }
 0x872   :  { %3143 = vtanh.f32 %v2342_v23 }
 0x87c   :  { %v3144_v31 = vpop.eup %3143 }
 0x87d   :  { %v2344_v5 = vmul.f32 %v3144_v31, %v3142_v25 }
 0x87f   :  { %2346 = vst [vmem:[#allocation13 + $0x38] sm:$0xff] %v2344_v5 }
 0x880   :  { %3244 = shalt.err (!%p3241_p8)
}
 0x881   :  { %s3245_s15 = scalar_lea.hbm %s3858_s4, 1024 }
 0x882   :  { %p3246_p9 = scmp.ne.s32.totalorder %s3858_s4, %s3245_s15  ;;  %p3249_p10 = scmp.lt.u32.totalorder %s3245_s15, %s3858_s4 }
 0x884   :  { %p3251_p11 = pnand %p3249_p10, %p3246_p9 }
 0x886   :  { %3254 = shalt.err (!%p3251_p11)
}
 0x887   :  { %2364 = dma.vmem_to_hbm [thread:$0]  %s2359_s12, 1024, %s3858_s4, [#allocation10], %s3266_s25, %s3266_s25, %s3267_s26  }
 0x888   :  { %3263 = dma.done.wait [#allocation10], 1024  }
 0x889   :  { %3264 = vsyncadd [#allocation10], 4294966272 }
 0x88a   :  { %2368 = vsyncpa [#allocation9], 1 }
 0x88b   :  { %2369 = vsyncpa [#allocation12], 1 }
 0x88c   :  { %2370 = vsyncpa [#allocation10], 1 }
 0x88d   :  { %2371 = vsyncmov [#allocation7] }
 0x890   :  { %s2372_s22 = vpop.sfrf %2371 }
 0x891   :  { %p2431_p12 = scmp.ne.s32.totalorder %s2372_s22, 0 }
 0x893   :  { %2376 = shalt.err (%p2431_p12)  }
 0x894   :  { %2378 = vsyncmov [#allocation7 + $0x1] }
 0x897   :  { %s2379_s23 = vpop.sfrf %2378 }
 0x898   :  { %p2432_p13 = scmp.ne.s32.totalorder %s2379_s23, 0 }
 0x89a   :  { %2383 = shalt.err (%p2432_p13)  }

</bundles_post_ra>
